<compile_context>
chip_gen: v7x
topology: tpu7x:2x2x1
jax: 0.10.0
libtpu: 0.0.40
codegen_flags: <defaults>
</compile_context>

<pallas_src>
import functools

import jax
import jax.numpy as jnp
from jax.experimental import pallas as pl
from jax.experimental.pallas import tpu as pltpu

_BN_EPS = 1e-5


# ----------------------------------------------------------------------------
# Fused Pallas kernel:  out = act( W @ X + shift )        (lane-dense on M)
#   W: (R, K)  folded weights (BN scale already multiplied in)  [bf16]
#   X: (K, M)  transposed patch matrix                           [bf16]
#   shift: (R, 1) f32 per-output-channel bias / BN beta
#   out: (R, M)  bf16 (intermediate layers) or f32 (final tanh layer)
# ----------------------------------------------------------------------------
def _fused_matmul_kernel(w_ref, x_ref, shift_ref, o_ref, *, act):
    acc = jnp.dot(w_ref[...], x_ref[...], preferred_element_type=jnp.float32)
    acc = acc + shift_ref[...]                       # bias / BN beta (scale folded in W)
    if act == "leaky":
        acc = jnp.where(acc >= 0.0, acc, 0.2 * acc)  # LeakyReLU(0.2)
    elif act == "tanh":
        acc = jnp.tanh(acc)
    o_ref[...] = acc.astype(o_ref.dtype)


def _epilogue(acc, shift, act):
    acc = acc + shift
    if act == "leaky":
        return jnp.where(acc >= 0.0, acc, 0.2 * acc)
    if act == "tanh":
        return jnp.tanh(acc)
    return acc


def fused_matmul_t(w, x, shift, act, out_dtype, block_m_max=2048):
    """act( w @ x + shift[:, None] ):  w (R, K), x (K, M) -> (R, M)."""
    r, k = w.shape
    m = x.shape[1]
    wb = w.astype(jnp.bfloat16)
    xb = x.astype(jnp.bfloat16)
    shift2 = shift.reshape(r, 1).astype(jnp.float32)

    if m < 256:
        # Tiny deep layers (spatial <= 8x8): a pallas grid step costs more than the
        # whole matmul -> plain fused jnp path (review: bypass pallas there).
        acc = jnp.dot(wb, xb, preferred_element_type=jnp.float32)
        return _epilogue(acc, shift2, act).astype(out_dtype)

    block_m = 0
    for cand in (block_m_max, 1024, 512, 256, 128):
        if cand <= m and m % cand == 0:
            block_m = cand
            break
    m_run, pad = m, 0
    if block_m == 0:                                  # not hit for power-of-2 shapes
        block_m = 128
        m_run = pl.cdiv(m, block_m) * block_m
        pad = m_run - m
        xb = jnp.pad(xb, ((0, 0), (0, pad)))

    out = pl.pallas_call(
        functools.partial(_fused_matmul_kernel, act=act),
        out_shape=jax.ShapeDtypeStruct((r, m_run), out_dtype),
        grid=(m_run // block_m,),
        in_specs=[
            pl.BlockSpec((r, k), lambda i: (0, 0)),          # folded weights (resident)
            pl.BlockSpec((k, block_m), lambda i: (0, i)),    # patch tile, M on lanes
            pl.BlockSpec((r, 1), lambda i: (0, 0)),          # per-channel shift
        ],
        out_specs=pl.BlockSpec((r, block_m), lambda i: (0, i)),
        compiler_params=pltpu.CompilerParams(
            dimension_semantics=("parallel",)),              # megacore-shardable (v7x)
    )(wb, xb, shift2)
    return out[:, :m] if pad else out


# ----------------------------------------------------------------------------
# Conv2d(k=4, s=2, p=1, bias=False) [+ BN + LeakyReLU]   — NCHW, transposed matmul
# ----------------------------------------------------------------------------
def down_conv(x, wmat, shift):
    # x: (N, Cin, H, W); wmat: (Cout, 16*Cin) with BN scale folded; shift: (Cout,)
    n, cin, h, w = x.shape
    cout = wmat.shape[0]
    ho, wo = h // 2, w // 2
    xp = jnp.pad(x, ((0, 0), (0, 0), (1, 1), (1, 1)))
    views = [xp[:, :, kh:kh + 2 * ho:2, kw:kw + 2 * wo:2]
             for kh in range(4) for kw in range(4)]           # each (N, Cin, Ho, Wo)
    p = jnp.stack(views, axis=2)                              # (N, Cin, 16, Ho, Wo)
    p_t = jnp.transpose(p, (1, 2, 0, 3, 4)).reshape(cin * 16, n * ho * wo)
    out = fused_matmul_t(wmat, p_t, shift, act="leaky", out_dtype=jnp.bfloat16)
    return out.reshape(cout, n, ho, wo).transpose(1, 0, 2, 3)  # (N, Cout, Ho, Wo)


# ----------------------------------------------------------------------------
# ConvTranspose2d(k=4, s=2, p=1) [+ BN + LeakyReLU | bias + Tanh]   — NCHW,
# sub-pixel (output-parity) decomposition: one matmul with K = 9*Cin, R = 4*Cout.
# ----------------------------------------------------------------------------
def up_conv(x, wmat, shift, act, out_dtype):
    # x: (N, Cin, H, W); wmat: (4*Cout, 9*Cin); shift: (4*Cout,)
    n, cin, h, w = x.shape
    cout = wmat.shape[0] // 4
    xp = jnp.pad(x, ((0, 0), (0, 0), (1, 1), (1, 1)))
    views = [xp[:, :, dy:dy + h, dx:dx + w]
             for dy in range(3) for dx in range(3)]           # each (N, Cin, H, W)
    p = jnp.stack(views, axis=2)                              # (N, Cin, 9, H, W)
    p_t = jnp.transpose(p, (1, 2, 0, 3, 4)).reshape(cin * 9, n * h * w)
    out = fused_matmul_t(wmat, p_t, shift, act=act, out_dtype=out_dtype)  # (4*Cout, M)
    t = out.reshape(2, 2, cout, n, h, w)                      # (ry, rx, co, n, p, q)
    return jnp.transpose(t, (3, 2, 4, 0, 5, 1)).reshape(n, cout, 2 * h, 2 * w)


def _upconv_weight_matrix(w_t):
    """ConvTranspose2d(4,2,1) weight (Cin, Cout, 4, 4) -> sub-pixel matmul operand
    of shape (4*Cout, 9*Cin).  Row order (ry, rx, co); column order (ci, dy*3+dx)
    where (dy, dx) index the 3x3 neighbourhood of the 1-padded input."""
    cin, cout = w_t.shape[0], w_t.shape[1]
    taps = {0: ((0, 3), (1, 1)),   # even output parity: (input offset, kernel index)
            1: ((1, 2), (2, 0))}   # odd  output parity
    a = jnp.zeros((4 * cout, 9 * cin), jnp.float32)
    for ry in (0, 1):
        for rx in (0, 1):
            r0 = (2 * ry + rx) * cout
            for dy, ky in taps[ry]:
                for dx, kx in taps[rx]:
                    cols = jnp.arange(cin) * 9 + (dy * 3 + dx)
                    a = a.at[r0:r0 + cout, cols].set(w_t[:, :, ky, kx].T)
    return a


# ----------------------------------------------------------------------------
# Generator parameters (deterministic synthetic init, shapes from __init__).
# BN scale is folded into the weight rows here (static, free).
# ----------------------------------------------------------------------------
def init_generator_params(key, in_ch, out_ch, f):
    enc_specs = [(in_ch, f, False), (f, 2 * f, True), (2 * f, 4 * f, True),
                 (4 * f, 8 * f, True), (8 * f, 8 * f, True), (8 * f, 8 * f, True),
                 (8 * f, 8 * f, True), (8 * f, 8 * f, True)]
    dec_specs = [(8 * f, 8 * f), (16 * f, 8 * f), (16 * f, 8 * f), (16 * f, 8 * f),
                 (16 * f, 4 * f), (8 * f, 2 * f), (4 * f, f)]
    params = {"enc": [], "dec": []}
    for ci, co, bn in enc_specs:
        key, k1, k2, k3 = jax.random.split(key, 4)
        w = 0.05 * jax.random.normal(k1, (co, ci, 4, 4), jnp.float32)   # Conv2d layout
        if bn:
            gamma = 1.0 + 0.1 * jax.random.normal(k2, (co,), jnp.float32)
            beta = 0.1 * jax.random.normal(k3, (co,), jnp.float32)
            scale = gamma / jnp.sqrt(1.0 + _BN_EPS)   # eval BN: running_mean=0, var=1
            shift = beta
        else:
            scale = jnp.ones((co,), jnp.float32)
            shift = jnp.zeros((co,), jnp.float32)
        wmat = (w.reshape(co, ci * 16) * scale[:, None]).astype(jnp.bfloat16)
        params["enc"].append((wmat, shift))
    for ci, co in dec_specs:
        key, k1, k2, k3 = jax.random.split(key, 4)
        w = 0.05 * jax.random.normal(k1, (ci, co, 4, 4), jnp.float32)   # ConvTranspose2d layout
        gamma = 1.0 + 0.1 * jax.random.normal(k2, (co,), jnp.float32)
        beta = 0.1 * jax.random.normal(k3, (co,), jnp.float32)
        scale4 = jnp.tile(gamma / jnp.sqrt(1.0 + _BN_EPS), 4)
        shift4 = jnp.tile(beta, 4)
        wmat = (_upconv_weight_matrix(w) * scale4[:, None]).astype(jnp.bfloat16)
        params["dec"].append((wmat, shift4))
    key, k1, k2 = jax.random.split(key, 3)
    w_last = 0.05 * jax.random.normal(k1, (2 * f, out_ch, 4, 4), jnp.float32)
    b_last = 0.1 * jax.random.normal(k2, (out_ch,), jnp.float32)
    params["last"] = (_upconv_weight_matrix(w_last).astype(jnp.bfloat16),
                      jnp.tile(b_last, 4))
    return params


# ----------------------------------------------------------------------------
# Generator forward (mirrors the PyTorch forward exactly; NCHW throughout)
# ----------------------------------------------------------------------------
def generator_forward(x_nchw, params):
    x = x_nchw.astype(jnp.bfloat16)
    skips = []
    for wmat, shift in params["enc"]:
        x = down_conv(x, wmat, shift)
        skips.append(x)
    # reversed(skip_conns[:-1]); the 8th decoder entry (bare nn.Module()) is never used.
    for (wmat, shift), skip in zip(params["dec"], reversed(skips[:-1])):
        x = up_conv(x, wmat, shift, act="leaky", out_dtype=jnp.bfloat16)  # Dropout(eval)=identity
        x = jnp.concatenate([x, skip], axis=1)        # torch.cat(dim=1) == channel axis (NCHW)
    wmat, shift = params["last"]
    x = up_conv(x, wmat, shift, act="tanh", out_dtype=jnp.float32)   # ConvT(bias=True)+Tanh
    return x


if __name__ == "__main__":
    # 8 stride-2 downsamples require spatial >= 256; keep batch/channels tiny.
    N, IN_CH, OUT_CH, F, H, W = 1, 1, 1, 2, 256, 256

    root = jax.random.PRNGKey(0)
    k_params, k_x = jax.random.split(root)
    params = init_generator_params(k_params, IN_CH, OUT_CH, F)

    x = jax.random.normal(k_x, (N, IN_CH, H, W), jnp.float32)        # PyTorch NCHW layout

    fwd = jax.jit(generator_forward)
    out = jax.block_until_ready(fwd(x, params))

    assert out.shape == (N, OUT_CH, H, W), out.shape
    assert out.dtype == jnp.float32
    assert bool(jnp.all(jnp.isfinite(out)))
    assert bool(jnp.all(jnp.abs(out) <= 1.0 + 1e-6))                 # tanh range
    print("KERNEL_OK")
</pallas_src>

<mosaic_0001>
module attributes {stable_mosaic.version = 11 : i64} {
  func.func @_fused_matmul_kernel(%arg0: i32, %arg1: memref<2x16xbf16, #tpu.memory_space<vmem>>, %arg2: memref<16x2048xbf16, #tpu.memory_space<vmem>>, %arg3: memref<2x1xf32, #tpu.memory_space<vmem>>, %arg4: memref<2x2048xbf16, #tpu.memory_space<vmem>>) attributes {dimension_semantics = [#tpu.dimension_semantics<parallel>], iteration_bounds = array<i64: 8>, scalar_prefetch = 0 : i64, scratch_operands = 0 : i64, tpu.core_type = #tpu.core_type<tc>, window_params = [{pipeline_mode = #tpu.pipeline_mode<synchronous>, transform_indices = @transform_0, window_bounds = array<i64: 2, 16>}, {transform_indices = @transform_1, window_bounds = array<i64: 16, 2048>}, {pipeline_mode = #tpu.pipeline_mode<synchronous>, transform_indices = @transform_2, window_bounds = array<i64: 2, 1>}, {transform_indices = @transform_3, window_bounds = array<i64: 2, 2048>}]} {
    %c0 = arith.constant 0 : index
    %c0_0 = arith.constant 0 : index
    %0 = vector.load %arg1[%c0, %c0_0] : memref<2x16xbf16, #tpu.memory_space<vmem>>, vector<2x16xbf16>
    %c0_1 = arith.constant 0 : index
    %c0_2 = arith.constant 0 : index
    %1 = vector.load %arg2[%c0_1, %c0_2] : memref<16x2048xbf16, #tpu.memory_space<vmem>>, vector<16x2048xbf16>
    %cst = arith.constant dense<0.000000e+00> : vector<2x2048xf32>
    %2 = tpu.matmul %0, %1, %cst {dimension_numbers = #tpu.dot_dimension_numbers<[1], [0], [0], [1], [0, 0, 1, 1], [], []>} : vector<2x16xbf16>, vector<16x2048xbf16>, vector<2x2048xf32> -> vector<2x2048xf32>
    %c0_3 = arith.constant 0 : index
    %c0_4 = arith.constant 0 : index
    %3 = vector.load %arg3[%c0_3, %c0_4] : memref<2x1xf32, #tpu.memory_space<vmem>>, vector<2x1xf32>
    %4 = vector.broadcast %3 : vector<2x1xf32> to vector<2x2048xf32>
    %5 = arith.addf %2, %4 : vector<2x2048xf32>
    %cst_5 = arith.constant 0.000000e+00 : f32
    %6 = vector.broadcast %cst_5 : f32 to vector<2x2048xf32>
    %7 = arith.cmpf oge, %5, %6 : vector<2x2048xf32>
    %cst_6 = arith.constant 2.000000e-01 : f32
    %8 = vector.broadcast %cst_6 : f32 to vector<2x2048xf32>
    %9 = arith.mulf %8, %5 : vector<2x2048xf32>
    %10 = arith.select %7, %5, %9 : vector<2x2048xi1>, vector<2x2048xf32>
    %11 = arith.truncf %10 : vector<2x2048xf32> to vector<2x2048xbf16>
    %c0_7 = arith.constant 0 : index
    %c0_8 = arith.constant 0 : index
    %12 = vector.load %arg4[%c0_7, %c0_8] : memref<2x2048xbf16, #tpu.memory_space<vmem>>, vector<2x2048xbf16>
    tpu.vector_store %arg4[%c0_7, %c0_8], %11 {strides = array<i32>} : memref<2x2048xbf16, #tpu.memory_space<vmem>>, vector<2x2048xbf16>,
    return
  }
  func.func @transform_0(%arg0: i32) -> (i32, i32) {
    %c0_i32 = arith.constant 0 : i32
    %c0_i32_0 = arith.constant 0 : i32
    %c0_i32_1 = arith.constant 0 : i32
    return %c0_i32, %c0_i32_0 : i32, i32
  }
  func.func @transform_1(%arg0: i32) -> (i32, i32) {
    %c0_i32 = arith.constant 0 : i32
    %c0_i32_0 = arith.constant 0 : i32
    return %c0_i32, %arg0 : i32, i32
  }
  func.func @transform_2(%arg0: i32) -> (i32, i32) {
    %c0_i32 = arith.constant 0 : i32
    %c0_i32_0 = arith.constant 0 : i32
    %c0_i32_1 = arith.constant 0 : i32
    return %c0_i32, %c0_i32_0 : i32, i32
  }
  func.func @transform_3(%arg0: i32) -> (i32, i32) {
    %c0_i32 = arith.constant 0 : i32
    %c0_i32_0 = arith.constant 0 : i32
    return %c0_i32, %arg0 : i32, i32
  }
}

module attributes {stable_mosaic.version = 11 : i64} {
  func.func @_fused_matmul_kernel(%arg0: i32, %arg1: memref<4x32xbf16, #tpu.memory_space<vmem>>, %arg2: memref<32x2048xbf16, #tpu.memory_space<vmem>>, %arg3: memref<4x1xf32, #tpu.memory_space<vmem>>, %arg4: memref<4x2048xbf16, #tpu.memory_space<vmem>>) attributes {dimension_semantics = [#tpu.dimension_semantics<parallel>], iteration_bounds = array<i64: 2>, scalar_prefetch = 0 : i64, scratch_operands = 0 : i64, tpu.core_type = #tpu.core_type<tc>, window_params = [{pipeline_mode = #tpu.pipeline_mode<synchronous>, transform_indices = @transform_0, window_bounds = array<i64: 4, 32>}, {transform_indices = @transform_1, window_bounds = array<i64: 32, 2048>}, {pipeline_mode = #tpu.pipeline_mode<synchronous>, transform_indices = @transform_2, window_bounds = array<i64: 4, 1>}, {transform_indices = @transform_3, window_bounds = array<i64: 4, 2048>}]} {
    %c0 = arith.constant 0 : index
    %c0_0 = arith.constant 0 : index
    %0 = vector.load %arg1[%c0, %c0_0] : memref<4x32xbf16, #tpu.memory_space<vmem>>, vector<4x32xbf16>
    %c0_1 = arith.constant 0 : index
    %c0_2 = arith.constant 0 : index
    %1 = vector.load %arg2[%c0_1, %c0_2] : memref<32x2048xbf16, #tpu.memory_space<vmem>>, vector<32x2048xbf16>
    %cst = arith.constant dense<0.000000e+00> : vector<4x2048xf32>
    %2 = tpu.matmul %0, %1, %cst {dimension_numbers = #tpu.dot_dimension_numbers<[1], [0], [0], [1], [0, 0, 1, 1], [], []>} : vector<4x32xbf16>, vector<32x2048xbf16>, vector<4x2048xf32> -> vector<4x2048xf32>
    %c0_3 = arith.constant 0 : index
    %c0_4 = arith.constant 0 : index
    %3 = vector.load %arg3[%c0_3, %c0_4] : memref<4x1xf32, #tpu.memory_space<vmem>>, vector<4x1xf32>
    %4 = vector.broadcast %3 : vector<4x1xf32> to vector<4x2048xf32>
    %5 = arith.addf %2, %4 : vector<4x2048xf32>
    %cst_5 = arith.constant 0.000000e+00 : f32
    %6 = vector.broadcast %cst_5 : f32 to vector<4x2048xf32>
    %7 = arith.cmpf oge, %5, %6 : vector<4x2048xf32>
    %cst_6 = arith.constant 2.000000e-01 : f32
    %8 = vector.broadcast %cst_6 : f32 to vector<4x2048xf32>
    %9 = arith.mulf %8, %5 : vector<4x2048xf32>
    %10 = arith.select %7, %5, %9 : vector<4x2048xi1>, vector<4x2048xf32>
    %11 = arith.truncf %10 : vector<4x2048xf32> to vector<4x2048xbf16>
    %c0_7 = arith.constant 0 : index
    %c0_8 = arith.constant 0 : index
    %12 = vector.load %arg4[%c0_7, %c0_8] : memref<4x2048xbf16, #tpu.memory_space<vmem>>, vector<4x2048xbf16>
    tpu.vector_store %arg4[%c0_7, %c0_8], %11 {strides = array<i32>} : memref<4x2048xbf16, #tpu.memory_space<vmem>>, vector<4x2048xbf16>,
    return
  }
  func.func @transform_0(%arg0: i32) -> (i32, i32) {
    %c0_i32 = arith.constant 0 : i32
    %c0_i32_0 = arith.constant 0 : i32
    %c0_i32_1 = arith.constant 0 : i32
    return %c0_i32, %c0_i32_0 : i32, i32
  }
  func.func @transform_1(%arg0: i32) -> (i32, i32) {
    %c0_i32 = arith.constant 0 : i32
    %c0_i32_0 = arith.constant 0 : i32
    return %c0_i32, %arg0 : i32, i32
  }
  func.func @transform_2(%arg0: i32) -> (i32, i32) {
    %c0_i32 = arith.constant 0 : i32
    %c0_i32_0 = arith.constant 0 : i32
    %c0_i32_1 = arith.constant 0 : i32
    return %c0_i32, %c0_i32_0 : i32, i32
  }
  func.func @transform_3(%arg0: i32) -> (i32, i32) {
    %c0_i32 = arith.constant 0 : i32
    %c0_i32_0 = arith.constant 0 : i32
    return %c0_i32, %arg0 : i32, i32
  }
}

module attributes {stable_mosaic.version = 11 : i64} {
  func.func @_fused_matmul_kernel(%arg0: i32, %arg1: memref<8x64xbf16, #tpu.memory_space<vmem>>, %arg2: memref<64x1024xbf16, #tpu.memory_space<vmem>>, %arg3: memref<8x1xf32, #tpu.memory_space<vmem>>, %arg4: memref<8x1024xbf16, #tpu.memory_space<vmem>>) attributes {dimension_semantics = [#tpu.dimension_semantics<parallel>], iteration_bounds = array<i64: 1>, scalar_prefetch = 0 : i64, scratch_operands = 0 : i64, tpu.core_type = #tpu.core_type<tc>, window_params = [{pipeline_mode = #tpu.pipeline_mode<synchronous>, transform_indices = @transform_0, window_bounds = array<i64: 8, 64>}, {transform_indices = @transform_1, window_bounds = array<i64: 64, 1024>}, {pipeline_mode = #tpu.pipeline_mode<synchronous>, transform_indices = @transform_2, window_bounds = array<i64: 8, 1>}, {transform_indices = @transform_3, window_bounds = array<i64: 8, 1024>}]} {
    %c0 = arith.constant 0 : index
    %c0_0 = arith.constant 0 : index
    %0 = vector.load %arg1[%c0, %c0_0] : memref<8x64xbf16, #tpu.memory_space<vmem>>, vector<8x64xbf16>
    %c0_1 = arith.constant 0 : index
    %c0_2 = arith.constant 0 : index
    %1 = vector.load %arg2[%c0_1, %c0_2] : memref<64x1024xbf16, #tpu.memory_space<vmem>>, vector<64x1024xbf16>
    %cst = arith.constant dense<0.000000e+00> : vector<8x1024xf32>
    %2 = tpu.matmul %0, %1, %cst {dimension_numbers = #tpu.dot_dimension_numbers<[1], [0], [0], [1], [0, 0, 1, 1], [], []>} : vector<8x64xbf16>, vector<64x1024xbf16>, vector<8x1024xf32> -> vector<8x1024xf32>
    %c0_3 = arith.constant 0 : index
    %c0_4 = arith.constant 0 : index
    %3 = vector.load %arg3[%c0_3, %c0_4] : memref<8x1xf32, #tpu.memory_space<vmem>>, vector<8x1xf32>
    %4 = vector.broadcast %3 : vector<8x1xf32> to vector<8x1024xf32>
    %5 = arith.addf %2, %4 : vector<8x1024xf32>
    %cst_5 = arith.constant 0.000000e+00 : f32
    %6 = vector.broadcast %cst_5 : f32 to vector<8x1024xf32>
    %7 = arith.cmpf oge, %5, %6 : vector<8x1024xf32>
    %cst_6 = arith.constant 2.000000e-01 : f32
    %8 = vector.broadcast %cst_6 : f32 to vector<8x1024xf32>
    %9 = arith.mulf %8, %5 : vector<8x1024xf32>
    %10 = arith.select %7, %5, %9 : vector<8x1024xi1>, vector<8x1024xf32>
    %11 = arith.truncf %10 : vector<8x1024xf32> to vector<8x1024xbf16>
    %c0_7 = arith.constant 0 : index
    %c0_8 = arith.constant 0 : index
    %12 = vector.load %arg4[%c0_7, %c0_8] : memref<8x1024xbf16, #tpu.memory_space<vmem>>, vector<8x1024xbf16>
    tpu.vector_store %arg4[%c0_7, %c0_8], %11 {strides = array<i32>} : memref<8x1024xbf16, #tpu.memory_space<vmem>>, vector<8x1024xbf16>,
    return
  }
  func.func @transform_0(%arg0: i32) -> (i32, i32) {
    %c0_i32 = arith.constant 0 : i32
    %c0_i32_0 = arith.constant 0 : i32
    %c0_i32_1 = arith.constant 0 : i32
    return %c0_i32, %c0_i32_0 : i32, i32
  }
  func.func @transform_1(%arg0: i32) -> (i32, i32) {
    %c0_i32 = arith.constant 0 : i32
    %c0_i32_0 = arith.constant 0 : i32
    return %c0_i32, %arg0 : i32, i32
  }
  func.func @transform_2(%arg0: i32) -> (i32, i32) {
    %c0_i32 = arith.constant 0 : i32
    %c0_i32_0 = arith.constant 0 : i32
    %c0_i32_1 = arith.constant 0 : i32
    return %c0_i32, %c0_i32_0 : i32, i32
  }
  func.func @transform_3(%arg0: i32) -> (i32, i32) {
    %c0_i32 = arith.constant 0 : i32
    %c0_i32_0 = arith.constant 0 : i32
    return %c0_i32, %arg0 : i32, i32
  }
}

module attributes {stable_mosaic.version = 11 : i64} {
  func.func @_fused_matmul_kernel(%arg0: i32, %arg1: memref<16x128xbf16, #tpu.memory_space<vmem>>, %arg2: memref<128x256xbf16, #tpu.memory_space<vmem>>, %arg3: memref<16x1xf32, #tpu.memory_space<vmem>>, %arg4: memref<16x256xbf16, #tpu.memory_space<vmem>>) attributes {dimension_semantics = [#tpu.dimension_semantics<parallel>], iteration_bounds = array<i64: 1>, scalar_prefetch = 0 : i64, scratch_operands = 0 : i64, tpu.core_type = #tpu.core_type<tc>, window_params = [{pipeline_mode = #tpu.pipeline_mode<synchronous>, transform_indices = @transform_0, window_bounds = array<i64: 16, 128>}, {transform_indices = @transform_1, window_bounds = array<i64: 128, 256>}, {pipeline_mode = #tpu.pipeline_mode<synchronous>, transform_indices = @transform_2, window_bounds = array<i64: 16, 1>}, {transform_indices = @transform_3, window_bounds = array<i64: 16, 256>}]} {
    %c0 = arith.constant 0 : index
    %c0_0 = arith.constant 0 : index
    %0 = vector.load %arg1[%c0, %c0_0] : memref<16x128xbf16, #tpu.memory_space<vmem>>, vector<16x128xbf16>
    %c0_1 = arith.constant 0 : index
    %c0_2 = arith.constant 0 : index
    %1 = vector.load %arg2[%c0_1, %c0_2] : memref<128x256xbf16, #tpu.memory_space<vmem>>, vector<128x256xbf16>
    %cst = arith.constant dense<0.000000e+00> : vector<16x256xf32>
    %2 = tpu.matmul %0, %1, %cst {dimension_numbers = #tpu.dot_dimension_numbers<[1], [0], [0], [1], [0, 0, 1, 1], [], []>} : vector<16x128xbf16>, vector<128x256xbf16>, vector<16x256xf32> -> vector<16x256xf32>
    %c0_3 = arith.constant 0 : index
    %c0_4 = arith.constant 0 : index
    %3 = vector.load %arg3[%c0_3, %c0_4] : memref<16x1xf32, #tpu.memory_space<vmem>>, vector<16x1xf32>
    %4 = vector.broadcast %3 : vector<16x1xf32> to vector<16x256xf32>
    %5 = arith.addf %2, %4 : vector<16x256xf32>
    %cst_5 = arith.constant 0.000000e+00 : f32
    %6 = vector.broadcast %cst_5 : f32 to vector<16x256xf32>
    %7 = arith.cmpf oge, %5, %6 : vector<16x256xf32>
    %cst_6 = arith.constant 2.000000e-01 : f32
    %8 = vector.broadcast %cst_6 : f32 to vector<16x256xf32>
    %9 = arith.mulf %8, %5 : vector<16x256xf32>
    %10 = arith.select %7, %5, %9 : vector<16x256xi1>, vector<16x256xf32>
    %11 = arith.truncf %10 : vector<16x256xf32> to vector<16x256xbf16>
    %c0_7 = arith.constant 0 : index
    %c0_8 = arith.constant 0 : index
    %12 = vector.load %arg4[%c0_7, %c0_8] : memref<16x256xbf16, #tpu.memory_space<vmem>>, vector<16x256xbf16>
    tpu.vector_store %arg4[%c0_7, %c0_8], %11 {strides = array<i32>} : memref<16x256xbf16, #tpu.memory_space<vmem>>, vector<16x256xbf16>,
    return
  }
  func.func @transform_0(%arg0: i32) -> (i32, i32) {
    %c0_i32 = arith.constant 0 : i32
    %c0_i32_0 = arith.constant 0 : i32
    %c0_i32_1 = arith.constant 0 : i32
    return %c0_i32, %c0_i32_0 : i32, i32
  }
  func.func @transform_1(%arg0: i32) -> (i32, i32) {
    %c0_i32 = arith.constant 0 : i32
    %c0_i32_0 = arith.constant 0 : i32
    return %c0_i32, %arg0 : i32, i32
  }
  func.func @transform_2(%arg0: i32) -> (i32, i32) {
    %c0_i32 = arith.constant 0 : i32
    %c0_i32_0 = arith.constant 0 : i32
    %c0_i32_1 = arith.constant 0 : i32
    return %c0_i32, %c0_i32_0 : i32, i32
  }
  func.func @transform_3(%arg0: i32) -> (i32, i32) {
    %c0_i32 = arith.constant 0 : i32
    %c0_i32_0 = arith.constant 0 : i32
    return %c0_i32, %arg0 : i32, i32
  }
}

module attributes {stable_mosaic.version = 11 : i64} {
  func.func @_fused_matmul_kernel(%arg0: i32, %arg1: memref<32x288xbf16, #tpu.memory_space<vmem>>, %arg2: memref<288x256xbf16, #tpu.memory_space<vmem>>, %arg3: memref<32x1xf32, #tpu.memory_space<vmem>>, %arg4: memref<32x256xbf16, #tpu.memory_space<vmem>>) attributes {dimension_semantics = [#tpu.dimension_semantics<parallel>], iteration_bounds = array<i64: 1>, scalar_prefetch = 0 : i64, scratch_operands = 0 : i64, tpu.core_type = #tpu.core_type<tc>, window_params = [{pipeline_mode = #tpu.pipeline_mode<synchronous>, transform_indices = @transform_0, window_bounds = array<i64: 32, 288>}, {transform_indices = @transform_1, window_bounds = array<i64: 288, 256>}, {pipeline_mode = #tpu.pipeline_mode<synchronous>, transform_indices = @transform_2, window_bounds = array<i64: 32, 1>}, {transform_indices = @transform_3, window_bounds = array<i64: 32, 256>}]} {
    %c0 = arith.constant 0 : index
    %c0_0 = arith.constant 0 : index
    %0 = vector.load %arg1[%c0, %c0_0] : memref<32x288xbf16, #tpu.memory_space<vmem>>, vector<32x288xbf16>
    %c0_1 = arith.constant 0 : index
    %c0_2 = arith.constant 0 : index
    %1 = vector.load %arg2[%c0_1, %c0_2] : memref<288x256xbf16, #tpu.memory_space<vmem>>, vector<288x256xbf16>
    %cst = arith.constant dense<0.000000e+00> : vector<32x256xf32>
    %2 = tpu.matmul %0, %1, %cst {dimension_numbers = #tpu.dot_dimension_numbers<[1], [0], [0], [1], [0, 0, 1, 1], [], []>} : vector<32x288xbf16>, vector<288x256xbf16>, vector<32x256xf32> -> vector<32x256xf32>
    %c0_3 = arith.constant 0 : index
    %c0_4 = arith.constant 0 : index
    %3 = vector.load %arg3[%c0_3, %c0_4] : memref<32x1xf32, #tpu.memory_space<vmem>>, vector<32x1xf32>
    %4 = vector.broadcast %3 : vector<32x1xf32> to vector<32x256xf32>
    %5 = arith.addf %2, %4 : vector<32x256xf32>
    %cst_5 = arith.constant 0.000000e+00 : f32
    %6 = vector.broadcast %cst_5 : f32 to vector<32x256xf32>
    %7 = arith.cmpf oge, %5, %6 : vector<32x256xf32>
    %cst_6 = arith.constant 2.000000e-01 : f32
    %8 = vector.broadcast %cst_6 : f32 to vector<32x256xf32>
    %9 = arith.mulf %8, %5 : vector<32x256xf32>
    %10 = arith.select %7, %5, %9 : vector<32x256xi1>, vector<32x256xf32>
    %11 = arith.truncf %10 : vector<32x256xf32> to vector<32x256xbf16>
    %c0_7 = arith.constant 0 : index
    %c0_8 = arith.constant 0 : index
    %12 = vector.load %arg4[%c0_7, %c0_8] : memref<32x256xbf16, #tpu.memory_space<vmem>>, vector<32x256xbf16>
    tpu.vector_store %arg4[%c0_7, %c0_8], %11 {strides = array<i32>} : memref<32x256xbf16, #tpu.memory_space<vmem>>, vector<32x256xbf16>,
    return
  }
  func.func @transform_0(%arg0: i32) -> (i32, i32) {
    %c0_i32 = arith.constant 0 : i32
    %c0_i32_0 = arith.constant 0 : i32
    %c0_i32_1 = arith.constant 0 : i32
    return %c0_i32, %c0_i32_0 : i32, i32
  }
  func.func @transform_1(%arg0: i32) -> (i32, i32) {
    %c0_i32 = arith.constant 0 : i32
    %c0_i32_0 = arith.constant 0 : i32
    return %c0_i32, %arg0 : i32, i32
  }
  func.func @transform_2(%arg0: i32) -> (i32, i32) {
    %c0_i32 = arith.constant 0 : i32
    %c0_i32_0 = arith.constant 0 : i32
    %c0_i32_1 = arith.constant 0 : i32
    return %c0_i32, %c0_i32_0 : i32, i32
  }
  func.func @transform_3(%arg0: i32) -> (i32, i32) {
    %c0_i32 = arith.constant 0 : i32
    %c0_i32_0 = arith.constant 0 : i32
    return %c0_i32, %arg0 : i32, i32
  }
}

module attributes {stable_mosaic.version = 11 : i64} {
  func.func @_fused_matmul_kernel(%arg0: i32, %arg1: memref<16x144xbf16, #tpu.memory_space<vmem>>, %arg2: memref<144x1024xbf16, #tpu.memory_space<vmem>>, %arg3: memref<16x1xf32, #tpu.memory_space<vmem>>, %arg4: memref<16x1024xbf16, #tpu.memory_space<vmem>>) attributes {dimension_semantics = [#tpu.dimension_semantics<parallel>], iteration_bounds = array<i64: 1>, scalar_prefetch = 0 : i64, scratch_operands = 0 : i64, tpu.core_type = #tpu.core_type<tc>, window_params = [{pipeline_mode = #tpu.pipeline_mode<synchronous>, transform_indices = @transform_0, window_bounds = array<i64: 16, 144>}, {transform_indices = @transform_1, window_bounds = array<i64: 144, 1024>}, {pipeline_mode = #tpu.pipeline_mode<synchronous>, transform_indices = @transform_2, window_bounds = array<i64: 16, 1>}, {transform_indices = @transform_3, window_bounds = array<i64: 16, 1024>}]} {
    %c0 = arith.constant 0 : index
    %c0_0 = arith.constant 0 : index
    %0 = vector.load %arg1[%c0, %c0_0] : memref<16x144xbf16, #tpu.memory_space<vmem>>, vector<16x144xbf16>
    %c0_1 = arith.constant 0 : index
    %c0_2 = arith.constant 0 : index
    %1 = vector.load %arg2[%c0_1, %c0_2] : memref<144x1024xbf16, #tpu.memory_space<vmem>>, vector<144x1024xbf16>
    %cst = arith.constant dense<0.000000e+00> : vector<16x1024xf32>
    %2 = tpu.matmul %0, %1, %cst {dimension_numbers = #tpu.dot_dimension_numbers<[1], [0], [0], [1], [0, 0, 1, 1], [], []>} : vector<16x144xbf16>, vector<144x1024xbf16>, vector<16x1024xf32> -> vector<16x1024xf32>
    %c0_3 = arith.constant 0 : index
    %c0_4 = arith.constant 0 : index
    %3 = vector.load %arg3[%c0_3, %c0_4] : memref<16x1xf32, #tpu.memory_space<vmem>>, vector<16x1xf32>
    %4 = vector.broadcast %3 : vector<16x1xf32> to vector<16x1024xf32>
    %5 = arith.addf %2, %4 : vector<16x1024xf32>
    %cst_5 = arith.constant 0.000000e+00 : f32
    %6 = vector.broadcast %cst_5 : f32 to vector<16x1024xf32>
    %7 = arith.cmpf oge, %5, %6 : vector<16x1024xf32>
    %cst_6 = arith.constant 2.000000e-01 : f32
    %8 = vector.broadcast %cst_6 : f32 to vector<16x1024xf32>
    %9 = arith.mulf %8, %5 : vector<16x1024xf32>
    %10 = arith.select %7, %5, %9 : vector<16x1024xi1>, vector<16x1024xf32>
    %11 = arith.truncf %10 : vector<16x1024xf32> to vector<16x1024xbf16>
    %c0_7 = arith.constant 0 : index
    %c0_8 = arith.constant 0 : index
    %12 = vector.load %arg4[%c0_7, %c0_8] : memref<16x1024xbf16, #tpu.memory_space<vmem>>, vector<16x1024xbf16>
    tpu.vector_store %arg4[%c0_7, %c0_8], %11 {strides = array<i32>} : memref<16x1024xbf16, #tpu.memory_space<vmem>>, vector<16x1024xbf16>,
    return
  }
  func.func @transform_0(%arg0: i32) -> (i32, i32) {
    %c0_i32 = arith.constant 0 : i32
    %c0_i32_0 = arith.constant 0 : i32
    %c0_i32_1 = arith.constant 0 : i32
    return %c0_i32, %c0_i32_0 : i32, i32
  }
  func.func @transform_1(%arg0: i32) -> (i32, i32) {
    %c0_i32 = arith.constant 0 : i32
    %c0_i32_0 = arith.constant 0 : i32
    return %c0_i32, %arg0 : i32, i32
  }
  func.func @transform_2(%arg0: i32) -> (i32, i32) {
    %c0_i32 = arith.constant 0 : i32
    %c0_i32_0 = arith.constant 0 : i32
    %c0_i32_1 = arith.constant 0 : i32
    return %c0_i32, %c0_i32_0 : i32, i32
  }
  func.func @transform_3(%arg0: i32) -> (i32, i32) {
    %c0_i32 = arith.constant 0 : i32
    %c0_i32_0 = arith.constant 0 : i32
    return %c0_i32, %arg0 : i32, i32
  }
}

module attributes {stable_mosaic.version = 11 : i64} {
  func.func @_fused_matmul_kernel(%arg0: i32, %arg1: memref<8x72xbf16, #tpu.memory_space<vmem>>, %arg2: memref<72x2048xbf16, #tpu.memory_space<vmem>>, %arg3: memref<8x1xf32, #tpu.memory_space<vmem>>, %arg4: memref<8x2048xbf16, #tpu.memory_space<vmem>>) attributes {dimension_semantics = [#tpu.dimension_semantics<parallel>], iteration_bounds = array<i64: 2>, scalar_prefetch = 0 : i64, scratch_operands = 0 : i64, tpu.core_type = #tpu.core_type<tc>, window_params = [{pipeline_mode = #tpu.pipeline_mode<synchronous>, transform_indices = @transform_0, window_bounds = array<i64: 8, 72>}, {transform_indices = @transform_1, window_bounds = array<i64: 72, 2048>}, {pipeline_mode = #tpu.pipeline_mode<synchronous>, transform_indices = @transform_2, window_bounds = array<i64: 8, 1>}, {transform_indices = @transform_3, window_bounds = array<i64: 8, 2048>}]} {
    %c0 = arith.constant 0 : index
    %c0_0 = arith.constant 0 : index
    %0 = vector.load %arg1[%c0, %c0_0] : memref<8x72xbf16, #tpu.memory_space<vmem>>, vector<8x72xbf16>
    %c0_1 = arith.constant 0 : index
    %c0_2 = arith.constant 0 : index
    %1 = vector.load %arg2[%c0_1, %c0_2] : memref<72x2048xbf16, #tpu.memory_space<vmem>>, vector<72x2048xbf16>
    %cst = arith.constant dense<0.000000e+00> : vector<8x2048xf32>
    %2 = tpu.matmul %0, %1, %cst {dimension_numbers = #tpu.dot_dimension_numbers<[1], [0], [0], [1], [0, 0, 1, 1], [], []>} : vector<8x72xbf16>, vector<72x2048xbf16>, vector<8x2048xf32> -> vector<8x2048xf32>
    %c0_3 = arith.constant 0 : index
    %c0_4 = arith.constant 0 : index
    %3 = vector.load %arg3[%c0_3, %c0_4] : memref<8x1xf32, #tpu.memory_space<vmem>>, vector<8x1xf32>
    %4 = vector.broadcast %3 : vector<8x1xf32> to vector<8x2048xf32>
    %5 = arith.addf %2, %4 : vector<8x2048xf32>
    %cst_5 = arith.constant 0.000000e+00 : f32
    %6 = vector.broadcast %cst_5 : f32 to vector<8x2048xf32>
    %7 = arith.cmpf oge, %5, %6 : vector<8x2048xf32>
    %cst_6 = arith.constant 2.000000e-01 : f32
    %8 = vector.broadcast %cst_6 : f32 to vector<8x2048xf32>
    %9 = arith.mulf %8, %5 : vector<8x2048xf32>
    %10 = arith.select %7, %5, %9 : vector<8x2048xi1>, vector<8x2048xf32>
    %11 = arith.truncf %10 : vector<8x2048xf32> to vector<8x2048xbf16>
    %c0_7 = arith.constant 0 : index
    %c0_8 = arith.constant 0 : index
    %12 = vector.load %arg4[%c0_7, %c0_8] : memref<8x2048xbf16, #tpu.memory_space<vmem>>, vector<8x2048xbf16>
    tpu.vector_store %arg4[%c0_7, %c0_8], %11 {strides = array<i32>} : memref<8x2048xbf16, #tpu.memory_space<vmem>>, vector<8x2048xbf16>,
    return
  }
  func.func @transform_0(%arg0: i32) -> (i32, i32) {
    %c0_i32 = arith.constant 0 : i32
    %c0_i32_0 = arith.constant 0 : i32
    %c0_i32_1 = arith.constant 0 : i32
    return %c0_i32, %c0_i32_0 : i32, i32
  }
  func.func @transform_1(%arg0: i32) -> (i32, i32) {
    %c0_i32 = arith.constant 0 : i32
    %c0_i32_0 = arith.constant 0 : i32
    return %c0_i32, %arg0 : i32, i32
  }
  func.func @transform_2(%arg0: i32) -> (i32, i32) {
    %c0_i32 = arith.constant 0 : i32
    %c0_i32_0 = arith.constant 0 : i32
    %c0_i32_1 = arith.constant 0 : i32
    return %c0_i32, %c0_i32_0 : i32, i32
  }
  func.func @transform_3(%arg0: i32) -> (i32, i32) {
    %c0_i32 = arith.constant 0 : i32
    %c0_i32_0 = arith.constant 0 : i32
    return %c0_i32, %arg0 : i32, i32
  }
}

module attributes {stable_mosaic.version = 11 : i64} {
  func.func @_fused_matmul_kernel(%arg0: i32, %arg1: memref<4x36xbf16, #tpu.memory_space<vmem>>, %arg2: memref<36x2048xbf16, #tpu.memory_space<vmem>>, %arg3: memref<4x1xf32, #tpu.memory_space<vmem>>, %arg4: memref<4x2048xf32, #tpu.memory_space<vmem>>) attributes {dimension_semantics = [#tpu.dimension_semantics<parallel>], iteration_bounds = array<i64: 8>, scalar_prefetch = 0 : i64, scratch_operands = 0 : i64, tpu.core_type = #tpu.core_type<tc>, window_params = [{pipeline_mode = #tpu.pipeline_mode<synchronous>, transform_indices = @transform_0, window_bounds = array<i64: 4, 36>}, {transform_indices = @transform_1, window_bounds = array<i64: 36, 2048>}, {pipeline_mode = #tpu.pipeline_mode<synchronous>, transform_indices = @transform_2, window_bounds = array<i64: 4, 1>}, {transform_indices = @transform_3, window_bounds = array<i64: 4, 2048>}]} {
    %c0 = arith.constant 0 : index
    %c0_0 = arith.constant 0 : index
    %0 = vector.load %arg1[%c0, %c0_0] : memref<4x36xbf16, #tpu.memory_space<vmem>>, vector<4x36xbf16>
    %c0_1 = arith.constant 0 : index
    %c0_2 = arith.constant 0 : index
    %1 = vector.load %arg2[%c0_1, %c0_2] : memref<36x2048xbf16, #tpu.memory_space<vmem>>, vector<36x2048xbf16>
    %cst = arith.constant dense<0.000000e+00> : vector<4x2048xf32>
    %2 = tpu.matmul %0, %1, %cst {dimension_numbers = #tpu.dot_dimension_numbers<[1], [0], [0], [1], [0, 0, 1, 1], [], []>} : vector<4x36xbf16>, vector<36x2048xbf16>, vector<4x2048xf32> -> vector<4x2048xf32>
    %c0_3 = arith.constant 0 : index
    %c0_4 = arith.constant 0 : index
    %3 = vector.load %arg3[%c0_3, %c0_4] : memref<4x1xf32, #tpu.memory_space<vmem>>, vector<4x1xf32>
    %4 = vector.broadcast %3 : vector<4x1xf32> to vector<4x2048xf32>
    %5 = arith.addf %2, %4 : vector<4x2048xf32>
    %6 = math.tanh %5 : vector<4x2048xf32>
    %c0_5 = arith.constant 0 : index
    %c0_6 = arith.constant 0 : index
    %7 = vector.load %arg4[%c0_5, %c0_6] : memref<4x2048xf32, #tpu.memory_space<vmem>>, vector<4x2048xf32>
    tpu.vector_store %arg4[%c0_5, %c0_6], %6 {strides = array<i32>} : memref<4x2048xf32, #tpu.memory_space<vmem>>, vector<4x2048xf32>,
    return
  }
  func.func @transform_0(%arg0: i32) -> (i32, i32) {
    %c0_i32 = arith.constant 0 : i32
    %c0_i32_0 = arith.constant 0 : i32
    %c0_i32_1 = arith.constant 0 : i32
    return %c0_i32, %c0_i32_0 : i32, i32
  }
  func.func @transform_1(%arg0: i32) -> (i32, i32) {
    %c0_i32 = arith.constant 0 : i32
    %c0_i32_0 = arith.constant 0 : i32
    return %c0_i32, %arg0 : i32, i32
  }
  func.func @transform_2(%arg0: i32) -> (i32, i32) {
    %c0_i32 = arith.constant 0 : i32
    %c0_i32_0 = arith.constant 0 : i32
    %c0_i32_1 = arith.constant 0 : i32
    return %c0_i32, %c0_i32_0 : i32, i32
  }
  func.func @transform_3(%arg0: i32) -> (i32, i32) {
    %c0_i32 = arith.constant 0 : i32
    %c0_i32_0 = arith.constant 0 : i32
    return %c0_i32, %arg0 : i32, i32
  }
}

</mosaic_0001>

<bundles_post_ra>
// kernel: generator_forward.8
= control target key start
LH: loop header
LB: loop body
LE: loop exit
PB: predicated region body
PF: predicated region fallthrough
CT: control target
= control target key end

     0   :  { %s1013_s12 = smov 0   ;;  %s1015_s13 = smov 0   ;;  %s1161_s0 = inlined_call_operand.vmem [shape: bf16[2,16], index: 0, kind: input, shape index: {}]   ;;  %s1162_s1 = inlined_call_operand.vmem [shape: bf16[16,16384], index: 1, kind: input, shape index: {}]   ;;  %s1163_s2 = inlined_call_operand.vmem [shape: f32[2,1], index: 2, kind: input, shape index: {}]   ;;  %s1164_s3 = inlined_call_operand.vmem [shape: bf16[2,16384], index: 3, kind: output, shape index: {}]  }
   0x1   :  { %s1017_s14 = smov 0  }
   0x2 LB: > { %s895_s15 = sadd.s32 4294967295, %s989_s14   ;;  %s1030_s16 = sadd.s32 1, %s989_s14   ;;  %s989_s14 = sphi %s1017_s14, %s1167_s14   ;;  %s985_s13 = sphi %s1015_s13, %s1166_s13   ;;  %s981_s12 = sphi %s1013_s12, %s1165_s12  }
   0x3   : > { %s38_s17 = ssub.s32 %s989_s14, %s1030_s16  ;;  %s41_s18 = sadd.s32 1, %s985_s13 }
   0x4   : > { %p39_p0 = scmp.eq.s32.totalorder %s38_s17, 0  ;;  %p48_p1 = scmp.ne.s32.totalorder %s985_s13, %s981_s12 }
   0x5   : > { %p49_p2 = scmp.eq.s32.totalorder %s989_s14, 0  ;;  %p898_p4 = scmp.ge.s32.totalorder %s989_s14, 8 }
   0x6   : > { %s1039_s19 = scalar_select %p39_p0, %s985_s13, %s41_s18  }
   0x7   : > { %p50_p3 = por %p49_p2, %p48_p1  ;;  %127 = sbr.rel (%p898_p4) target bundleno = 26 (0x1a), region = 24 }
   0xe   : > { %130 = sbr.rel (!%p50_p3) target bundleno = 26 (0x1a), region = 28  ;;  %s132_s20 = sand.u32 (%p50_p3), 1, %s985_s13  }
   0xf   : > { %s939_s21 = sshll.u32 (%p50_p3), %s989_s14, 6  ;;  %s899_s22 = sshll.u32 (%p50_p3), %s132_s20, 7 }
  0x10   : > { %s1047_s25 = scalar_lea.vmem (%p50_p3), %s1162_s1, %s939_s21  ;;  %s134_s26 = scalar_lea.vmem (%p50_p3), [#allocation2], %s899_s22 }
  0x11   : > { %v150_v0 = vld [vmem:[%s1047_s25] sm:$0xff] (%p50_p3)  ;;  %v152_v1 = vld [vmem:[%s1047_s25 + $0x8] sm:$0xff] (%p50_p3)  ;;  %v154_v2 = vld [vmem:[%s1047_s25 + $0x10] sm:$0xff] (%p50_p3) }
  0x12   : > { %151 = vst [vmem:[%s134_s26] sm:$0xff] (%p50_p3), %v150_v0  ;;  %153 = vst [vmem:[%s134_s26 + $0x8] sm:$0xff] (%p50_p3), %v152_v1  ;;  %v156_v3 = vld [vmem:[%s1047_s25 + $0x18] sm:$0xff] (%p50_p3)  ;;  %v158_v4 = vld [vmem:[%s1047_s25 + $0x20] sm:$0xff] (%p50_p3) }
  0x13   : > { %155 = vst [vmem:[%s134_s26 + $0x10] sm:$0xff] (%p50_p3), %v154_v2  ;;  %v160_v5 = vld [vmem:[%s1047_s25 + $0x28] sm:$0xff] (%p50_p3)  ;;  %157 = vst [vmem:[%s134_s26 + $0x18] sm:$0xff] (%p50_p3), %v156_v3  ;;  %v162_v6 = vld [vmem:[%s1047_s25 + $0x30] sm:$0xff] (%p50_p3) }
  0x14   : > { %159 = vst [vmem:[%s134_s26 + $0x20] sm:$0xff] (%p50_p3), %v158_v4  ;;  %161 = vst [vmem:[%s134_s26 + $0x28] sm:$0xff] (%p50_p3), %v160_v5  ;;  %v164_v7 = vld [vmem:[%s1047_s25 + $0x38] sm:$0xff] (%p50_p3)  ;;  %v166_v8 = vld [vmem:[%s1047_s25 + $0x200] sm:$0xff] (%p50_p3) }
  0x15   : > { %163 = vst [vmem:[%s134_s26 + $0x30] sm:$0xff] %v162_v6  ;;  %165 = vst [vmem:[%s134_s26 + $0x38] sm:$0xff] %v164_v7  ;;  %v168_v9 = vld [vmem:[%s1047_s25 + $0x208] sm:$0xff]  ;;  %v170_v10 = vld [vmem:[%s1047_s25 + $0x210] sm:$0xff] }
  0x16   : > { %167 = vst [vmem:[%s134_s26 + $0x40] sm:$0xff] %v166_v8  ;;  %v172_v11 = vld [vmem:[%s1047_s25 + $0x218] sm:$0xff]  ;;  %169 = vst [vmem:[%s134_s26 + $0x48] sm:$0xff] %v168_v9  ;;  %v174_v12 = vld [vmem:[%s1047_s25 + $0x220] sm:$0xff] }
  0x17   : > { %171 = vst [vmem:[%s134_s26 + $0x50] sm:$0xff] %v170_v10  ;;  %173 = vst [vmem:[%s134_s26 + $0x58] sm:$0xff] %v172_v11  ;;  %v176_v13 = vld [vmem:[%s1047_s25 + $0x228] sm:$0xff]  ;;  %v178_v14 = vld [vmem:[%s1047_s25 + $0x230] sm:$0xff] }
  0x18   : > { %175 = vst [vmem:[%s134_s26 + $0x60] sm:$0xff] %v174_v12  ;;  %177 = vst [vmem:[%s134_s26 + $0x68] sm:$0xff] %v176_v13  ;;  %v180_v15 = vld [vmem:[%s1047_s25 + $0x238] sm:$0xff] }
  0x19   : > { %179 = vst [vmem:[%s134_s26 + $0x70] sm:$0xff] %v178_v14  ;;  %181 = vst [vmem:[%s134_s26 + $0x78] sm:$0xff] %v180_v15 }
  0x1a PF: > { %p902_p5 = scmp.ge.s32.totalorder %s989_s14, 1  ;;  %p186_p6 = scmp.lt.s32.totalorder %s989_s14, 9 }
  0x1c   : > { %p187_p7 = pnand %p902_p5, %p186_p6 }
  0x1d   : > { %s193_s27 = sand.u32 (!%p187_p7), 1, %s981_s12   ;;  %v991_v16 = vmov (!%p187_p7), 0   ;;  %v239_v17 = vld [vmem:[%s1163_s2] sm:$0x3] (!%p187_p7)  ;;  %vm325_vm0 = vcmask (!%p187_p7), 130048   ;;  %v744_v53 = vlaneseq (!%p187_p7)  ;;  %s904_s7 = sshll.u32 (!%p187_p7), %s895_s15, 4 }
  0x1e   : > { %190 = sbr.rel (%p187_p7) target bundleno = 294 (0x126), region = 51  ;;  %s903_s28 = sshll.u32 (!%p187_p7), %s193_s27, 7  ;;  %361 = vmatprep.mubr.bf16.mxu0 (!%p187_p7), %v991_v16  ;;  %402 = vmatprep.mubr.bf16.mxu1 (!%p187_p7), %v991_v16  ;;  %v222_v34 = vld [vmem:[%s1161_s0] sm:$0x1] (!%p187_p7)  ;;  %v992_v51 = vmov (!%p187_p7), 1966171168  }
  0x1f   : > { %966 = vset.pattern.permute.xlu0 (!%p187_p7), %v991_v16  ;;  %s1074_s4 = scalar_lea.vmem (!%p187_p7), [#allocation2], %s903_s28  ;;  %v742_v52 = vunpack.c.l.s4 (!%p187_p7), %v992_v51  ;;  %v745_v60 = vshrl.u32 (!%p187_p7), %v744_v53, 7  ;;  %p217_p8 = scmp.lt.s32.totalorder (!%p187_p7), %s904_s7, 127 }
  0x20   : > { %v223_v18 = vld [vmem:[%s1074_s4] sm:$0xff] (!%p187_p7)  ;;  %v224_v20 = vld [vmem:[%s1074_s4 + $0x8] sm:$0xff] (!%p187_p7)  ;;  %242 = vperm.xlu0 (!%p187_p7), %966, %v239_v17   ;;  %v225_v24 = vld [vmem:[%s1074_s4 + $0x10] sm:$0xff] (!%p187_p7) }
  0x21   : > { %v231_v19 = vld [vmem:[%s1074_s4 + $0x40] sm:$0xff] (!%p187_p7)  ;;  %v232_v22 = vld [vmem:[%s1074_s4 + $0x48] sm:$0xff] (!%p187_p7)  ;;  %v233_v25 = vld [vmem:[%s1074_s4 + $0x50] sm:$0xff] (!%p187_p7)  ;;  %v743_v59 = vunpack.c.0.s8 (!%p187_p7), %v742_v52 }
  0x22   : > { %v906_v21 = vcombine.high (!%p187_p7), %v223_v18, %v231_v19  ;;  %v905_v23 = vcombine.low (!%p187_p7), %v223_v18, %v231_v19  ;;  %v908_v26 = vcombine.high (!%p187_p7), %v224_v20, %v232_v22  ;;  %v907_v27 = vcombine.low (!%p187_p7), %v224_v20, %v232_v22  ;;  %v226_v29 = vld [vmem:[%s1074_s4 + $0x18] sm:$0xff] (!%p187_p7)  ;;  %v227_v32 = vld [vmem:[%s1074_s4 + $0x20] sm:$0xff] (!%p187_p7)  ;;  %v228_v36 = vld [vmem:[%s1074_s4 + $0x28] sm:$0xff] (!%p187_p7) }
  0x23   : > { %v910_v28 = vcombine.high (!%p187_p7), %v225_v24, %v233_v25  ;;  %v234_v30 = vld [vmem:[%s1074_s4 + $0x58] sm:$0xff] (!%p187_p7)  ;;  %v235_v33 = vld [vmem:[%s1074_s4 + $0x60] sm:$0xff] (!%p187_p7)  ;;  %v909_v35 = vcombine.low (!%p187_p7), %v225_v24, %v233_v25  ;;  %v236_v37 = vld [vmem:[%s1074_s4 + $0x68] sm:$0xff] (!%p187_p7)  ;;  %v1115_v8 = vsub.s32 (!%p187_p7), %v743_v59, %v745_v60 }
  0x24   : > { %329 = vmatprep.subr.bf16.mxu0 (!%p187_p7), %v906_v21  ;;  %v912_v31 = vcombine.high (!%p187_p7), %v226_v29, %v234_v30  ;;  %370 = vmatprep.subr.bf16.mxu1 (!%p187_p7), %v908_v26  ;;  %v911_v38 = vcombine.low (!%p187_p7), %v226_v29, %v234_v30  ;;  %v914_v39 = vcombine.high (!%p187_p7), %v227_v32, %v235_v33  ;;  %v229_v41 = vld [vmem:[%s1074_s4 + $0x30] sm:$0xff] (!%p187_p7)  ;;  %v230_v44 = vld [vmem:[%s1074_s4 + $0x38] sm:$0xff] (!%p187_p7) }
  0x25   : > { %330 = vmatpush1.bf16.msra.mxu0 %v905_v23  ;;  %371 = vmatpush1.bf16.msra.mxu1 %v907_v27  ;;  %v916_v40 = vcombine.high %v228_v36, %v236_v37  ;;  %v237_v42 = vld [vmem:[%s1074_s4 + $0x70] sm:$0xff]  ;;  %v913_v43 = vcombine.low %v227_v32, %v235_v33  ;;  %v238_v45 = vld [vmem:[%s1074_s4 + $0x78] sm:$0xff]  ;;  %v915_v46 = vcombine.low %v228_v36, %v236_v37  ;;  %s1169_s7 = smov (!%p217_p8, %s904_s7), 127 }
  0x26   : > { %411 = vmatprep.subr.bf16.mxu0 %v910_v28  ;;  %452 = vmatprep.subr.bf16.mxu1 %v912_v31  ;;  %v918_v47 = vcombine.high %v229_v41, %v237_v42  ;;  %v920_v48 = vcombine.high %v230_v44, %v238_v45  ;;  %v917_v49 = vcombine.low %v229_v41, %v237_v42  ;;  %s1137_s10 = scalar_lea.vmem %s1164_s3, %s1169_s7 }
  0x27   : > { %v919_v50 = vcombine.low %v230_v44, %v238_v45 }
  0x28   : > { %921 = vmatmul.mubr.msk.bf16.vlgmr.msra.gmra.mrb[0].mxu0 %vm325_vm0, %v222_v34  ;;  %922 = vmatmul.mubr.msk.bf16.vlgmr.msra.gmra.mrb[0].mxu1 %vm325_vm0, %v222_v34 }
  0x29   : > { %412 = vmatpush1.bf16.msra.mxu0 %v909_v35  ;;  %453 = vmatpush1.bf16.msra.mxu1 %v911_v38 }
  0x2a   : > { %443 = vmatprep.mubr.bf16.mxu0 %v991_v16  ;;  %484 = vmatprep.mubr.bf16.mxu1 %v991_v16 }
  0x2b   : > { %493 = vmatprep.subr.bf16.mxu0 %v914_v39  ;;  %534 = vmatprep.subr.bf16.mxu1 %v916_v40 }
  0x30   : > { %923 = vmatmul.mubr.msk.bf16.vlgmr.msra.gmra.mrb[4].mxu0 %vm325_vm0, %v222_v34  ;;  %924 = vmatmul.mubr.msk.bf16.vlgmr.msra.gmra.mrb[4].mxu1 %vm325_vm0, %v222_v34 }
  0x31   : > { %494 = vmatpush1.bf16.msra.mxu0 %v913_v43  ;;  %535 = vmatpush1.bf16.msra.mxu1 %v915_v46 }
  0x32   : > { %525 = vmatprep.mubr.bf16.mxu0 %v991_v16  ;;  %566 = vmatprep.mubr.bf16.mxu1 %v991_v16 }
  0x33   : > { %575 = vmatprep.subr.bf16.mxu0 %v918_v47  ;;  %616 = vmatprep.subr.bf16.mxu1 %v920_v48 }
  0x38   : > { %925 = vmatmul.mubr.msk.bf16.vlgmr.msra.gmra.mrb[8].mxu0 %vm325_vm0, %v222_v34  ;;  %926 = vmatmul.mubr.msk.bf16.vlgmr.msra.gmra.mrb[8].mxu1 %vm325_vm0, %v222_v34 }
  0x39   : > { %576 = vmatpush1.bf16.msra.mxu0 %v917_v49  ;;  %617 = vmatpush1.bf16.msra.mxu1 %v919_v50 }
  0x3a   : > { %607 = vmatprep.mubr.bf16.mxu0 %v991_v16  ;;  %648 = vmatprep.mubr.bf16.mxu1 %v991_v16 }
  0x40   : > { %927 = vmatmul.mubr.msk.bf16.vlgmr.msra.gmra.mrb[12].mxu0 %vm325_vm0, %v222_v34  ;;  %928 = vmatmul.mubr.msk.bf16.vlgmr.msra.gmra.mrb[12].mxu1 %vm325_vm0, %v222_v34 }
  0x9f   : > { %v1109_v54 = vpop.permute.xlu0 %242 }
  0xfb   : > { %v363_v55 = vpop.f32.mrb[0].mxu0  ;;  %v404_v57 = vpop.f32.mrb[0].mxu1 }
  0xfc   : > { %v364_v56 = vadd.f32 %v363_v55, %v1109_v54  ;;  %v365_v58 = vpop.f32.mrb[1].mxu0  ;;  %v405_v61 = vadd.f32 %v404_v57, %v1109_v54  ;;  %v406_v63 = vpop.f32.mrb[1].mxu1 }
  0xfd   : > { %v366_v62 = vadd.f32 %v365_v58, %v1109_v54  ;;  %v367_v0 = vpop.f32.mrb[2].mxu0  ;;  %v407_v2 = vadd.f32 %v406_v63, %v1109_v54  ;;  %v408_v3 = vpop.f32.mrb[2].mxu1 }
  0xfe   : > { %vm657_vm1 = vcmp.ge.f32.partialorder %v364_v56, 0.0  ;;  %v673_v1 = vmul.f32 0.2, %v364_v56  ;;  %v368_v4 = vpop.f32.mrb[3].mxu0  ;;  %vm659_vm2 = vcmp.ge.f32.partialorder %v405_v61, 0.0  ;;  %v409_v10 = vpop.f32.mrb[3].mxu1 }
  0xff   : > { %v675_v5 = vmul.f32 0.2, %v405_v61  ;;  %vm658_vm3 = vcmp.ge.f32.partialorder %v366_v62, 0.0  ;;  %v674_v6 = vmul.f32 0.2, %v366_v62  ;;  %vm660_vm4 = vcmp.ge.f32.partialorder %v407_v2, 0.0 }
 0x100   : > { %v689_v7 = vsel %vm657_vm1, %v364_v56, %v673_v1  ;;  %v676_v9 = vmul.f32 0.2, %v407_v2 }
 0x101   : > { %v691_v11 = vsel %vm659_vm2, %v405_v61, %v675_v5  ;;  %v690_v12 = vsel %vm658_vm3, %v366_v62, %v674_v6 }
 0x102   : > { %v929_v13 = vpack.c.bf16 %v690_v12, %v689_v7  ;;  %v692_v14 = vsel %vm660_vm4, %v407_v2, %v676_v9 }
 0x103   : > { %v930_v15 = vpack.c.bf16 %v692_v14, %v691_v11  ;;  %v445_v16 = vpop.f32.mrb[4].mxu0  ;;  %v486_v19 = vpop.f32.mrb[4].mxu1 }
 0x104   : > { %v747_v17 = vrot.slane %v929_v13, %v1115_v8  ;;  %v446_v18 = vadd.f32 %v445_v16, %v1109_v54  ;;  %v447_v20 = vpop.f32.mrb[5].mxu0  ;;  %v487_v22 = vadd.f32 %v486_v19, %v1109_v54  ;;  %v488_v24 = vpop.f32.mrb[5].mxu1 }
 0x105   : > { %v754_v21 = vrot.slane %v930_v15, %v1115_v8  ;;  %v448_v23 = vadd.f32 %v447_v20, %v1109_v54  ;;  %v449_v25 = vpop.f32.mrb[6].mxu0  ;;  %v489_v27 = vadd.f32 %v488_v24, %v1109_v54  ;;  %v490_v28 = vpop.f32.mrb[6].mxu1 }
 0x106   : > { %vm661_vm5 = vcmp.ge.f32.partialorder %v446_v18, 0.0  ;;  %v677_v26 = vmul.f32 0.2, %v446_v18  ;;  %v450_v29 = vpop.f32.mrb[7].mxu0  ;;  %vm663_vm6 = vcmp.ge.f32.partialorder %v487_v22, 0.0  ;;  %v491_v32 = vpop.f32.mrb[7].mxu1 }
 0x107   : > { %v769_v30 = vcombine.low %v747_v17, %v754_v21  ;;  %v679_v31 = vmul.f32 0.2, %v487_v22  ;;  %vm662_vm7 = vcmp.ge.f32.partialorder %v448_v23, 0.0  ;;  %v678_v34 = vmul.f32 0.2, %v448_v23 }
 0x108   : > { %v693_v33 = vsel %vm661_vm5, %v446_v18, %v677_v26  ;;  %vm664_vm8 = vcmp.ge.f32.partialorder %v489_v27, 0.0  ;;  %v680_v35 = vmul.f32 0.2, %v489_v27 }
 0x109   : > { %v695_v36 = vsel %vm663_vm6, %v487_v22, %v679_v31  ;;  %v694_v37 = vsel %vm662_vm7, %v448_v23, %v678_v34  ;;  %v777_v62 = vrot.slane %v769_v30, %v1115_v8 }
 0x10a   : > { %v696_v38 = vsel %vm664_vm8, %v489_v27, %v680_v35  ;;  %v931_v39 = vpack.c.bf16 %v694_v37, %v693_v33 }
 0x10b   : > { %v932_v40 = vpack.c.bf16 %v696_v38, %v695_v36  ;;  %v527_v41 = vpop.f32.mrb[8].mxu0  ;;  %v568_v43 = vpop.f32.mrb[8].mxu1 }
 0x10c   : > { %v528_v42 = vadd.f32 %v527_v41, %v1109_v54  ;;  %v529_v44 = vpop.f32.mrb[9].mxu0  ;;  %v761_v45 = vrot.slane %v931_v39, %v1115_v8  ;;  %v569_v47 = vadd.f32 %v568_v43, %v1109_v54  ;;  %v570_v49 = vpop.f32.mrb[9].mxu1 }
 0x10d   : > { %v768_v46 = vrot.slane %v932_v40, %v1115_v8  ;;  %v530_v48 = vadd.f32 %v529_v44, %v1109_v54  ;;  %v531_v50 = vpop.f32.mrb[10].mxu0  ;;  %v571_v52 = vadd.f32 %v570_v49, %v1109_v54  ;;  %v572_v53 = vpop.f32.mrb[10].mxu1 }
 0x10e   : > { %vm665_vm9 = vcmp.ge.f32.partialorder %v528_v42, 0.0  ;;  %v681_v51 = vmul.f32 0.2, %v528_v42  ;;  %v532_v55 = vpop.f32.mrb[11].mxu0  ;;  %vm667_vm10 = vcmp.ge.f32.partialorder %v569_v47, 0.0  ;;  %v573_v58 = vpop.f32.mrb[11].mxu1 }
 0x10f   : > { %v770_v56 = vcombine.low %v761_v45, %v768_v46  ;;  %v683_v57 = vmul.f32 0.2, %v569_v47  ;;  %vm666_vm11 = vcmp.ge.f32.partialorder %v530_v48, 0.0  ;;  %v682_v60 = vmul.f32 0.2, %v530_v48 }
 0x110   : > { %v697_v59 = vsel %vm665_vm9, %v528_v42, %v681_v51  ;;  %vm668_vm12 = vcmp.ge.f32.partialorder %v571_v52, 0.0  ;;  %v684_v61 = vmul.f32 0.2, %v571_v52 }
 0x111   : > { %v784_v63 = vrot.slane %v770_v56, %v1115_v8  ;;  %v699_v0 = vsel %vm667_vm10, %v569_v47, %v683_v57  ;;  %v698_v1 = vsel %vm666_vm11, %v530_v48, %v682_v60 }
 0x112   : > { %v700_v2 = vsel %vm668_vm12, %v571_v52, %v684_v61  ;;  %v933_v4 = vpack.c.bf16 %v698_v1, %v697_v59 }
 0x113   : > { %v785_v3 = vcombine.low %v777_v62, %v784_v63  ;;  %v934_v5 = vpack.c.bf16 %v700_v2, %v699_v0  ;;  %v609_v6 = vpop.f32.mrb[12].mxu0  ;;  %v650_v9 = vpop.f32.mrb[12].mxu1 }
 0x114   : > { %v610_v7 = vadd.f32 %v609_v6, %v1109_v54  ;;  %v611_v10 = vpop.f32.mrb[13].mxu0  ;;  %v796_v11 = vrot.slane %v933_v4, %v1115_v8  ;;  %v651_v13 = vadd.f32 %v650_v9, %v1109_v54  ;;  %v652_v15 = vpop.f32.mrb[13].mxu1 }
 0x115   : > { %837 = vst [vmem:[%s1137_s10] sm:$0xff] %v785_v3  ;;  %v803_v12 = vrot.slane %v934_v5, %v1115_v8  ;;  %v612_v14 = vadd.f32 %v611_v10, %v1109_v54  ;;  %v613_v16 = vpop.f32.mrb[14].mxu0  ;;  %v653_v18 = vadd.f32 %v652_v15, %v1109_v54  ;;  %v654_v19 = vpop.f32.mrb[14].mxu1 }
 0x116   : > { %vm669_vm13 = vcmp.ge.f32.partialorder %v610_v7, 0.0  ;;  %v685_v17 = vmul.f32 0.2, %v610_v7  ;;  %v614_v20 = vpop.f32.mrb[15].mxu0  ;;  %vm671_vm14 = vcmp.ge.f32.partialorder %v651_v13, 0.0  ;;  %v655_v23 = vpop.f32.mrb[15].mxu1 }
 0x117   : > { %v818_v21 = vcombine.low %v796_v11, %v803_v12  ;;  %v687_v22 = vmul.f32 0.2, %v651_v13  ;;  %vm670_vm15 = vcmp.ge.f32.partialorder %v612_v14, 0.0  ;;  %v686_v25 = vmul.f32 0.2, %v612_v14 }
 0x118   : > { %v701_v24 = vsel %vm669_vm13, %v610_v7, %v685_v17  ;;  %vm672_vm0 = vcmp.ge.f32.partialorder %v653_v18, 0.0  ;;  %v688_v26 = vmul.f32 0.2, %v653_v18 }
 0x119   : > { %v703_v27 = vsel %vm671_vm14, %v651_v13, %v687_v22  ;;  %v702_v28 = vsel %vm670_vm15, %v612_v14, %v686_v25  ;;  %v826_v34 = vrot.slane %v818_v21, %v1115_v8 }
 0x11a   : > { %v704_v29 = vsel %vm672_vm0, %v653_v18, %v688_v26  ;;  %v935_v30 = vpack.c.bf16 %v702_v28, %v701_v24 }
 0x11b   : > { %v936_v31 = vpack.c.bf16 %v704_v29, %v703_v27 }
 0x11c   : > { %v810_v32 = vrot.slane %v935_v30, %v1115_v8 }
 0x11d   : > { %v817_v54 = vrot.slane %v936_v31, %v1115_v8 }
 0x11f   : > { %v819_v33 = vcombine.low %v810_v32, %v817_v54 }
 0x121   : > { %v833_v35 = vrot.slane %v819_v33, %v1115_v8 }
 0x123   : > { %v834_v36 = vcombine.low %v826_v34, %v833_v35 }
 0x125   : > { %838 = vst [vmem:[%s1137_s10 + $0x8] sm:$0xff] %v834_v36 }
 0x126 PF: > { %p10_p9 = scmp.ge.s32.totalorder %s1030_s16, 10   ;;  %s1165_s12 = smov %s985_s13 }
 0x127   : > { %s1166_s13 = smov %s1039_s19  ;;  %s1167_s14 = smov %s1030_s16 }
 0x128   :  { %12 = sbr.rel (!%p10_p9) target bundleno = 2 (0x2), region = 90 }

// kernel: generator_forward.9
= control target key start
LH: loop header
LB: loop body
LE: loop exit
PB: predicated region body
PF: predicated region fallthrough
CT: control target
= control target key end

     0   :  { %s1140_s12 = smov 0   ;;  %s1142_s13 = smov 0   ;;  %s1364_s0 = inlined_call_operand.vmem [shape: bf16[4,32], index: 0, kind: input, shape index: {}]   ;;  %s1365_s1 = inlined_call_operand.vmem [shape: bf16[32,4096], index: 1, kind: input, shape index: {}]   ;;  %s1366_s2 = inlined_call_operand.vmem [shape: f32[4,1], index: 2, kind: input, shape index: {}]   ;;  %s1367_s3 = inlined_call_operand.vmem [shape: bf16[4,4096], index: 3, kind: output, shape index: {}]  }
   0x1   :  { %s1144_s14 = smov 0  }
   0x2 LB: > { %s1005_s15 = sadd.s32 4294967295, %s1116_s14   ;;  %s1157_s16 = sadd.s32 1, %s1116_s14   ;;  %s1116_s14 = sphi %s1144_s14, %s1370_s14   ;;  %s1112_s13 = sphi %s1142_s13, %s1369_s13   ;;  %s1108_s12 = sphi %s1140_s12, %s1368_s12  }
   0x3   : > { %s38_s17 = ssub.s32 %s1116_s14, %s1157_s16  ;;  %s41_s18 = sadd.s32 1, %s1112_s13 }
   0x4   : > { %p39_p0 = scmp.eq.s32.totalorder %s38_s17, 0  ;;  %p48_p1 = scmp.ne.s32.totalorder %s1112_s13, %s1108_s12 }
   0x5   : > { %p49_p2 = scmp.eq.s32.totalorder %s1116_s14, 0  ;;  %p1008_p4 = scmp.ge.s32.totalorder %s1116_s14, 2 }
   0x6   : > { %s1166_s19 = scalar_select %p39_p0, %s1112_s13, %s41_s18  }
   0x7   : > { %p50_p3 = por %p49_p2, %p48_p1  ;;  %127 = sbr.rel (%p1008_p4) target bundleno = 34 (0x22), region = 24 }
   0xe   : > { %130 = sbr.rel (!%p50_p3) target bundleno = 34 (0x22), region = 28  ;;  %s132_s20 = sand.u32 (%p50_p3), 1, %s1112_s13  }
   0xf   : > { %s1066_s21 = sshll.u32 (%p50_p3), %s1116_s14, 6  ;;  %s1009_s22 = sshll.u32 (%p50_p3), %s132_s20, 8 }
  0x10   : > { %s1174_s25 = scalar_lea.vmem (%p50_p3), %s1365_s1, %s1066_s21  ;;  %s1179_s26 = scalar_lea.vmem (%p50_p3), [#allocation2], %s1009_s22 }
  0x11   : > { %v150_v0 = vld [vmem:[%s1174_s25] sm:$0xff] (%p50_p3)  ;;  %v152_v1 = vld [vmem:[%s1174_s25 + $0x8] sm:$0xff] (%p50_p3)  ;;  %v154_v2 = vld [vmem:[%s1174_s25 + $0x10] sm:$0xff] (%p50_p3) }
  0x12   : > { %151 = vst [vmem:[%s1179_s26] sm:$0xff] (%p50_p3), %v150_v0  ;;  %153 = vst [vmem:[%s1179_s26 + $0x8] sm:$0xff] (%p50_p3), %v152_v1  ;;  %v156_v3 = vld [vmem:[%s1174_s25 + $0x18] sm:$0xff] (%p50_p3)  ;;  %v158_v4 = vld [vmem:[%s1174_s25 + $0x20] sm:$0xff] (%p50_p3) }
  0x13   : > { %155 = vst [vmem:[%s1179_s26 + $0x10] sm:$0xff] (%p50_p3), %v154_v2  ;;  %v160_v5 = vld [vmem:[%s1174_s25 + $0x28] sm:$0xff] (%p50_p3)  ;;  %157 = vst [vmem:[%s1179_s26 + $0x18] sm:$0xff] (%p50_p3), %v156_v3  ;;  %v162_v6 = vld [vmem:[%s1174_s25 + $0x30] sm:$0xff] (%p50_p3) }
  0x14   : > { %159 = vst [vmem:[%s1179_s26 + $0x20] sm:$0xff] (%p50_p3), %v158_v4  ;;  %161 = vst [vmem:[%s1179_s26 + $0x28] sm:$0xff] (%p50_p3), %v160_v5  ;;  %v164_v7 = vld [vmem:[%s1174_s25 + $0x38] sm:$0xff] (%p50_p3)  ;;  %v166_v8 = vld [vmem:[%s1174_s25 + $0x80] sm:$0xff] (%p50_p3) }
  0x15   : > { %163 = vst [vmem:[%s1179_s26 + $0x30] sm:$0xff] %v162_v6  ;;  %165 = vst [vmem:[%s1179_s26 + $0x38] sm:$0xff] %v164_v7  ;;  %v168_v9 = vld [vmem:[%s1174_s25 + $0x88] sm:$0xff]  ;;  %v170_v10 = vld [vmem:[%s1174_s25 + $0x90] sm:$0xff] }
  0x16   : > { %167 = vst [vmem:[%s1179_s26 + $0x40] sm:$0xff] %v166_v8  ;;  %v172_v11 = vld [vmem:[%s1174_s25 + $0x98] sm:$0xff]  ;;  %169 = vst [vmem:[%s1179_s26 + $0x48] sm:$0xff] %v168_v9  ;;  %v174_v12 = vld [vmem:[%s1174_s25 + $0xa0] sm:$0xff] }
  0x17   : > { %171 = vst [vmem:[%s1179_s26 + $0x50] sm:$0xff] %v170_v10  ;;  %173 = vst [vmem:[%s1179_s26 + $0x58] sm:$0xff] %v172_v11  ;;  %v176_v13 = vld [vmem:[%s1174_s25 + $0xa8] sm:$0xff]  ;;  %v178_v14 = vld [vmem:[%s1174_s25 + $0xb0] sm:$0xff] }
  0x18   : > { %175 = vst [vmem:[%s1179_s26 + $0x60] sm:$0xff] %v174_v12  ;;  %177 = vst [vmem:[%s1179_s26 + $0x68] sm:$0xff] %v176_v13  ;;  %v180_v15 = vld [vmem:[%s1174_s25 + $0xb8] sm:$0xff]  ;;  %v182_v16 = vld [vmem:[%s1174_s25 + $0x100] sm:$0xff] }
  0x19   : > { %179 = vst [vmem:[%s1179_s26 + $0x70] sm:$0xff] %v178_v14  ;;  %v184_v17 = vld [vmem:[%s1174_s25 + $0x108] sm:$0xff]  ;;  %181 = vst [vmem:[%s1179_s26 + $0x78] sm:$0xff] %v180_v15  ;;  %v186_v18 = vld [vmem:[%s1174_s25 + $0x110] sm:$0xff] }
  0x1a   : > { %183 = vst [vmem:[%s1179_s26 + $0x80] sm:$0xff] %v182_v16  ;;  %185 = vst [vmem:[%s1179_s26 + $0x88] sm:$0xff] %v184_v17  ;;  %v188_v19 = vld [vmem:[%s1174_s25 + $0x118] sm:$0xff]  ;;  %v190_v20 = vld [vmem:[%s1174_s25 + $0x120] sm:$0xff] }
  0x1b   : > { %187 = vst [vmem:[%s1179_s26 + $0x90] sm:$0xff] %v186_v18  ;;  %189 = vst [vmem:[%s1179_s26 + $0x98] sm:$0xff] %v188_v19  ;;  %v192_v21 = vld [vmem:[%s1174_s25 + $0x128] sm:$0xff]  ;;  %v194_v22 = vld [vmem:[%s1174_s25 + $0x130] sm:$0xff] }
  0x1c   : > { %191 = vst [vmem:[%s1179_s26 + $0xa0] sm:$0xff] %v190_v20  ;;  %v196_v23 = vld [vmem:[%s1174_s25 + $0x138] sm:$0xff]  ;;  %193 = vst [vmem:[%s1179_s26 + $0xa8] sm:$0xff] %v192_v21  ;;  %v198_v24 = vld [vmem:[%s1174_s25 + $0x180] sm:$0xff] }
  0x1d   : > { %195 = vst [vmem:[%s1179_s26 + $0xb0] sm:$0xff] %v194_v22  ;;  %197 = vst [vmem:[%s1179_s26 + $0xb8] sm:$0xff] %v196_v23  ;;  %v200_v25 = vld [vmem:[%s1174_s25 + $0x188] sm:$0xff]  ;;  %v202_v26 = vld [vmem:[%s1174_s25 + $0x190] sm:$0xff] }
  0x1e   : > { %199 = vst [vmem:[%s1179_s26 + $0xc0] sm:$0xff] %v198_v24  ;;  %201 = vst [vmem:[%s1179_s26 + $0xc8] sm:$0xff] %v200_v25  ;;  %v204_v27 = vld [vmem:[%s1174_s25 + $0x198] sm:$0xff]  ;;  %v206_v28 = vld [vmem:[%s1174_s25 + $0x1a0] sm:$0xff] }
  0x1f   : > { %203 = vst [vmem:[%s1179_s26 + $0xd0] sm:$0xff] %v202_v26  ;;  %v208_v29 = vld [vmem:[%s1174_s25 + $0x1a8] sm:$0xff]  ;;  %205 = vst [vmem:[%s1179_s26 + $0xd8] sm:$0xff] %v204_v27  ;;  %v210_v30 = vld [vmem:[%s1174_s25 + $0x1b0] sm:$0xff] }
  0x20   : > { %207 = vst [vmem:[%s1179_s26 + $0xe0] sm:$0xff] %v206_v28  ;;  %209 = vst [vmem:[%s1179_s26 + $0xe8] sm:$0xff] %v208_v29  ;;  %v212_v31 = vld [vmem:[%s1174_s25 + $0x1b8] sm:$0xff] }
  0x21   : > { %211 = vst [vmem:[%s1179_s26 + $0xf0] sm:$0xff] %v210_v30  ;;  %213 = vst [vmem:[%s1179_s26 + $0xf8] sm:$0xff] %v212_v31 }
  0x22 PF: > { %p1012_p5 = scmp.ge.s32.totalorder %s1116_s14, 1  ;;  %p218_p6 = scmp.lt.s32.totalorder %s1116_s14, 3 }
  0x24   : > { %p219_p7 = pnand %p1012_p5, %p218_p6 }
  0x25   : > { %s225_s27 = sand.u32 (!%p219_p7), 1, %s1108_s12   ;;  %v1118_v32 = vmov (!%p219_p7), 0   ;;  %v289_v33 = vld [vmem:[%s1366_s2] sm:$0xf] (!%p219_p7)  ;;  %vm455_vm0 = vcmask (!%p219_p7), 261120   ;;  %s1014_s7 = sshll.u32 (!%p219_p7), %s1005_s15, 4 }
  0x26   : > { %222 = sbr.rel (%p219_p7) target bundleno = 302 (0x12e), region = 51  ;;  %s1013_s28 = sshll.u32 (!%p219_p7), %s225_s27, 8  ;;  %491 = vmatprep.mubr.bf16.mxu0 (!%p219_p7), %v1118_v32  ;;  %532 = vmatprep.mubr.bf16.mxu1 (!%p219_p7), %v1118_v32  ;;  %v1272_v60 = vld [vmem:[%s1364_s0] sm:$0x3] (!%p219_p7) }
  0x27   : > { %1093 = vset.pattern.permute.xlu0 (!%p219_p7), %v1118_v32  ;;  %s1251_s4 = scalar_lea.vmem (!%p219_p7), [#allocation2], %s1013_s28  ;;  %p250_p8 = scmp.lt.s32.totalorder (!%p219_p7), %s1014_s7, 31 }
  0x28   : > { %v257_v34 = vld [vmem:[%s1251_s4] sm:$0xff] (!%p219_p7)  ;;  %v258_v36 = vld [vmem:[%s1251_s4 + $0x8] sm:$0xff] (!%p219_p7)  ;;  %292 = vperm.xlu0 (!%p219_p7), %1093, %v289_v33   ;;  %v259_v47 = vld [vmem:[%s1251_s4 + $0x10] sm:$0xff] (!%p219_p7) }
  0x29   : > { %v265_v35 = vld [vmem:[%s1251_s4 + $0x40] sm:$0xff] (!%p219_p7)  ;;  %v266_v38 = vld [vmem:[%s1251_s4 + $0x48] sm:$0xff] (!%p219_p7)  ;;  %v267_v49 = vld [vmem:[%s1251_s4 + $0x50] sm:$0xff] (!%p219_p7) }
  0x2a   : > { %v1017_v37 = vcombine.high (!%p219_p7), %v257_v34, %v265_v35  ;;  %v1016_v39 = vcombine.low (!%p219_p7), %v257_v34, %v265_v35  ;;  %v273_v40 = vld [vmem:[%s1251_s4 + $0x80] sm:$0xff] (!%p219_p7)  ;;  %v1019_v42 = vcombine.high (!%p219_p7), %v258_v36, %v266_v38  ;;  %v1018_v43 = vcombine.low (!%p219_p7), %v258_v36, %v266_v38  ;;  %v274_v45 = vld [vmem:[%s1251_s4 + $0x88] sm:$0xff] (!%p219_p7)  ;;  %v260_v50 = vld [vmem:[%s1251_s4 + $0x18] sm:$0xff] (!%p219_p7) }
  0x2b   : > { %v281_v41 = vld [vmem:[%s1251_s4 + $0xc0] sm:$0xff] (!%p219_p7)  ;;  %v282_v46 = vld [vmem:[%s1251_s4 + $0xc8] sm:$0xff] (!%p219_p7)  ;;  %v268_v51 = vld [vmem:[%s1251_s4 + $0x58] sm:$0xff] (!%p219_p7)  ;;  %v1021_v54 = vcombine.high (!%p219_p7), %v259_v47, %v267_v49  ;;  %v1020_v61 = vcombine.low (!%p219_p7), %v259_v47, %v267_v49  ;;  %v1119_v36 = vmov (!%p219_p7), 1983009808   ;;  %v872_v38 = vlaneseq (!%p219_p7) }
  0x2c   : > { %v1033_v44 = vcombine.high (!%p219_p7), %v273_v40, %v281_v41  ;;  %459 = vmatprep.subr.bf16.mxu0 (!%p219_p7), %v1017_v37  ;;  %v1035_v48 = vcombine.high (!%p219_p7), %v274_v45, %v282_v46  ;;  %500 = vmatprep.subr.bf16.mxu1 (!%p219_p7), %v1019_v42  ;;  %v1032_v52 = vcombine.low (!%p219_p7), %v273_v40, %v281_v41  ;;  %v275_v56 = vld [vmem:[%s1251_s4 + $0x90] sm:$0xff] (!%p219_p7)  ;;  %v276_v58 = vld [vmem:[%s1251_s4 + $0x98] sm:$0xff] (!%p219_p7)  ;;  %v261_v1 = vld [vmem:[%s1251_s4 + $0x20] sm:$0xff] (!%p219_p7)  ;;  %v870_v37 = vunpack.c.l.s4 (!%p219_p7), %v1119_v36 }
  0x2d   : > { %460 = vmatpush1.bf16.msra.mxu0 %v1016_v39  ;;  %501 = vmatpush1.bf16.msra.mxu1 %v1018_v43  ;;  %v1034_v53 = vcombine.low %v274_v45, %v282_v46  ;;  %v1023_v55 = vcombine.high %v260_v50, %v268_v51  ;;  %v283_v57 = vld [vmem:[%s1251_s4 + $0xd0] sm:$0xff]  ;;  %v284_v59 = vld [vmem:[%s1251_s4 + $0xd8] sm:$0xff]  ;;  %v1022_v62 = vcombine.low %v260_v50, %v268_v51  ;;  %v269_v2 = vld [vmem:[%s1251_s4 + $0x60] sm:$0xff]  ;;  %s1372_s7 = smov (!%p250_p8, %s1014_s7), 31 }
  0x2e   : > { %461 = vmatprep.subr.bf16.mxu0 %v1033_v44  ;;  %502 = vmatprep.subr.bf16.mxu1 %v1035_v48  ;;  %v1037_v63 = vcombine.high %v275_v56, %v283_v57  ;;  %v1039_v0 = vcombine.high %v276_v58, %v284_v59  ;;  %v262_v3 = vld [vmem:[%s1251_s4 + $0x28] sm:$0xff]  ;;  %v1036_v5 = vcombine.low %v275_v56, %v283_v57  ;;  %v277_v9 = vld [vmem:[%s1251_s4 + $0xa0] sm:$0xff]  ;;  %v263_v17 = vld [vmem:[%s1251_s4 + $0x30] sm:$0xff]  ;;  %v871_v43 = vunpack.c.0.s8 %v870_v37  ;;  %s1015_s8 = sshll.u32 %s1372_s7, 1 }
  0x2f   : > { %v270_v4 = vld [vmem:[%s1251_s4 + $0x68] sm:$0xff]  ;;  %v1038_v6 = vcombine.low %v276_v58, %v284_v59  ;;  %v1025_v7 = vcombine.high %v261_v1, %v269_v2  ;;  %v285_v10 = vld [vmem:[%s1251_s4 + $0xe0] sm:$0xff]  ;;  %v1024_v13 = vcombine.low %v261_v1, %v269_v2  ;;  %v271_v18 = vld [vmem:[%s1251_s4 + $0x70] sm:$0xff]  ;;  %v873_v44 = vshrl.u32 %v872_v38, 7  ;;  %s1333_s11 = scalar_lea.vmem %s1367_s3, %s1015_s8 }
  0x30   : > { %v1027_v8 = vcombine.high %v262_v3, %v270_v4  ;;  %v278_v11 = vld [vmem:[%s1251_s4 + $0xa8] sm:$0xff]  ;;  %v1026_v14 = vcombine.low %v262_v3, %v270_v4  ;;  %v1041_v15 = vcombine.high %v277_v9, %v285_v10  ;;  %v264_v19 = vld [vmem:[%s1251_s4 + $0x38] sm:$0xff]  ;;  %v1040_v21 = vcombine.low %v277_v9, %v285_v10  ;;  %v279_v25 = vld [vmem:[%s1251_s4 + $0xb0] sm:$0xff] }
  0x31   : > { %462 = vmatpush1.bf16.msra.mxu0 %v1032_v52  ;;  %503 = vmatpush1.bf16.msra.mxu1 %v1034_v53  ;;  %v286_v12 = vld [vmem:[%s1251_s4 + $0xe8] sm:$0xff]  ;;  %v272_v20 = vld [vmem:[%s1251_s4 + $0x78] sm:$0xff]  ;;  %v1029_v23 = vcombine.high %v263_v17, %v271_v18  ;;  %v287_v26 = vld [vmem:[%s1251_s4 + $0xf0] sm:$0xff]  ;;  %v1028_v29 = vcombine.low %v263_v17, %v271_v18  ;;  %v1322_v56 = vsub.s32 %v871_v43, %v873_v44 }
  0x32   : > { %541 = vmatprep.subr.bf16.mxu0 %v1021_v54  ;;  %582 = vmatprep.subr.bf16.mxu1 %v1023_v55  ;;  %v1043_v16 = vcombine.high %v278_v11, %v286_v12  ;;  %v1042_v22 = vcombine.low %v278_v11, %v286_v12  ;;  %v1031_v24 = vcombine.high %v264_v19, %v272_v20  ;;  %v280_v27 = vld [vmem:[%s1251_s4 + $0xb8] sm:$0xff] }
  0x33   : > { %v288_v28 = vld [vmem:[%s1251_s4 + $0xf8] sm:$0xff]  ;;  %v1030_v30 = vcombine.low %v264_v19, %v272_v20  ;;  %v1045_v31 = vcombine.high %v279_v25, %v287_v26  ;;  %v1044_v34 = vcombine.low %v279_v25, %v287_v26 }
  0x34   : > { %1048 = vmatmul.mubr.msk.bf16.vlgmr.msra.gmra.mrb[0].mxu0 %vm455_vm0, %v1272_v60  ;;  %1049 = vmatmul.mubr.msk.bf16.vlgmr.msra.gmra.mrb[0].mxu1 %vm455_vm0, %v1272_v60  ;;  %v1047_v33 = vcombine.high %v280_v27, %v288_v28  ;;  %v1046_v35 = vcombine.low %v280_v27, %v288_v28 }
  0x35   : > { %542 = vmatpush1.bf16.msra.mxu0 %v1020_v61  ;;  %583 = vmatpush1.bf16.msra.mxu1 %v1022_v62 }
  0x36   : > { %543 = vmatprep.subr.bf16.mxu0 %v1037_v63  ;;  %584 = vmatprep.subr.bf16.mxu1 %v1039_v0 }
  0x37   : > { %573 = vmatprep.mubr.bf16.mxu0 %v1118_v32  ;;  %614 = vmatprep.mubr.bf16.mxu1 %v1118_v32 }
  0x39   : > { %544 = vmatpush1.bf16.msra.mxu0 %v1036_v5  ;;  %585 = vmatpush1.bf16.msra.mxu1 %v1038_v6 }
  0x3a   : > { %623 = vmatprep.subr.bf16.mxu0 %v1025_v7  ;;  %664 = vmatprep.subr.bf16.mxu1 %v1027_v8 }
  0x3c   : > { %1050 = vmatmul.mubr.msk.bf16.vlgmr.msra.gmra.mrb[4].mxu0 %vm455_vm0, %v1272_v60  ;;  %1051 = vmatmul.mubr.msk.bf16.vlgmr.msra.gmra.mrb[4].mxu1 %vm455_vm0, %v1272_v60 }
  0x3d   : > { %624 = vmatpush1.bf16.msra.mxu0 %v1024_v13  ;;  %665 = vmatpush1.bf16.msra.mxu1 %v1026_v14 }
  0x3e   : > { %625 = vmatprep.subr.bf16.mxu0 %v1041_v15  ;;  %666 = vmatprep.subr.bf16.mxu1 %v1043_v16 }
  0x3f   : > { %655 = vmatprep.mubr.bf16.mxu0 %v1118_v32  ;;  %696 = vmatprep.mubr.bf16.mxu1 %v1118_v32 }
  0x41   : > { %626 = vmatpush1.bf16.msra.mxu0 %v1040_v21  ;;  %667 = vmatpush1.bf16.msra.mxu1 %v1042_v22 }
  0x42   : > { %705 = vmatprep.subr.bf16.mxu0 %v1029_v23  ;;  %746 = vmatprep.subr.bf16.mxu1 %v1031_v24 }
  0x44   : > { %1052 = vmatmul.mubr.msk.bf16.vlgmr.msra.gmra.mrb[8].mxu0 %vm455_vm0, %v1272_v60  ;;  %1053 = vmatmul.mubr.msk.bf16.vlgmr.msra.gmra.mrb[8].mxu1 %vm455_vm0, %v1272_v60 }
  0x45   : > { %706 = vmatpush1.bf16.msra.mxu0 %v1028_v29  ;;  %747 = vmatpush1.bf16.msra.mxu1 %v1030_v30 }
  0x46   : > { %707 = vmatprep.subr.bf16.mxu0 %v1045_v31  ;;  %748 = vmatprep.subr.bf16.mxu1 %v1047_v33 }
  0x47   : > { %737 = vmatprep.mubr.bf16.mxu0 %v1118_v32  ;;  %778 = vmatprep.mubr.bf16.mxu1 %v1118_v32 }
  0x49   : > { %708 = vmatpush1.bf16.msra.mxu0 %v1044_v34  ;;  %749 = vmatpush1.bf16.msra.mxu1 %v1046_v35 }
  0x4c   : > { %1054 = vmatmul.mubr.msk.bf16.vlgmr.msra.gmra.mrb[12].mxu0 %vm455_vm0, %v1272_v60  ;;  %1055 = vmatmul.mubr.msk.bf16.vlgmr.msra.gmra.mrb[12].mxu1 %vm455_vm0, %v1272_v60 }
  0xa7   : > { %v1314_v39 = vpop.permute.xlu0 %292 }
 0x107   : > { %v493_v40 = vpop.f32.mrb[0].mxu0  ;;  %v534_v32 = vpop.f32.mrb[0].mxu1 }
 0x108   : > { %v494_v41 = vadd.f32 %v493_v40, %v1314_v39  ;;  %v495_v42 = vpop.f32.mrb[1].mxu0  ;;  %v535_v45 = vadd.f32 %v534_v32, %v1314_v39  ;;  %v536_v47 = vpop.f32.mrb[1].mxu1 }
 0x109   : > { %v496_v46 = vadd.f32 %v495_v42, %v1314_v39  ;;  %v497_v48 = vpop.f32.mrb[2].mxu0  ;;  %v537_v50 = vadd.f32 %v536_v47, %v1314_v39  ;;  %v538_v51 = vpop.f32.mrb[2].mxu1 }
 0x10a   : > { %vm787_vm1 = vcmp.ge.f32.partialorder %v494_v41, 0.0  ;;  %v803_v49 = vmul.f32 0.2, %v494_v41  ;;  %v498_v52 = vpop.f32.mrb[3].mxu0  ;;  %vm789_vm2 = vcmp.ge.f32.partialorder %v535_v45, 0.0  ;;  %v539_v58 = vpop.f32.mrb[3].mxu1 }
 0x10b   : > { %v805_v53 = vmul.f32 0.2, %v535_v45  ;;  %vm788_vm3 = vcmp.ge.f32.partialorder %v496_v46, 0.0  ;;  %v804_v54 = vmul.f32 0.2, %v496_v46  ;;  %vm790_vm4 = vcmp.ge.f32.partialorder %v537_v50, 0.0 }
 0x10c   : > { %v819_v55 = vsel %vm787_vm1, %v494_v41, %v803_v49  ;;  %v806_v57 = vmul.f32 0.2, %v537_v50 }
 0x10d   : > { %v821_v59 = vsel %vm789_vm2, %v535_v45, %v805_v53  ;;  %v820_v60 = vsel %vm788_vm3, %v496_v46, %v804_v54 }
 0x10e   : > { %v1056_v61 = vpack.c.bf16 %v820_v60, %v819_v55  ;;  %v822_v62 = vsel %vm790_vm4, %v537_v50, %v806_v57 }
 0x10f   : > { %v1057_v63 = vpack.c.bf16 %v822_v62, %v821_v59  ;;  %v575_v0 = vpop.f32.mrb[4].mxu0  ;;  %v616_v3 = vpop.f32.mrb[4].mxu1 }
 0x110   : > { %v875_v1 = vrot.slane %v1056_v61, %v1322_v56  ;;  %v576_v2 = vadd.f32 %v575_v0, %v1314_v39  ;;  %v577_v4 = vpop.f32.mrb[5].mxu0  ;;  %v617_v6 = vadd.f32 %v616_v3, %v1314_v39  ;;  %v618_v8 = vpop.f32.mrb[5].mxu1 }
 0x111   : > { %v882_v5 = vrot.slane %v1057_v63, %v1322_v56  ;;  %v578_v7 = vadd.f32 %v577_v4, %v1314_v39  ;;  %v579_v9 = vpop.f32.mrb[6].mxu0  ;;  %v619_v11 = vadd.f32 %v618_v8, %v1314_v39  ;;  %v620_v12 = vpop.f32.mrb[6].mxu1 }
 0x112   : > { %vm791_vm5 = vcmp.ge.f32.partialorder %v576_v2, 0.0  ;;  %v807_v10 = vmul.f32 0.2, %v576_v2  ;;  %v580_v13 = vpop.f32.mrb[7].mxu0  ;;  %vm793_vm6 = vcmp.ge.f32.partialorder %v617_v6, 0.0  ;;  %v621_v16 = vpop.f32.mrb[7].mxu1 }
 0x113   : > { %v883_v14 = vcombine.low %v875_v1, %v882_v5  ;;  %v809_v15 = vmul.f32 0.2, %v617_v6  ;;  %vm792_vm7 = vcmp.ge.f32.partialorder %v578_v7, 0.0  ;;  %v808_v18 = vmul.f32 0.2, %v578_v7 }
 0x114   : > { %v823_v17 = vsel %vm791_vm5, %v576_v2, %v807_v10  ;;  %vm794_vm8 = vcmp.ge.f32.partialorder %v619_v11, 0.0  ;;  %v810_v19 = vmul.f32 0.2, %v619_v11 }
 0x115   : > { %939 = vst [vmem:[%s1333_s11] sm:$0xff] %v883_v14  ;;  %v825_v20 = vsel %vm793_vm6, %v617_v6, %v809_v15  ;;  %v824_v21 = vsel %vm792_vm7, %v578_v7, %v808_v18 }
 0x116   : > { %v826_v22 = vsel %vm794_vm8, %v619_v11, %v810_v19  ;;  %v1058_v23 = vpack.c.bf16 %v824_v21, %v823_v17 }
 0x117   : > { %v1059_v24 = vpack.c.bf16 %v826_v22, %v825_v20  ;;  %v657_v25 = vpop.f32.mrb[8].mxu0  ;;  %v698_v27 = vpop.f32.mrb[8].mxu1 }
 0x118   : > { %v658_v26 = vadd.f32 %v657_v25, %v1314_v39  ;;  %v659_v28 = vpop.f32.mrb[9].mxu0  ;;  %v892_v29 = vrot.slane %v1058_v23, %v1322_v56  ;;  %v699_v31 = vadd.f32 %v698_v27, %v1314_v39  ;;  %v700_v34 = vpop.f32.mrb[9].mxu1 }
 0x119   : > { %v899_v30 = vrot.slane %v1059_v24, %v1322_v56  ;;  %v660_v33 = vadd.f32 %v659_v28, %v1314_v39  ;;  %v661_v35 = vpop.f32.mrb[10].mxu0  ;;  %v701_v37 = vadd.f32 %v700_v34, %v1314_v39  ;;  %v702_v38 = vpop.f32.mrb[10].mxu1 }
 0x11a   : > { %vm795_vm9 = vcmp.ge.f32.partialorder %v658_v26, 0.0  ;;  %v811_v36 = vmul.f32 0.2, %v658_v26  ;;  %v662_v40 = vpop.f32.mrb[11].mxu0  ;;  %vm797_vm10 = vcmp.ge.f32.partialorder %v699_v31, 0.0  ;;  %v703_v42 = vpop.f32.mrb[11].mxu1 }
 0x11b   : > { %v900_v41 = vcombine.low %v892_v29, %v899_v30  ;;  %v813_v32 = vmul.f32 0.2, %v699_v31  ;;  %vm796_vm11 = vcmp.ge.f32.partialorder %v660_v33, 0.0  ;;  %v812_v44 = vmul.f32 0.2, %v660_v33 }
 0x11c   : > { %v827_v43 = vsel %vm795_vm9, %v658_v26, %v811_v36  ;;  %vm798_vm12 = vcmp.ge.f32.partialorder %v701_v37, 0.0  ;;  %v814_v45 = vmul.f32 0.2, %v701_v37 }
 0x11d   : > { %940 = vst [vmem:[%s1333_s11 + $0x8] sm:$0xff] %v900_v41  ;;  %v829_v46 = vsel %vm797_vm10, %v699_v31, %v813_v32  ;;  %v828_v47 = vsel %vm796_vm11, %v660_v33, %v812_v44 }
 0x11e   : > { %v830_v48 = vsel %vm798_vm12, %v701_v37, %v814_v45  ;;  %v1060_v49 = vpack.c.bf16 %v828_v47, %v827_v43 }
 0x11f   : > { %v1061_v50 = vpack.c.bf16 %v830_v48, %v829_v46  ;;  %v739_v51 = vpop.f32.mrb[12].mxu0  ;;  %v780_v53 = vpop.f32.mrb[12].mxu1 }
 0x120   : > { %v740_v52 = vadd.f32 %v739_v51, %v1314_v39  ;;  %v741_v54 = vpop.f32.mrb[13].mxu0  ;;  %v909_v55 = vrot.slane %v1060_v49, %v1322_v56  ;;  %v781_v58 = vadd.f32 %v780_v53, %v1314_v39  ;;  %v782_v60 = vpop.f32.mrb[13].mxu1 }
 0x121   : > { %v916_v57 = vrot.slane %v1061_v50, %v1322_v56  ;;  %v742_v59 = vadd.f32 %v741_v54, %v1314_v39  ;;  %v743_v61 = vpop.f32.mrb[14].mxu0  ;;  %v783_v63 = vadd.f32 %v782_v60, %v1314_v39  ;;  %v784_v0 = vpop.f32.mrb[14].mxu1 }
 0x122   : > { %vm799_vm13 = vcmp.ge.f32.partialorder %v740_v52, 0.0  ;;  %v815_v62 = vmul.f32 0.2, %v740_v52  ;;  %v744_v1 = vpop.f32.mrb[15].mxu0  ;;  %vm801_vm14 = vcmp.ge.f32.partialorder %v781_v58, 0.0  ;;  %v785_v4 = vpop.f32.mrb[15].mxu1 }
 0x123   : > { %v917_v2 = vcombine.low %v909_v55, %v916_v57  ;;  %v817_v3 = vmul.f32 0.2, %v781_v58  ;;  %vm800_vm15 = vcmp.ge.f32.partialorder %v742_v59, 0.0  ;;  %v816_v6 = vmul.f32 0.2, %v742_v59 }
 0x124   : > { %v831_v5 = vsel %vm799_vm13, %v740_v52, %v815_v62  ;;  %vm802_vm0 = vcmp.ge.f32.partialorder %v783_v63, 0.0  ;;  %v818_v7 = vmul.f32 0.2, %v783_v63 }
 0x125   : > { %941 = vst [vmem:[%s1333_s11 + $0x10] sm:$0xff] %v917_v2  ;;  %v833_v8 = vsel %vm801_vm14, %v781_v58, %v817_v3  ;;  %v832_v9 = vsel %vm800_vm15, %v742_v59, %v816_v6 }
 0x126   : > { %v834_v10 = vsel %vm802_vm0, %v783_v63, %v818_v7  ;;  %v1062_v11 = vpack.c.bf16 %v832_v9, %v831_v5 }
 0x127   : > { %v1063_v12 = vpack.c.bf16 %v834_v10, %v833_v8 }
 0x128   : > { %v926_v39 = vrot.slane %v1062_v11, %v1322_v56 }
 0x129   : > { %v933_v13 = vrot.slane %v1063_v12, %v1322_v56 }
 0x12b   : > { %v934_v14 = vcombine.low %v926_v39, %v933_v13 }
 0x12d   : > { %942 = vst [vmem:[%s1333_s11 + $0x18] sm:$0xff] %v934_v14 }
 0x12e PF: > { %p10_p9 = scmp.ge.s32.totalorder %s1157_s16, 4   ;;  %s1368_s12 = smov %s1112_s13 }
 0x12f   : > { %s1369_s13 = smov %s1166_s19  ;;  %s1370_s14 = smov %s1157_s16 }
 0x130   :  { %12 = sbr.rel (!%p10_p9) target bundleno = 2 (0x2), region = 90 }

// kernel: generator_forward.10
= control target key start
LH: loop header
LB: loop body
LE: loop exit
PB: predicated region body
PF: predicated region fallthrough
CT: control target
= control target key end

     0   :  { %v492_v3 = vmov 0   ;;  %vm214_vm0 = vcmask 523264   ;;  %s636_s1 = inlined_call_operand.vmem [shape: bf16[64,1024], index: 1, kind: input, shape index: {}]   ;;  %s637_s2 = inlined_call_operand.vmem [shape: f32[8,1], index: 2, kind: input, shape index: {}]   ;;  %s638_s0 = inlined_call_operand.vmem [shape: bf16[8,64], index: 0, kind: input, shape index: {}]   ;;  %s639_s3 = inlined_call_operand.vmem [shape: bf16[8,1024], index: 3, kind: output, shape index: {}]  }
   0x1   :  { %v16_v0 = vld [vmem:[%s636_s1] sm:$0xff]  ;;  %v17_v2 = vld [vmem:[%s636_s1 + $0x8] sm:$0xff]  ;;  %250 = vmatprep.mubr.bf16.mxu0 %v492_v3  ;;  %291 = vmatprep.mubr.bf16.mxu1 %v492_v3  ;;  %v18_v31 = vld [vmem:[%s636_s1 + $0x10] sm:$0xff] }
   0x2   :  { %v20_v1 = vld [vmem:[%s636_s1 + $0x20] sm:$0xff]  ;;  %v21_v5 = vld [vmem:[%s636_s1 + $0x28] sm:$0xff]  ;;  %491 = vset.pattern.permute.xlu0 %v492_v3  ;;  %v22_v32 = vld [vmem:[%s636_s1 + $0x30] sm:$0xff] }
   0x3   :  { %v447_v4 = vcombine.high %v16_v0, %v20_v1  ;;  %v446_v6 = vcombine.low %v16_v0, %v20_v1  ;;  %v24_v7 = vld [vmem:[%s636_s1 + $0x40] sm:$0xff]  ;;  %v449_v9 = vcombine.high %v17_v2, %v21_v5  ;;  %v448_v10 = vcombine.low %v17_v2, %v21_v5  ;;  %v25_v12 = vld [vmem:[%s636_s1 + $0x48] sm:$0xff]  ;;  %v19_v33 = vld [vmem:[%s636_s1 + $0x18] sm:$0xff] }
   0x4   :  { %v28_v8 = vld [vmem:[%s636_s1 + $0x60] sm:$0xff]  ;;  %v29_v13 = vld [vmem:[%s636_s1 + $0x68] sm:$0xff]  ;;  %v23_v34 = vld [vmem:[%s636_s1 + $0x38] sm:$0xff]  ;;  %v451_v38 = vcombine.high %v18_v31, %v22_v32  ;;  %v450_v45 = vcombine.low %v18_v31, %v22_v32 }
   0x5   :  { %v455_v11 = vcombine.high %v24_v7, %v28_v8  ;;  %v32_v14 = vld [vmem:[%s636_s1 + $0x80] sm:$0xff]  ;;  %218 = vmatprep.subr.bf16.mxu0 %v447_v4  ;;  %v457_v15 = vcombine.high %v25_v12, %v29_v13  ;;  %v33_v17 = vld [vmem:[%s636_s1 + $0x88] sm:$0xff]  ;;  %259 = vmatprep.subr.bf16.mxu1 %v449_v9  ;;  %v454_v19 = vcombine.low %v24_v7, %v28_v8  ;;  %v26_v40 = vld [vmem:[%s636_s1 + $0x50] sm:$0xff] }
   0x6   :  { %v36_v16 = vld [vmem:[%s636_s1 + $0xa0] sm:$0xff]  ;;  %v37_v18 = vld [vmem:[%s636_s1 + $0xa8] sm:$0xff]  ;;  %219 = vmatpush1.bf16.msra.mxu0 %v446_v6  ;;  %260 = vmatpush1.bf16.msra.mxu1 %v448_v10  ;;  %v456_v20 = vcombine.low %v25_v12, %v29_v13  ;;  %v453_v39 = vcombine.high %v19_v33, %v23_v34  ;;  %v30_v41 = vld [vmem:[%s636_s1 + $0x70] sm:$0xff]  ;;  %v452_v46 = vcombine.low %v19_v33, %v23_v34 }
   0x7   :  { %220 = vmatprep.subr.bf16.mxu0 %v455_v11  ;;  %v463_v21 = vcombine.high %v32_v14, %v36_v16  ;;  %261 = vmatprep.subr.bf16.mxu1 %v457_v15  ;;  %v465_v22 = vcombine.high %v33_v17, %v37_v18  ;;  %v40_v23 = vld [vmem:[%s636_s1 + $0xc0] sm:$0xff]  ;;  %v41_v25 = vld [vmem:[%s636_s1 + $0xc8] sm:$0xff]  ;;  %v462_v27 = vcombine.low %v32_v14, %v36_v16  ;;  %v27_v42 = vld [vmem:[%s636_s1 + $0x58] sm:$0xff] }
   0x8   :  { %v44_v24 = vld [vmem:[%s636_s1 + $0xe0] sm:$0xff]  ;;  %v45_v26 = vld [vmem:[%s636_s1 + $0xe8] sm:$0xff]  ;;  %v464_v28 = vcombine.low %v33_v17, %v37_v18  ;;  %v31_v43 = vld [vmem:[%s636_s1 + $0x78] sm:$0xff]  ;;  %v459_v47 = vcombine.high %v26_v40, %v30_v41  ;;  %v458_v53 = vcombine.low %v26_v40, %v30_v41 }
   0x9   :  { %v471_v29 = vcombine.high %v40_v23, %v44_v24  ;;  %v473_v30 = vcombine.high %v41_v25, %v45_v26  ;;  %v48_v35 = vld [vmem:[%s637_s2] sm:$0xff]  ;;  %v470_v36 = vcombine.low %v40_v23, %v44_v24  ;;  %v472_v37 = vcombine.low %v41_v25, %v45_v26  ;;  %v34_v49 = vld [vmem:[%s636_s1 + $0x90] sm:$0xff]  ;;  %v35_v51 = vld [vmem:[%s636_s1 + $0x98] sm:$0xff] }
   0xa   :  { %221 = vmatpush1.bf16.msra.mxu0 %v454_v19  ;;  %262 = vmatpush1.bf16.msra.mxu1 %v456_v20  ;;  %v15_v44 = vld [vmem:[%s638_s0] sm:$0xf]  ;;  %v461_v48 = vcombine.high %v27_v42, %v31_v43  ;;  %v38_v50 = vld [vmem:[%s636_s1 + $0xb0] sm:$0xff]  ;;  %v39_v52 = vld [vmem:[%s636_s1 + $0xb8] sm:$0xff]  ;;  %v460_v54 = vcombine.low %v27_v42, %v31_v43 }
   0xb   :  { %222 = vmatprep.subr.bf16.mxu0 %v463_v21  ;;  %263 = vmatprep.subr.bf16.mxu1 %v465_v22  ;;  %v467_v55 = vcombine.high %v34_v49, %v38_v50  ;;  %v469_v56 = vcombine.high %v35_v51, %v39_v52  ;;  %v42_v57 = vld [vmem:[%s636_s1 + $0xd0] sm:$0xff]  ;;  %v43_v59 = vld [vmem:[%s636_s1 + $0xd8] sm:$0xff]  ;;  %v466_v61 = vcombine.low %v34_v49, %v38_v50 }
   0xc   :  { %51 = vperm.xlu0 %491, %v48_v35   ;;  %v46_v58 = vld [vmem:[%s636_s1 + $0xf0] sm:$0xff]  ;;  %v47_v60 = vld [vmem:[%s636_s1 + $0xf8] sm:$0xff]  ;;  %v468_v62 = vcombine.low %v35_v51, %v39_v52 }
   0xd   :  { %v475_v63 = vcombine.high %v42_v57, %v46_v58  ;;  %v477_v0 = vcombine.high %v43_v59, %v47_v60  ;;  %v474_v1 = vcombine.low %v42_v57, %v46_v58  ;;  %v476_v2 = vcombine.low %v43_v59, %v47_v60 }
   0xe   :  { %223 = vmatpush1.bf16.msra.mxu0 %v462_v27  ;;  %264 = vmatpush1.bf16.msra.mxu1 %v464_v28 }
   0xf   :  { %224 = vmatprep.subr.bf16.mxu0 %v471_v29  ;;  %265 = vmatprep.subr.bf16.mxu1 %v473_v30 }
  0x12   :  { %225 = vmatpush1.bf16.msra.mxu0 %v470_v36  ;;  %266 = vmatpush1.bf16.msra.mxu1 %v472_v37 }
  0x13   :  { %300 = vmatprep.subr.bf16.mxu0 %v451_v38  ;;  %341 = vmatprep.subr.bf16.mxu1 %v453_v39 }
  0x15   :  { %478 = vmatmul.mubr.msk.bf16.vlgmr.msra.gmra.mrb[0].mxu0 %vm214_vm0, %v15_v44  ;;  %479 = vmatmul.mubr.msk.bf16.vlgmr.msra.gmra.mrb[0].mxu1 %vm214_vm0, %v15_v44 }
  0x16   :  { %301 = vmatpush1.bf16.msra.mxu0 %v450_v45  ;;  %342 = vmatpush1.bf16.msra.mxu1 %v452_v46 }
  0x17   :  { %302 = vmatprep.subr.bf16.mxu0 %v459_v47  ;;  %343 = vmatprep.subr.bf16.mxu1 %v461_v48 }
  0x18   :  { %332 = vmatprep.mubr.bf16.mxu0 %v492_v3  ;;  %373 = vmatprep.mubr.bf16.mxu1 %v492_v3 }
  0x1a   :  { %303 = vmatpush1.bf16.msra.mxu0 %v458_v53  ;;  %344 = vmatpush1.bf16.msra.mxu1 %v460_v54 }
  0x1b   :  { %304 = vmatprep.subr.bf16.mxu0 %v467_v55  ;;  %345 = vmatprep.subr.bf16.mxu1 %v469_v56 }
  0x1e   :  { %305 = vmatpush1.bf16.msra.mxu0 %v466_v61  ;;  %346 = vmatpush1.bf16.msra.mxu1 %v468_v62 }
  0x1f   :  { %306 = vmatprep.subr.bf16.mxu0 %v475_v63  ;;  %347 = vmatprep.subr.bf16.mxu1 %v477_v0 }
  0x22   :  { %307 = vmatpush1.bf16.msra.mxu0 %v474_v1  ;;  %348 = vmatpush1.bf16.msra.mxu1 %v476_v2 }
  0x25   :  { %480 = vmatmul.mubr.msk.bf16.vlgmr.msra.gmra.mrb[4].mxu0 %vm214_vm0, %v15_v44  ;;  %481 = vmatmul.mubr.msk.bf16.vlgmr.msra.gmra.mrb[4].mxu1 %vm214_vm0, %v15_v44 }
  0x8b   :  { %v52_v3 = vpop.permute.xlu0 %51 }
  0xe8   :  { %v252_v4 = vpop.f32.mrb[0].mxu0  ;;  %v293_v6 = vpop.f32.mrb[0].mxu1 }
  0xe9   :  { %v253_v5 = vadd.f32 %v252_v4, %v52_v3  ;;  %v254_v7 = vpop.f32.mrb[1].mxu0  ;;  %v294_v8 = vadd.f32 %v293_v6, %v52_v3  ;;  %v295_v10 = vpop.f32.mrb[1].mxu1 }
  0xea   :  { %v255_v9 = vadd.f32 %v254_v7, %v52_v3  ;;  %v256_v11 = vpop.f32.mrb[2].mxu0  ;;  %v296_v13 = vadd.f32 %v295_v10, %v52_v3  ;;  %v297_v14 = vpop.f32.mrb[2].mxu1 }
  0xeb   :  { %vm382_vm1 = vcmp.ge.f32.partialorder %v253_v5, 0.0  ;;  %v390_v12 = vmul.f32 0.2, %v253_v5  ;;  %v257_v15 = vpop.f32.mrb[3].mxu0  ;;  %vm384_vm2 = vcmp.ge.f32.partialorder %v294_v8, 0.0  ;;  %v298_v20 = vpop.f32.mrb[3].mxu1 }
  0xec   :  { %v392_v16 = vmul.f32 0.2, %v294_v8  ;;  %vm383_vm3 = vcmp.ge.f32.partialorder %v255_v9, 0.0  ;;  %v391_v17 = vmul.f32 0.2, %v255_v9  ;;  %vm385_vm4 = vcmp.ge.f32.partialorder %v296_v13, 0.0 }
  0xed   :  { %v398_v18 = vsel %vm382_vm1, %v253_v5, %v390_v12  ;;  %v393_v19 = vmul.f32 0.2, %v296_v13 }
  0xee   :  { %v400_v21 = vsel %vm384_vm2, %v294_v8, %v392_v16  ;;  %v399_v22 = vsel %vm383_vm3, %v255_v9, %v391_v17 }
  0xef   :  { %v486_v23 = vpack.c.bf16 %v399_v22, %v398_v18  ;;  %v401_v24 = vsel %vm385_vm4, %v296_v13, %v393_v19 }
  0xf0   :  { %v487_v25 = vpack.c.bf16 %v401_v24, %v400_v21 }
  0xf1   :  { %438 = vst [vmem:[%s639_s3] sm:$0xff] %v486_v23 }
  0xf2   :  { %439 = vst [vmem:[%s639_s3 + $0x8] sm:$0xff] %v487_v25 }
  0xf8   :  { %v334_v26 = vpop.f32.mrb[4].mxu0  ;;  %v375_v28 = vpop.f32.mrb[4].mxu1 }
  0xf9   :  { %v335_v27 = vadd.f32 %v334_v26, %v52_v3  ;;  %v336_v29 = vpop.f32.mrb[5].mxu0  ;;  %v376_v30 = vadd.f32 %v375_v28, %v52_v3  ;;  %v377_v32 = vpop.f32.mrb[5].mxu1 }
  0xfa   :  { %v337_v31 = vadd.f32 %v336_v29, %v52_v3  ;;  %v338_v33 = vpop.f32.mrb[6].mxu0  ;;  %v378_v35 = vadd.f32 %v377_v32, %v52_v3  ;;  %v379_v36 = vpop.f32.mrb[6].mxu1 }
  0xfb   :  { %vm386_vm5 = vcmp.ge.f32.partialorder %v335_v27, 0.0  ;;  %v394_v34 = vmul.f32 0.2, %v335_v27  ;;  %v339_v37 = vpop.f32.mrb[7].mxu0  ;;  %vm388_vm6 = vcmp.ge.f32.partialorder %v376_v30, 0.0  ;;  %v380_v42 = vpop.f32.mrb[7].mxu1 }
  0xfc   :  { %v396_v38 = vmul.f32 0.2, %v376_v30  ;;  %vm387_vm7 = vcmp.ge.f32.partialorder %v337_v31, 0.0  ;;  %v395_v39 = vmul.f32 0.2, %v337_v31  ;;  %vm389_vm8 = vcmp.ge.f32.partialorder %v378_v35, 0.0 }
  0xfd   :  { %v402_v40 = vsel %vm386_vm5, %v335_v27, %v394_v34  ;;  %v397_v41 = vmul.f32 0.2, %v378_v35 }
  0xfe   :  { %v404_v43 = vsel %vm388_vm6, %v376_v30, %v396_v38  ;;  %v403_v44 = vsel %vm387_vm7, %v337_v31, %v395_v39 }
  0xff   :  { %v488_v45 = vpack.c.bf16 %v403_v44, %v402_v40  ;;  %v405_v46 = vsel %vm389_vm8, %v378_v35, %v397_v41 }
 0x100   :  { %v489_v47 = vpack.c.bf16 %v405_v46, %v404_v43 }
 0x101   :  { %440 = vst [vmem:[%s639_s3 + $0x10] sm:$0xff] %v488_v45 }
 0x102   :  { %441 = vst [vmem:[%s639_s3 + $0x18] sm:$0xff] %v489_v47 }

// kernel: generator_forward.11
= control target key start
LH: loop header
LB: loop body
LE: loop exit
PB: predicated region body
PF: predicated region fallthrough
CT: control target
= control target key end

     0   :  { %v252_v1 = vmov 0   ;;  %s336_s1 = inlined_call_operand.vmem [shape: bf16[128,256], index: 1, kind: input, shape index: {}]   ;;  %s337_s2 = inlined_call_operand.vmem [shape: f32[16,1], index: 2, kind: input, shape index: {}]   ;;  %s338_s0 = inlined_call_operand.vmem [shape: bf16[16,128], index: 0, kind: input, shape index: {}]   ;;  %s339_s3 = inlined_call_operand.vmem [shape: bf16[16,256], index: 3, kind: output, shape index: {}]  }
   0x1   :  { %v227_v0 = vld [vmem:[%s336_s1 + $0x4] ss:$8 sps:$4 sm:$0xff]   ;;  %163 = vmatprep.mubr.bf16.mxu0 %v252_v1  ;;  %226 = vset.pattern.permute.xlu0 %v252_v1  ;;  %v229_v2 = vld [vmem:[%s336_s1] ss:$8 sps:$4 sm:$0xff]   ;;  %v230_v3 = vld [vmem:[%s336_s1 + $0x14] ss:$8 sps:$4 sm:$0xff]  }
   0x2   :  { %131 = vmatprep.subr.bf16.mxu0 %v227_v0  ;;  %v232_v4 = vld [vmem:[%s336_s1 + $0x10] ss:$8 sps:$4 sm:$0xff]   ;;  %v233_v5 = vld [vmem:[%s336_s1 + $0x24] ss:$8 sps:$4 sm:$0xff]   ;;  %v235_v6 = vld [vmem:[%s336_s1 + $0x20] ss:$8 sps:$4 sm:$0xff]  }
   0x3   :  { %132 = vmatpush1.bf16.msra.mxu0 %v229_v2  ;;  %v236_v7 = vld [vmem:[%s336_s1 + $0x34] ss:$8 sps:$4 sm:$0xff]   ;;  %v238_v8 = vld [vmem:[%s336_s1 + $0x30] ss:$8 sps:$4 sm:$0xff]   ;;  %v33_v9 = vld [vmem:[%s337_s2] sm:$0xff] }
   0x4   :  { %133 = vmatprep.subr.bf16.mxu0 %v230_v3  ;;  %v239_v10 = vld [vmem:[%s336_s1 + $0x44] ss:$8 sps:$4 sm:$0xff]   ;;  %37 = vperm.xlu0 %226, %v33_v9   ;;  %v241_v12 = vld [vmem:[%s336_s1 + $0x40] ss:$8 sps:$4 sm:$0xff]   ;;  %v242_v13 = vld [vmem:[%s336_s1 + $0x54] ss:$8 sps:$4 sm:$0xff]  }
   0x5   :  { %v34_v11 = vld [vmem:[%s337_s2 + $0x8] sm:$0xff]  ;;  %v244_v14 = vld [vmem:[%s336_s1 + $0x50] ss:$8 sps:$4 sm:$0xff]   ;;  %v248_v17 = vld [vmem:[%s336_s1 + $0x74] ss:$8 sps:$4 sm:$0xff]  }
   0x6   :  { %v245_v15 = vld [vmem:[%s336_s1 + $0x64] ss:$8 sps:$4 sm:$0xff]   ;;  %v247_v16 = vld [vmem:[%s336_s1 + $0x60] ss:$8 sps:$4 sm:$0xff]   ;;  %v250_v18 = vld [vmem:[%s336_s1 + $0x70] ss:$8 sps:$4 sm:$0xff]  }
   0x7   :  { %134 = vmatpush1.bf16.msra.mxu0 %v232_v4  ;;  %v251_v19 = vld [vmem:[%s338_s0] sm:$0xff]  }
   0x8   :  { %135 = vmatprep.subr.bf16.mxu0 %v233_v5  ;;  %42 = vperm.xlu0 %226, %v34_v11  }
   0xb   :  { %136 = vmatpush1.bf16.msra.mxu0 %v235_v6 }
   0xc   :  { %137 = vmatprep.subr.bf16.mxu0 %v236_v7 }
   0xf   :  { %138 = vmatpush1.bf16.msra.mxu0 %v238_v8 }
  0x10   :  { %139 = vmatprep.subr.bf16.mxu0 %v239_v10 }
  0x13   :  { %140 = vmatpush1.bf16.msra.mxu0 %v241_v12 }
  0x14   :  { %141 = vmatprep.subr.bf16.mxu0 %v242_v13 }
  0x17   :  { %142 = vmatpush1.bf16.msra.mxu0 %v244_v14 }
  0x18   :  { %143 = vmatprep.subr.bf16.mxu0 %v245_v15 }
  0x1b   :  { %144 = vmatpush1.bf16.msra.mxu0 %v247_v16 }
  0x1c   :  { %145 = vmatprep.subr.bf16.mxu0 %v248_v17 }
  0x1f   :  { %146 = vmatpush1.bf16.msra.mxu0 %v250_v18 }
  0x22   :  { %164 = vmatmul.mubr.bf16.vlgmr.msra.gmra.mrb[0].mxu0 %v251_v19 }
  0x83   :  { %v38_v20 = vpop.permute.xlu0 %37 }
  0x87   :  { %v43_v24 = vpop.permute.xlu0 %42 }
  0xf5   :  { %v165_v21 = vpop.f32.mrb[0].mxu0 }
  0xf6   :  { %v166_v22 = vadd.f32 %v165_v21, %v38_v20  ;;  %v167_v23 = vpop.f32.mrb[1].mxu0 }
  0xf7   :  { %v168_v25 = vadd.f32 %v167_v23, %v38_v20  ;;  %v169_v26 = vpop.f32.mrb[2].mxu0 }
  0xf8   :  { %vm174_vm0 = vcmp.ge.f32.partialorder %v166_v22, 0.0  ;;  %v178_v27 = vmul.f32 0.2, %v166_v22  ;;  %v170_v28 = vadd.f32 %v169_v26, %v43_v24  ;;  %v171_v29 = vpop.f32.mrb[3].mxu0 }
  0xf9   :  { %vm175_vm1 = vcmp.ge.f32.partialorder %v168_v25, 0.0  ;;  %v179_v30 = vmul.f32 0.2, %v168_v25  ;;  %v172_v31 = vadd.f32 %v171_v29, %v43_v24 }
  0xfa   :  { %v182_v32 = vsel %vm174_vm0, %v166_v22, %v178_v27  ;;  %vm176_vm2 = vcmp.ge.f32.partialorder %v170_v28, 0.0  ;;  %v180_v33 = vmul.f32 0.2, %v170_v28 }
  0xfb   :  { %v183_v34 = vsel %vm175_vm1, %v168_v25, %v179_v30  ;;  %vm177_vm3 = vcmp.ge.f32.partialorder %v172_v31, 0.0  ;;  %v181_v35 = vmul.f32 0.2, %v172_v31 }
  0xfc   :  { %v223_v36 = vpack.c.bf16 %v183_v34, %v182_v32  ;;  %v184_v37 = vsel %vm176_vm2, %v170_v28, %v180_v33 }
  0xfd   :  { %v185_v38 = vsel %vm177_vm3, %v172_v31, %v181_v35 }
  0xfe   :  { %198 = vst [vmem:[%s339_s3] sm:$0xff] %v223_v36  ;;  %v224_v39 = vpack.c.bf16 %v185_v38, %v184_v37 }
 0x100   :  { %199 = vst [vmem:[%s339_s3 + $0x8] sm:$0xff] %v224_v39 }

// kernel: generator_forward.12
= control target key start
LH: loop header
LB: loop body
LE: loop exit
PB: predicated region body
PF: predicated region fallthrough
CT: control target
= control target key end

     0   :  { %v595_v1 = vmov 0   ;;  %vm293_vm0 = vcmask 261120   ;;  %s768_s1 = inlined_call_operand.vmem [shape: bf16[288,256], index: 1, kind: input, shape index: {}]   ;;  %s769_s0 = inlined_call_operand.vmem [shape: bf16[32,288], index: 0, kind: input, shape index: {}]   ;;  %s770_s2 = inlined_call_operand.vmem [shape: f32[32,1], index: 2, kind: input, shape index: {}]   ;;  %s771_s3 = inlined_call_operand.vmem [shape: bf16[32,256], index: 3, kind: output, shape index: {}]  }
   0x1   :  { %v533_v0 = vld [vmem:[%s768_s1 + $0x4] ss:$8 sps:$4 sm:$0xff]   ;;  %385 = vmatprep.mubr.bf16.mxu0 %v595_v1  ;;  %531 = vset.pattern.permute.xlu0 %v595_v1  ;;  %v535_v2 = vld [vmem:[%s768_s1] ss:$8 sps:$4 sm:$0xff]   ;;  %v536_v3 = vld [vmem:[%s768_s1 + $0x14] ss:$8 sps:$4 sm:$0xff]  }
   0x2   :  { %532 = vset.pattern.permute.xlu1 %v595_v1  ;;  %300 = vmatprep.subr.bf16.mxu1 %v533_v0  ;;  %v538_v4 = vld [vmem:[%s768_s1 + $0x10] ss:$8 sps:$4 sm:$0xff]   ;;  %v539_v5 = vld [vmem:[%s768_s1 + $0x24] ss:$8 sps:$4 sm:$0xff]   ;;  %v541_v6 = vld [vmem:[%s768_s1 + $0x20] ss:$8 sps:$4 sm:$0xff]  }
   0x3   :  { %301 = vmatpush1.bf16.msra.mxu1 %v535_v2  ;;  %v542_v7 = vld [vmem:[%s768_s1 + $0x34] ss:$8 sps:$4 sm:$0xff]   ;;  %v544_v8 = vld [vmem:[%s768_s1 + $0x30] ss:$8 sps:$4 sm:$0xff]   ;;  %v545_v9 = vld [vmem:[%s768_s1 + $0x44] ss:$8 sps:$4 sm:$0xff]  }
   0x4   :  { %302 = vmatprep.subr.bf16.mxu1 %v536_v3  ;;  %v547_v10 = vld [vmem:[%s768_s1 + $0x40] ss:$8 sps:$4 sm:$0xff]   ;;  %v548_v11 = vld [vmem:[%s768_s1 + $0x54] ss:$8 sps:$4 sm:$0xff]   ;;  %v550_v12 = vld [vmem:[%s768_s1 + $0x50] ss:$8 sps:$4 sm:$0xff]  }
   0x5   :  { %v575_v13 = vld [vmem:[%s768_s1 + $0x104] ss:$8 sps:$4 sm:$0xff]   ;;  %v579_v15 = vld [vmem:[%s768_s1 + $0x100] ss:$8 sps:$4 sm:$0xff]   ;;  %v581_v16 = vld [vmem:[%s768_s1 + $0x114] ss:$8 sps:$4 sm:$0xff]  }
   0x6   :  { %v551_v14 = vld [vmem:[%s768_s1 + $0x64] ss:$8 sps:$4 sm:$0xff]   ;;  %353 = vmatprep.subr.bf16.mxu0 %v575_v13  ;;  %v553_v17 = vld [vmem:[%s768_s1 + $0x60] ss:$8 sps:$4 sm:$0xff]   ;;  %v585_v18 = vld [vmem:[%s768_s1 + $0x110] ss:$8 sps:$4 sm:$0xff]  }
   0x7   :  { %303 = vmatpush1.bf16.msra.mxu1 %v538_v4  ;;  %354 = vmatpush1.bf16.msra.mxu0 %v579_v15  ;;  %v554_v19 = vld [vmem:[%s768_s1 + $0x74] ss:$8 sps:$4 sm:$0xff]   ;;  %v589_v20 = vld [vmem:[%s769_s0 + $0x4] ss:$12 sps:$4 sm:$0xff]   ;;  %v60_v26 = vld [vmem:[%s770_s2 + $0x8] sm:$0xff] }
   0x8   :  { %304 = vmatprep.subr.bf16.mxu1 %v539_v5  ;;  %355 = vmatprep.subr.bf16.mxu0 %v581_v16  ;;  %v590_v21 = vld [vmem:[%s769_s0 + $0x8] ss:$12 sps:$4 sm:$0xff]   ;;  %v556_v22 = vld [vmem:[%s768_s1 + $0x70] ss:$8 sps:$4 sm:$0xff]   ;;  %v557_v23 = vld [vmem:[%s768_s1 + $0x84] ss:$8 sps:$4 sm:$0xff]  }
   0x9   :  { %332 = vmatprep.mubr.bf16.mxu1 %v589_v20  ;;  %v59_v24 = vld [vmem:[%s770_s2] sm:$0xff]  ;;  %v61_v25 = vld [vmem:[%s770_s2 + $0x10] sm:$0xff]  ;;  %v62_v28 = vld [vmem:[%s770_s2 + $0x18] sm:$0xff] }
   0xa   :  { %65 = vperm.xlu0 %531, %v59_v24   ;;  %75 = vperm.xlu1 %532, %v61_v25   ;;  %v559_v27 = vld [vmem:[%s768_s1 + $0x80] ss:$8 sps:$4 sm:$0xff]   ;;  %v560_v29 = vld [vmem:[%s768_s1 + $0x94] ss:$8 sps:$4 sm:$0xff]   ;;  %v562_v31 = vld [vmem:[%s768_s1 + $0x90] ss:$8 sps:$4 sm:$0xff]  }
   0xb   :  { %305 = vmatpush1.bf16.msra.mxu1 %v541_v6  ;;  %356 = vmatpush1.bf16.msra.mxu0 %v585_v18  ;;  %v593_v30 = vld [vmem:[%s769_s0 + $0x20] ss:$12 sps:$4 sm:$0xff]   ;;  %v566_v34 = vld [vmem:[%s768_s1 + $0xb4] ss:$8 sps:$4 sm:$0xff]   ;;  %v568_v35 = vld [vmem:[%s768_s1 + $0xb0] ss:$8 sps:$4 sm:$0xff]  }
   0xc   :  { %306 = vmatprep.subr.bf16.mxu1 %v542_v7  ;;  %v563_v32 = vld [vmem:[%s768_s1 + $0xa4] ss:$8 sps:$4 sm:$0xff]   ;;  %v565_v33 = vld [vmem:[%s768_s1 + $0xa0] ss:$8 sps:$4 sm:$0xff]   ;;  %v572_v38 = vld [vmem:[%s768_s1 + $0xd4] ss:$8 sps:$4 sm:$0xff]  }
   0xd   :  { %v569_v36 = vld [vmem:[%s768_s1 + $0xc4] ss:$8 sps:$4 sm:$0xff]   ;;  %v571_v37 = vld [vmem:[%s768_s1 + $0xc0] ss:$8 sps:$4 sm:$0xff]   ;;  %v574_v39 = vld [vmem:[%s768_s1 + $0xd0] ss:$8 sps:$4 sm:$0xff]  }
   0xe   :  { %504 = vmatmul.mubr.msk.bf16.vlgmr.msra.gmra.mrb[0].mxu0 %vm293_vm0, %v590_v21  ;;  %70 = vperm.xlu0 %531, %v60_v26   ;;  %v577_v40 = vld [vmem:[%s768_s1 + $0xe4] ss:$8 sps:$4 sm:$0xff]   ;;  %v580_v41 = vld [vmem:[%s768_s1 + $0xe0] ss:$8 sps:$4 sm:$0xff]   ;;  %v583_v42 = vld [vmem:[%s768_s1 + $0xf4] ss:$8 sps:$4 sm:$0xff]  }
   0xf   :  { %307 = vmatpush1.bf16.msra.mxu1 %v544_v8  ;;  %395 = vmatprep.mubr.bf16.mxu0 %v595_v1  ;;  %v586_v43 = vld [vmem:[%s768_s1 + $0xf0] ss:$8 sps:$4 sm:$0xff]   ;;  %v587_v44 = vld [vmem:[%s769_s0] ss:$12 sps:$4 sm:$0xff]   ;;  %v591_v45 = vld [vmem:[%s769_s0 + $0x1c] ss:$12 sps:$4 sm:$0xff]  }
  0x10   :  { %308 = vmatprep.subr.bf16.mxu1 %v545_v9  ;;  %80 = vperm.xlu1 %532, %v62_v28   ;;  %v594_v46 = vld [vmem:[%s769_s0 + $0x18] ss:$12 sps:$4 sm:$0xff]  }
  0x13   :  { %309 = vmatpush1.bf16.msra.mxu1 %v547_v10 }
  0x14   :  { %310 = vmatprep.subr.bf16.mxu1 %v548_v11 }
  0x16   :  { %505 = vmatmul.mubr.msk.bf16.gmra.mrb[4].mxu0 %vm293_vm0, %v593_v30 }
  0x17   :  { %311 = vmatpush1.bf16.msra.mxu1 %v550_v12 }
  0x18   :  { %312 = vmatprep.subr.bf16.mxu1 %v551_v14 }
  0x1b   :  { %313 = vmatpush1.bf16.msra.mxu1 %v553_v17 }
  0x1c   :  { %314 = vmatprep.subr.bf16.mxu1 %v554_v19 }
  0x1f   :  { %315 = vmatpush1.bf16.msra.mxu1 %v556_v22 }
  0x20   :  { %316 = vmatprep.subr.bf16.mxu1 %v557_v23 }
  0x23   :  { %317 = vmatpush1.bf16.msra.mxu1 %v559_v27 }
  0x24   :  { %318 = vmatprep.subr.bf16.mxu1 %v560_v29 }
  0x27   :  { %319 = vmatpush1.bf16.msra.mxu1 %v562_v31 }
  0x28   :  { %320 = vmatprep.subr.bf16.mxu1 %v563_v32 }
  0x2b   :  { %321 = vmatpush1.bf16.msra.mxu1 %v565_v33 }
  0x2c   :  { %322 = vmatprep.subr.bf16.mxu1 %v566_v34 }
  0x2f   :  { %323 = vmatpush1.bf16.msra.mxu1 %v568_v35 }
  0x30   :  { %324 = vmatprep.subr.bf16.mxu1 %v569_v36 }
  0x33   :  { %325 = vmatpush1.bf16.msra.mxu1 %v571_v37 }
  0x34   :  { %326 = vmatprep.subr.bf16.mxu1 %v572_v38 }
  0x37   :  { %327 = vmatpush1.bf16.msra.mxu1 %v574_v39 }
  0x38   :  { %328 = vmatprep.subr.bf16.mxu1 %v577_v40 }
  0x3b   :  { %329 = vmatpush1.bf16.msra.mxu1 %v580_v41 }
  0x3c   :  { %330 = vmatprep.subr.bf16.mxu1 %v583_v42 }
  0x3f   :  { %331 = vmatpush1.bf16.msra.mxu1 %v586_v43 }
  0x42   :  { %333 = vmatmul.mubr.bf16.vlgmr.msra.gmra.mrb[0].mxu1 %v587_v44 }
  0x43   :  { %342 = vmatprep.mubr.bf16.mxu1 %v591_v45 }
  0x4a   :  { %343 = vmatmul.mubr.bf16.gmra.mrb[4].mxu1 %v594_v46 }
  0x89   :  { %v66_v55 = vpop.permute.xlu0 %65  ;;  %v76_v2 = vpop.permute.xlu1 %75 }
  0x8d   :  { %v71_v57 = vpop.permute.xlu0 %70 }
  0x8f   :  { %v81_v18 = vpop.permute.xlu1 %80 }
  0xe1   :  { %v387_v47 = vpop.f32.mrb[0].mxu0 }
  0xe2   :  { %v389_v48 = vpop.f32.mrb[1].mxu0 }
  0xe3   :  { %v391_v49 = vpop.f32.mrb[2].mxu0 }
  0xe4   :  { %v393_v50 = vpop.f32.mrb[3].mxu0 }
  0xe9   :  { %v397_v51 = vpop.f32.mrb[4].mxu0 }
  0xea   :  { %v399_v52 = vpop.f32.mrb[5].mxu0 }
  0xeb   :  { %v401_v53 = vpop.f32.mrb[6].mxu0 }
  0xec   :  { %v403_v54 = vpop.f32.mrb[7].mxu0 }
 0x115   :  { %v334_v56 = vpop.f32.mrb[0].mxu1 }
 0x116   :  { %v335_v58 = vadd.f32 %v334_v56, %v66_v55  ;;  %v336_v59 = vpop.f32.mrb[1].mxu1 }
 0x117   :  { %v337_v60 = vadd.f32 %v336_v59, %v66_v55  ;;  %v338_v61 = vpop.f32.mrb[2].mxu1 }
 0x118   :  { %v388_v62 = vadd.f32 %v387_v47, %v335_v58  ;;  %v339_v63 = vadd.f32 %v338_v61, %v71_v57  ;;  %v340_v0 = vpop.f32.mrb[3].mxu1 }
 0x119   :  { %v390_v1 = vadd.f32 %v389_v48, %v337_v60  ;;  %v341_v3 = vadd.f32 %v340_v0, %v71_v57 }
 0x11a   :  { %vm406_vm1 = vcmp.ge.f32.partialorder %v388_v62, 0.0  ;;  %v414_v4 = vmul.f32 0.2, %v388_v62  ;;  %v392_v5 = vadd.f32 %v391_v49, %v339_v63 }
 0x11b   :  { %vm407_vm2 = vcmp.ge.f32.partialorder %v390_v1, 0.0  ;;  %v415_v6 = vmul.f32 0.2, %v390_v1  ;;  %v394_v7 = vadd.f32 %v393_v50, %v341_v3 }
 0x11c   :  { %v422_v8 = vsel %vm406_vm1, %v388_v62, %v414_v4  ;;  %vm408_vm3 = vcmp.ge.f32.partialorder %v392_v5, 0.0  ;;  %v416_v9 = vmul.f32 0.2, %v392_v5 }
 0x11d   :  { %v423_v10 = vsel %vm407_vm2, %v390_v1, %v415_v6  ;;  %vm409_vm4 = vcmp.ge.f32.partialorder %v394_v7, 0.0  ;;  %v417_v11 = vmul.f32 0.2, %v394_v7  ;;  %v344_v12 = vpop.f32.mrb[4].mxu1 }
 0x11e   :  { %v510_v13 = vpack.c.bf16 %v423_v10, %v422_v8  ;;  %v424_v14 = vsel %vm408_vm3, %v392_v5, %v416_v9  ;;  %v345_v15 = vadd.f32 %v344_v12, %v76_v2  ;;  %v346_v16 = vpop.f32.mrb[5].mxu1 }
 0x11f   :  { %v425_v17 = vsel %vm409_vm4, %v394_v7, %v417_v11  ;;  %v347_v19 = vadd.f32 %v346_v16, %v76_v2  ;;  %v348_v20 = vpop.f32.mrb[6].mxu1 }
 0x120   :  { %454 = vst [vmem:[%s771_s3] sm:$0xff] %v510_v13  ;;  %v511_v21 = vpack.c.bf16 %v425_v17, %v424_v14  ;;  %v398_v22 = vadd.f32 %v397_v51, %v345_v15  ;;  %v349_v23 = vadd.f32 %v348_v20, %v81_v18  ;;  %v350_v24 = vpop.f32.mrb[7].mxu1 }
 0x121   :  { %v400_v25 = vadd.f32 %v399_v52, %v347_v19  ;;  %v351_v26 = vadd.f32 %v350_v24, %v81_v18 }
 0x122   :  { %455 = vst [vmem:[%s771_s3 + $0x8] sm:$0xff] %v511_v21  ;;  %vm410_vm5 = vcmp.ge.f32.partialorder %v398_v22, 0.0  ;;  %v418_v27 = vmul.f32 0.2, %v398_v22  ;;  %v402_v28 = vadd.f32 %v401_v53, %v349_v23 }
 0x123   :  { %vm411_vm6 = vcmp.ge.f32.partialorder %v400_v25, 0.0  ;;  %v419_v29 = vmul.f32 0.2, %v400_v25  ;;  %v404_v30 = vadd.f32 %v403_v54, %v351_v26 }
 0x124   :  { %v426_v31 = vsel %vm410_vm5, %v398_v22, %v418_v27  ;;  %vm412_vm7 = vcmp.ge.f32.partialorder %v402_v28, 0.0  ;;  %v420_v32 = vmul.f32 0.2, %v402_v28 }
 0x125   :  { %v427_v33 = vsel %vm411_vm6, %v400_v25, %v419_v29  ;;  %vm413_vm8 = vcmp.ge.f32.partialorder %v404_v30, 0.0  ;;  %v421_v34 = vmul.f32 0.2, %v404_v30 }
 0x126   :  { %v512_v35 = vpack.c.bf16 %v427_v33, %v426_v31  ;;  %v428_v36 = vsel %vm412_vm7, %v402_v28, %v420_v32 }
 0x127   :  { %v429_v37 = vsel %vm413_vm8, %v404_v30, %v421_v34 }
 0x128   :  { %456 = vst [vmem:[%s771_s3 + $0x10] sm:$0xff] %v512_v35  ;;  %v513_v38 = vpack.c.bf16 %v429_v37, %v428_v36 }
 0x12a   :  { %457 = vst [vmem:[%s771_s3 + $0x18] sm:$0xff] %v513_v38 }

// kernel: generator_forward.13
= control target key start
LH: loop header
LB: loop body
LE: loop exit
PB: predicated region body
PF: predicated region fallthrough
CT: control target
= control target key end

     0   :  { %v853_v3 = vmov 0   ;;  %vm470_vm0 = vcmask 130048   ;;  %s1152_s1 = inlined_call_operand.vmem [shape: bf16[144,1024], index: 1, kind: input, shape index: {}]   ;;  %s1153_s0 = inlined_call_operand.vmem [shape: bf16[16,144], index: 0, kind: input, shape index: {}]   ;;  %s1154_s2 = inlined_call_operand.vmem [shape: f32[16,1], index: 2, kind: input, shape index: {}]   ;;  %s1155_s3 = inlined_call_operand.vmem [shape: bf16[16,1024], index: 3, kind: output, shape index: {}]  }
   0x1   :  { %v17_v0 = vld [vmem:[%s1152_s1] sm:$0xff]  ;;  %v18_v2 = vld [vmem:[%s1152_s1 + $0x8] sm:$0xff]  ;;  %849 = vset.pattern.permute.xlu0 %v853_v3 }
   0x2   :  { %v21_v1 = vld [vmem:[%s1152_s1 + $0x20] sm:$0xff]  ;;  %v22_v5 = vld [vmem:[%s1152_s1 + $0x28] sm:$0xff] }
   0x3   :  { %v757_v4 = vcombine.high %v17_v0, %v21_v1  ;;  %v756_v6 = vcombine.low %v17_v0, %v21_v1  ;;  %v25_v7 = vld [vmem:[%s1152_s1 + $0x40] sm:$0xff]  ;;  %v759_v9 = vcombine.high %v18_v2, %v22_v5  ;;  %v758_v10 = vcombine.low %v18_v2, %v22_v5  ;;  %v26_v12 = vld [vmem:[%s1152_s1 + $0x48] sm:$0xff] }
   0x4   :  { %v29_v8 = vld [vmem:[%s1152_s1 + $0x60] sm:$0xff]  ;;  %v30_v13 = vld [vmem:[%s1152_s1 + $0x68] sm:$0xff] }
   0x5   :  { %v765_v11 = vcombine.high %v25_v7, %v29_v8  ;;  %v33_v14 = vld [vmem:[%s1152_s1 + $0x80] sm:$0xff]  ;;  %474 = vmatprep.subr.bf16.mxu0 %v757_v4  ;;  %v767_v15 = vcombine.high %v26_v12, %v30_v13  ;;  %v34_v17 = vld [vmem:[%s1152_s1 + $0x88] sm:$0xff]  ;;  %517 = vmatprep.subr.bf16.mxu1 %v759_v9  ;;  %v764_v19 = vcombine.low %v25_v7, %v29_v8 }
   0x6   :  { %v37_v16 = vld [vmem:[%s1152_s1 + $0xa0] sm:$0xff]  ;;  %v38_v18 = vld [vmem:[%s1152_s1 + $0xa8] sm:$0xff]  ;;  %475 = vmatpush1.bf16.msra.mxu0 %v756_v6  ;;  %518 = vmatpush1.bf16.msra.mxu1 %v758_v10  ;;  %v766_v20 = vcombine.low %v26_v12, %v30_v13  ;;  %v19_v10 = vld [vmem:[%s1152_s1 + $0x10] sm:$0xff] }
   0x7   :  { %476 = vmatprep.subr.bf16.mxu0 %v765_v11  ;;  %v773_v21 = vcombine.high %v33_v14, %v37_v16  ;;  %519 = vmatprep.subr.bf16.mxu1 %v767_v15  ;;  %v775_v22 = vcombine.high %v34_v17, %v38_v18  ;;  %v41_v23 = vld [vmem:[%s1152_s1 + $0xc0] sm:$0xff]  ;;  %v42_v25 = vld [vmem:[%s1152_s1 + $0xc8] sm:$0xff]  ;;  %v772_v27 = vcombine.low %v33_v14, %v37_v16  ;;  %v23_v11 = vld [vmem:[%s1152_s1 + $0x30] sm:$0xff] }
   0x8   :  { %v45_v24 = vld [vmem:[%s1152_s1 + $0xe0] sm:$0xff]  ;;  %v46_v26 = vld [vmem:[%s1152_s1 + $0xe8] sm:$0xff]  ;;  %v774_v28 = vcombine.low %v34_v17, %v38_v18  ;;  %v20_v12 = vld [vmem:[%s1152_s1 + $0x18] sm:$0xff]  ;;  %v761_v16 = vcombine.high %v19_v10, %v23_v11 }
   0x9   :  { %v781_v29 = vcombine.high %v41_v23, %v45_v24  ;;  %v783_v30 = vcombine.high %v42_v25, %v46_v26  ;;  %v49_v31 = vld [vmem:[%s1152_s1 + $0x100] sm:$0xff]  ;;  %v50_v33 = vld [vmem:[%s1152_s1 + $0x108] sm:$0xff]  ;;  %v780_v35 = vcombine.low %v41_v23, %v45_v24  ;;  %v782_v37 = vcombine.low %v42_v25, %v46_v26  ;;  %v24_v13 = vld [vmem:[%s1152_s1 + $0x38] sm:$0xff] }
   0xa   :  { %477 = vmatpush1.bf16.msra.mxu0 %v764_v19  ;;  %520 = vmatpush1.bf16.msra.mxu1 %v766_v20  ;;  %v53_v32 = vld [vmem:[%s1152_s1 + $0x120] sm:$0xff]  ;;  %v54_v34 = vld [vmem:[%s1152_s1 + $0x128] sm:$0xff]  ;;  %v763_v17 = vcombine.high %v20_v12, %v24_v13  ;;  %v27_v18 = vld [vmem:[%s1152_s1 + $0x50] sm:$0xff]  ;;  %v760_v23 = vcombine.low %v19_v10, %v23_v11  ;;  %v762_v24 = vcombine.low %v20_v12, %v24_v13 }
   0xb   :  { %478 = vmatprep.subr.bf16.mxu0 %v773_v21  ;;  %521 = vmatprep.subr.bf16.mxu1 %v775_v22  ;;  %v937_v36 = vld [vmem:[%s1153_s0 + $0x4] ss:$8 sps:$4 sm:$0xff]   ;;  %v789_v38 = vcombine.high %v49_v31, %v53_v32  ;;  %v791_v39 = vcombine.high %v50_v33, %v54_v34  ;;  %v788_v44 = vcombine.low %v49_v31, %v53_v32  ;;  %v31_v19 = vld [vmem:[%s1152_s1 + $0x70] sm:$0xff]  ;;  %v1018_v20 = vld [vmem:[%s1153_s0] ss:$8 sps:$4 sm:$0xff]  }
   0xc   :  { %v57_v40 = vld [vmem:[%s1152_s1 + $0x140] sm:$0xff]  ;;  %828 = vmatprep.mubr.msk.bf16.mxu0 %vm470_vm0, %v937_v36  ;;  %v58_v42 = vld [vmem:[%s1152_s1 + $0x148] sm:$0xff]  ;;  %829 = vmatprep.mubr.msk.bf16.mxu1 %vm470_vm0, %v937_v36  ;;  %v790_v45 = vcombine.low %v50_v33, %v54_v34  ;;  %v28_v21 = vld [vmem:[%s1152_s1 + $0x58] sm:$0xff]  ;;  %v769_v25 = vcombine.high %v27_v18, %v31_v19  ;;  %v768_v31 = vcombine.low %v27_v18, %v31_v19 }
   0xd   :  { %v61_v41 = vld [vmem:[%s1152_s1 + $0x160] sm:$0xff]  ;;  %v62_v43 = vld [vmem:[%s1152_s1 + $0x168] sm:$0xff]  ;;  %v32_v22 = vld [vmem:[%s1152_s1 + $0x78] sm:$0xff] }
   0xe   :  { %479 = vmatpush1.bf16.msra.mxu0 %v772_v27  ;;  %522 = vmatpush1.bf16.msra.mxu1 %v774_v28  ;;  %v797_v46 = vcombine.high %v57_v40, %v61_v41  ;;  %v799_v47 = vcombine.high %v58_v42, %v62_v43  ;;  %v65_v48 = vld [vmem:[%s1152_s1 + $0x180] sm:$0xff]  ;;  %v66_v50 = vld [vmem:[%s1152_s1 + $0x188] sm:$0xff]  ;;  %v796_v52 = vcombine.low %v57_v40, %v61_v41  ;;  %v35_v27 = vld [vmem:[%s1152_s1 + $0x90] sm:$0xff] }
   0xf   :  { %480 = vmatprep.subr.bf16.mxu0 %v781_v29  ;;  %523 = vmatprep.subr.bf16.mxu1 %v783_v30  ;;  %v69_v49 = vld [vmem:[%s1152_s1 + $0x1a0] sm:$0xff]  ;;  %v70_v51 = vld [vmem:[%s1152_s1 + $0x1a8] sm:$0xff]  ;;  %v798_v53 = vcombine.low %v58_v42, %v62_v43  ;;  %v771_v26 = vcombine.high %v28_v21, %v32_v22  ;;  %v39_v28 = vld [vmem:[%s1152_s1 + $0xb0] sm:$0xff]  ;;  %v770_v32 = vcombine.low %v28_v21, %v32_v22 }
  0x10   :  { %v805_v54 = vcombine.high %v65_v48, %v69_v49  ;;  %v807_v55 = vcombine.high %v66_v50, %v70_v51  ;;  %v73_v56 = vld [vmem:[%s1152_s1 + $0x1c0] sm:$0xff]  ;;  %v74_v58 = vld [vmem:[%s1152_s1 + $0x1c8] sm:$0xff]  ;;  %v804_v60 = vcombine.low %v65_v48, %v69_v49  ;;  %v806_v61 = vcombine.low %v66_v50, %v70_v51  ;;  %v36_v29 = vld [vmem:[%s1152_s1 + $0x98] sm:$0xff] }
  0x11   :  { %v77_v57 = vld [vmem:[%s1152_s1 + $0x1e0] sm:$0xff]  ;;  %v78_v59 = vld [vmem:[%s1152_s1 + $0x1e8] sm:$0xff]  ;;  %v40_v30 = vld [vmem:[%s1152_s1 + $0xb8] sm:$0xff]  ;;  %v777_v33 = vcombine.high %v35_v27, %v39_v28  ;;  %v776_v40 = vcombine.low %v35_v27, %v39_v28 }
  0x12   :  { %481 = vmatpush1.bf16.msra.mxu0 %v780_v35  ;;  %524 = vmatpush1.bf16.msra.mxu1 %v782_v37  ;;  %v813_v62 = vcombine.high %v73_v56, %v77_v57  ;;  %v89_v63 = vld [vmem:[%s1154_s2] sm:$0xff]  ;;  %v815_v0 = vcombine.high %v74_v58, %v78_v59  ;;  %v82_v3 = vld [vmem:[%s1152_s1 + $0x208] sm:$0xff]  ;;  %v812_v6 = vcombine.low %v73_v56, %v77_v57  ;;  %v43_v35 = vld [vmem:[%s1152_s1 + $0xd0] sm:$0xff] }
  0x13   :  { %482 = vmatprep.subr.bf16.mxu0 %v789_v38  ;;  %525 = vmatprep.subr.bf16.mxu1 %v791_v39  ;;  %v81_v1 = vld [vmem:[%s1152_s1 + $0x200] sm:$0xff]  ;;  %v86_v4 = vld [vmem:[%s1152_s1 + $0x228] sm:$0xff]  ;;  %v814_v7 = vcombine.low %v74_v58, %v78_v59  ;;  %v779_v34 = vcombine.high %v36_v29, %v40_v30  ;;  %v47_v37 = vld [vmem:[%s1152_s1 + $0xf0] sm:$0xff]  ;;  %v778_v41 = vcombine.low %v36_v29, %v40_v30 }
  0x14   :  { %v85_v2 = vld [vmem:[%s1152_s1 + $0x220] sm:$0xff]  ;;  %93 = vperm.xlu0 %849, %v89_v63   ;;  %v90_v5 = vld [vmem:[%s1154_s2 + $0x8] sm:$0xff]  ;;  %v823_v9 = vcombine.high %v82_v3, %v86_v4  ;;  %v822_v15 = vcombine.low %v82_v3, %v86_v4  ;;  %v44_v38 = vld [vmem:[%s1152_s1 + $0xd8] sm:$0xff]  ;;  %v785_v42 = vcombine.high %v43_v35, %v47_v37 }
  0x15   :  { %v821_v8 = vcombine.high %v81_v1, %v85_v2  ;;  %v820_v14 = vcombine.low %v81_v1, %v85_v2  ;;  %v48_v39 = vld [vmem:[%s1152_s1 + $0xf8] sm:$0xff]  ;;  %v59_v51 = vld [vmem:[%s1152_s1 + $0x150] sm:$0xff] }
  0x16   :  { %483 = vmatpush1.bf16.msra.mxu0 %v788_v44  ;;  %526 = vmatpush1.bf16.msra.mxu1 %v790_v45  ;;  %v787_v43 = vcombine.high %v44_v38, %v48_v39  ;;  %v51_v44 = vld [vmem:[%s1152_s1 + $0x110] sm:$0xff]  ;;  %v786_v48 = vcombine.low %v44_v38, %v48_v39  ;;  %v84_v13 = vld [vmem:[%s1152_s1 + $0x218] sm:$0xff] }
  0x17   :  { %484 = vmatprep.subr.bf16.mxu0 %v797_v46  ;;  %527 = vmatprep.subr.bf16.mxu1 %v799_v47  ;;  %v55_v45 = vld [vmem:[%s1152_s1 + $0x130] sm:$0xff]  ;;  %v56_v46 = vld [vmem:[%s1152_s1 + $0x138] sm:$0xff]  ;;  %v784_v47 = vcombine.low %v43_v35, %v47_v37 }
  0x18   :  { %98 = vperm.xlu0 %849, %v90_v5   ;;  %v793_v49 = vcombine.high %v51_v44, %v55_v45  ;;  %v67_v59 = vld [vmem:[%s1152_s1 + $0x190] sm:$0xff]  ;;  %v76_v5 = vld [vmem:[%s1152_s1 + $0x1d8] sm:$0xff] }
  0x19   :  { %v75_v3 = vld [vmem:[%s1152_s1 + $0x1d0] sm:$0xff] }
  0x1a   :  { %485 = vmatpush1.bf16.msra.mxu0 %v796_v52  ;;  %528 = vmatpush1.bf16.msra.mxu1 %v798_v53  ;;  %v63_v52 = vld [vmem:[%s1152_s1 + $0x170] sm:$0xff]  ;;  %v60_v53 = vld [vmem:[%s1152_s1 + $0x158] sm:$0xff] }
  0x1b   :  { %486 = vmatprep.subr.bf16.mxu0 %v805_v54  ;;  %529 = vmatprep.subr.bf16.mxu1 %v807_v55  ;;  %v64_v54 = vld [vmem:[%s1152_s1 + $0x178] sm:$0xff]  ;;  %v792_v55 = vcombine.low %v51_v44, %v55_v45  ;;  %v801_v57 = vcombine.high %v59_v51, %v63_v52  ;;  %v800_v63 = vcombine.low %v59_v51, %v63_v52  ;;  %v79_v4 = vld [vmem:[%s1152_s1 + $0x1f0] sm:$0xff] }
  0x1c   :  { %v803_v58 = vcombine.high %v60_v53, %v64_v54  ;;  %v83_v11 = vld [vmem:[%s1152_s1 + $0x210] sm:$0xff] }
  0x1d   :  { %v87_v12 = vld [vmem:[%s1152_s1 + $0x230] sm:$0xff] }
  0x1e   :  { %487 = vmatpush1.bf16.msra.mxu0 %v804_v60  ;;  %530 = vmatpush1.bf16.msra.mxu1 %v806_v61  ;;  %v71_v60 = vld [vmem:[%s1152_s1 + $0x1b0] sm:$0xff]  ;;  %v68_v61 = vld [vmem:[%s1152_s1 + $0x198] sm:$0xff]  ;;  %v824_v19 = vcombine.low %v83_v11, %v87_v12 }
  0x1f   :  { %488 = vmatprep.subr.bf16.mxu0 %v813_v62  ;;  %531 = vmatprep.subr.bf16.mxu1 %v815_v0  ;;  %v72_v62 = vld [vmem:[%s1152_s1 + $0x1b8] sm:$0xff]  ;;  %v802_v0 = vcombine.low %v60_v53, %v64_v54  ;;  %v809_v1 = vcombine.high %v67_v59, %v71_v60 }
  0x20   :  { %v811_v2 = vcombine.high %v68_v61, %v72_v62 }
  0x22   :  { %489 = vmatpush1.bf16.msra.mxu0 %v812_v6  ;;  %532 = vmatpush1.bf16.msra.mxu1 %v814_v7  ;;  %v80_v6 = vld [vmem:[%s1152_s1 + $0x1f8] sm:$0xff]  ;;  %v808_v7 = vcombine.low %v67_v59, %v71_v60 }
  0x23   :  { %490 = vmatprep.subr.bf16.mxu0 %v821_v8  ;;  %533 = vmatprep.subr.bf16.mxu1 %v823_v9  ;;  %v810_v8 = vcombine.low %v68_v61, %v72_v62  ;;  %v817_v9 = vcombine.high %v75_v3, %v79_v4  ;;  %v819_v10 = vcombine.high %v76_v5, %v80_v6 }
  0x26   :  { %491 = vmatpush1.bf16.msra.mxu0 %v820_v14  ;;  %534 = vmatpush1.bf16.msra.mxu1 %v822_v15  ;;  %v88_v14 = vld [vmem:[%s1152_s1 + $0x238] sm:$0xff]  ;;  %v816_v15 = vcombine.low %v75_v3, %v79_v4 }
  0x27   :  { %560 = vmatprep.subr.bf16.mxu0 %v761_v16  ;;  %603 = vmatprep.subr.bf16.mxu1 %v763_v17  ;;  %v818_v16 = vcombine.low %v76_v5, %v80_v6  ;;  %v825_v17 = vcombine.high %v83_v11, %v87_v12  ;;  %v827_v18 = vcombine.high %v84_v13, %v88_v14 }
  0x28   :  { %v826_v21 = vcombine.low %v84_v13, %v88_v14 }
  0x29   :  { %507 = vmatmul.mubr.bf16.vlgmr.msra.gmra.mrb[0].mxu0 %v1018_v20  ;;  %550 = vmatmul.mubr.bf16.vlgmr.msra.gmra.mrb[0].mxu1 %v1018_v20 }
  0x2a   :  { %561 = vmatpush1.bf16.msra.mxu0 %v760_v23  ;;  %604 = vmatpush1.bf16.msra.mxu1 %v762_v24 }
  0x2b   :  { %562 = vmatprep.subr.bf16.mxu0 %v769_v25  ;;  %605 = vmatprep.subr.bf16.mxu1 %v771_v26 }
  0x2c   :  { %830 = vmatprep.mubr.msk.bf16.mxu0 %vm470_vm0, %v937_v36  ;;  %831 = vmatprep.mubr.msk.bf16.mxu1 %vm470_vm0, %v937_v36  ;;  %v52_v36 = vld [vmem:[%s1152_s1 + $0x118] sm:$0xff] }
  0x2d   :  { %v795_v50 = vcombine.high %v52_v36, %v56_v46  ;;  %v794_v56 = vcombine.low %v52_v36, %v56_v46 }
  0x2e   :  { %563 = vmatpush1.bf16.msra.mxu0 %v768_v31  ;;  %606 = vmatpush1.bf16.msra.mxu1 %v770_v32 }
  0x2f   :  { %564 = vmatprep.subr.bf16.mxu0 %v777_v33  ;;  %607 = vmatprep.subr.bf16.mxu1 %v779_v34 }
  0x32   :  { %565 = vmatpush1.bf16.msra.mxu0 %v776_v40  ;;  %608 = vmatpush1.bf16.msra.mxu1 %v778_v41 }
  0x33   :  { %566 = vmatprep.subr.bf16.mxu0 %v785_v42  ;;  %609 = vmatprep.subr.bf16.mxu1 %v787_v43 }
  0x36   :  { %567 = vmatpush1.bf16.msra.mxu0 %v784_v47  ;;  %610 = vmatpush1.bf16.msra.mxu1 %v786_v48 }
  0x37   :  { %568 = vmatprep.subr.bf16.mxu0 %v793_v49  ;;  %611 = vmatprep.subr.bf16.mxu1 %v795_v50 }
  0x3a   :  { %569 = vmatpush1.bf16.msra.mxu0 %v792_v55  ;;  %612 = vmatpush1.bf16.msra.mxu1 %v794_v56 }
  0x3b   :  { %570 = vmatprep.subr.bf16.mxu0 %v801_v57  ;;  %613 = vmatprep.subr.bf16.mxu1 %v803_v58 }
  0x3e   :  { %571 = vmatpush1.bf16.msra.mxu0 %v800_v63  ;;  %614 = vmatpush1.bf16.msra.mxu1 %v802_v0 }
  0x3f   :  { %572 = vmatprep.subr.bf16.mxu0 %v809_v1  ;;  %615 = vmatprep.subr.bf16.mxu1 %v811_v2 }
  0x42   :  { %573 = vmatpush1.bf16.msra.mxu0 %v808_v7  ;;  %616 = vmatpush1.bf16.msra.mxu1 %v810_v8 }
  0x43   :  { %574 = vmatprep.subr.bf16.mxu0 %v817_v9  ;;  %617 = vmatprep.subr.bf16.mxu1 %v819_v10 }
  0x46   :  { %575 = vmatpush1.bf16.msra.mxu0 %v816_v15  ;;  %618 = vmatpush1.bf16.msra.mxu1 %v818_v16 }
  0x47   :  { %576 = vmatprep.subr.bf16.mxu0 %v825_v17  ;;  %619 = vmatprep.subr.bf16.mxu1 %v827_v18 }
  0x4a   :  { %577 = vmatpush1.bf16.msra.mxu0 %v824_v19  ;;  %620 = vmatpush1.bf16.msra.mxu1 %v826_v21 }
  0x4d   :  { %593 = vmatmul.mubr.bf16.vlgmr.msra.gmra.mrb[4].mxu0 %v1018_v20  ;;  %636 = vmatmul.mubr.bf16.vlgmr.msra.gmra.mrb[4].mxu1 %v1018_v20 }
  0x93   :  { %v94_v22 = vpop.permute.xlu0 %93 }
  0x97   :  { %v1118_v24 = vpop.permute.xlu0 %98 }
  0xfc   :  { %v508_v23 = vpop.f32.mrb[0].mxu0  ;;  %v551_v26 = vpop.f32.mrb[0].mxu1 }
  0xfd   :  { %v509_v25 = vadd.f32 %v508_v23, %v94_v22  ;;  %v510_v27 = vpop.f32.mrb[1].mxu0  ;;  %v552_v28 = vadd.f32 %v551_v26, %v94_v22  ;;  %v553_v30 = vpop.f32.mrb[1].mxu1 }
  0xfe   :  { %v511_v29 = vadd.f32 %v510_v27, %v94_v22  ;;  %v512_v31 = vpop.f32.mrb[2].mxu0  ;;  %v554_v33 = vadd.f32 %v553_v30, %v94_v22  ;;  %v555_v35 = vpop.f32.mrb[2].mxu1 }
  0xff   :  { %vm646_vm1 = vcmp.ge.f32.partialorder %v509_v25, 0.0  ;;  %v662_v32 = vmul.f32 0.2, %v509_v25  ;;  %v513_v34 = vadd.f32 %v512_v31, %v1118_v24  ;;  %v514_v37 = vpop.f32.mrb[3].mxu0  ;;  %vm648_vm2 = vcmp.ge.f32.partialorder %v552_v28, 0.0  ;;  %v557_v41 = vpop.f32.mrb[3].mxu1 }
 0x100   :  { %v664_v20 = vmul.f32 0.2, %v552_v28  ;;  %vm647_vm3 = vcmp.ge.f32.partialorder %v511_v29, 0.0  ;;  %v663_v38 = vmul.f32 0.2, %v511_v29  ;;  %vm649_vm4 = vcmp.ge.f32.partialorder %v554_v33, 0.0 }
 0x101   :  { %v678_v39 = vsel %vm646_vm1, %v509_v25, %v662_v32  ;;  %v665_v40 = vmul.f32 0.2, %v554_v33  ;;  %vm654_vm5 = vcmp.ge.f32.partialorder %v513_v34, 0.0  ;;  %v670_v44 = vmul.f32 0.2, %v513_v34 }
 0x102   :  { %v680_v42 = vsel %vm648_vm2, %v552_v28, %v664_v20  ;;  %v679_v43 = vsel %vm647_vm3, %v511_v29, %v663_v38  ;;  %v556_v45 = vadd.f32 %v555_v35, %v1118_v24  ;;  %v515_v47 = vadd.f32 %v514_v37, %v1118_v24 }
 0x103   :  { %v840_v36 = vpack.c.bf16 %v679_v43, %v678_v39  ;;  %v681_v46 = vsel %vm649_vm4, %v554_v33, %v665_v40  ;;  %v558_v48 = vadd.f32 %v557_v41, %v1118_v24  ;;  %v686_v50 = vsel %vm654_vm5, %v513_v34, %v670_v44 }
 0x104   :  { %v841_v49 = vpack.c.bf16 %v681_v46, %v680_v42  ;;  %vm656_vm6 = vcmp.ge.f32.partialorder %v556_v45, 0.0  ;;  %v672_v51 = vmul.f32 0.2, %v556_v45  ;;  %vm655_vm7 = vcmp.ge.f32.partialorder %v515_v47, 0.0 }
 0x105   :  { %742 = vst [vmem:[%s1155_s3] sm:$0xff] %v840_v36  ;;  %v671_v52 = vmul.f32 0.2, %v515_v47  ;;  %vm657_vm8 = vcmp.ge.f32.partialorder %v558_v48, 0.0  ;;  %v673_v53 = vmul.f32 0.2, %v558_v48 }
 0x106   :  { %743 = vst [vmem:[%s1155_s3 + $0x8] sm:$0xff] %v841_v49  ;;  %v688_v54 = vsel %vm656_vm6, %v556_v45, %v672_v51 }
 0x107   :  { %v687_v55 = vsel %vm655_vm7, %v515_v47, %v671_v52  ;;  %v689_v56 = vsel %vm657_vm8, %v558_v48, %v673_v53 }
 0x108   :  { %v844_v57 = vpack.c.bf16 %v687_v55, %v686_v50  ;;  %v845_v58 = vpack.c.bf16 %v689_v56, %v688_v54 }
 0x10a   :  { %746 = vst [vmem:[%s1155_s3 + $0x20] sm:$0xff] %v844_v57  ;;  %747 = vst [vmem:[%s1155_s3 + $0x28] sm:$0xff] %v845_v58 }
 0x120   :  { %v594_v59 = vpop.f32.mrb[4].mxu0  ;;  %v637_v61 = vpop.f32.mrb[4].mxu1 }
 0x121   :  { %v595_v60 = vadd.f32 %v594_v59, %v94_v22  ;;  %v596_v62 = vpop.f32.mrb[5].mxu0  ;;  %v638_v63 = vadd.f32 %v637_v61, %v94_v22  ;;  %v639_v1 = vpop.f32.mrb[5].mxu1 }
 0x122   :  { %v597_v0 = vadd.f32 %v596_v62, %v94_v22  ;;  %v598_v2 = vpop.f32.mrb[6].mxu0  ;;  %v640_v4 = vadd.f32 %v639_v1, %v94_v22  ;;  %v641_v6 = vpop.f32.mrb[6].mxu1 }
 0x123   :  { %vm650_vm9 = vcmp.ge.f32.partialorder %v595_v60, 0.0  ;;  %v666_v3 = vmul.f32 0.2, %v595_v60  ;;  %v599_v5 = vadd.f32 %v598_v2, %v1118_v24  ;;  %v600_v7 = vpop.f32.mrb[7].mxu0  ;;  %vm652_vm10 = vcmp.ge.f32.partialorder %v638_v63, 0.0  ;;  %v643_v12 = vpop.f32.mrb[7].mxu1 }
 0x124   :  { %v668_v8 = vmul.f32 0.2, %v638_v63  ;;  %vm651_vm11 = vcmp.ge.f32.partialorder %v597_v0, 0.0  ;;  %v667_v9 = vmul.f32 0.2, %v597_v0  ;;  %vm653_vm12 = vcmp.ge.f32.partialorder %v640_v4, 0.0 }
 0x125   :  { %v682_v10 = vsel %vm650_vm9, %v595_v60, %v666_v3  ;;  %v669_v11 = vmul.f32 0.2, %v640_v4  ;;  %vm658_vm13 = vcmp.ge.f32.partialorder %v599_v5, 0.0  ;;  %v674_v15 = vmul.f32 0.2, %v599_v5 }
 0x126   :  { %v684_v13 = vsel %vm652_vm10, %v638_v63, %v668_v8  ;;  %v683_v14 = vsel %vm651_vm11, %v597_v0, %v667_v9  ;;  %v642_v16 = vadd.f32 %v641_v6, %v1118_v24  ;;  %v601_v19 = vadd.f32 %v600_v7, %v1118_v24 }
 0x127   :  { %v842_v17 = vpack.c.bf16 %v683_v14, %v682_v10  ;;  %v685_v18 = vsel %vm653_vm12, %v640_v4, %v669_v11  ;;  %v644_v21 = vadd.f32 %v643_v12, %v1118_v24  ;;  %v690_v23 = vsel %vm658_vm13, %v599_v5, %v674_v15 }
 0x128   :  { %v843_v22 = vpack.c.bf16 %v685_v18, %v684_v13  ;;  %vm660_vm14 = vcmp.ge.f32.partialorder %v642_v16, 0.0  ;;  %v676_v25 = vmul.f32 0.2, %v642_v16  ;;  %vm659_vm15 = vcmp.ge.f32.partialorder %v601_v19, 0.0 }
 0x129   :  { %744 = vst [vmem:[%s1155_s3 + $0x10] sm:$0xff] %v842_v17  ;;  %v675_v26 = vmul.f32 0.2, %v601_v19  ;;  %vm661_vm0 = vcmp.ge.f32.partialorder %v644_v21, 0.0  ;;  %v677_v27 = vmul.f32 0.2, %v644_v21 }
 0x12a   :  { %745 = vst [vmem:[%s1155_s3 + $0x18] sm:$0xff] %v843_v22  ;;  %v692_v28 = vsel %vm660_vm14, %v642_v16, %v676_v25 }
 0x12b   :  { %v691_v29 = vsel %vm659_vm15, %v601_v19, %v675_v26  ;;  %v693_v30 = vsel %vm661_vm0, %v644_v21, %v677_v27 }
 0x12c   :  { %v846_v24 = vpack.c.bf16 %v691_v29, %v690_v23  ;;  %v847_v31 = vpack.c.bf16 %v693_v30, %v692_v28 }
 0x12e   :  { %748 = vst [vmem:[%s1155_s3 + $0x30] sm:$0xff] %v846_v24  ;;  %749 = vst [vmem:[%s1155_s3 + $0x38] sm:$0xff] %v847_v31 }

// kernel: generator_forward.14
= control target key start
LH: loop header
LB: loop body
LE: loop exit
PB: predicated region body
PF: predicated region fallthrough
CT: control target
= control target key end

     0   :  { %s1551_s12 = smov 0   ;;  %s1553_s13 = smov 0   ;;  %s1902_s0 = inlined_call_operand.vmem [shape: bf16[8,72], index: 0, kind: input, shape index: {}]   ;;  %s1903_s1 = inlined_call_operand.vmem [shape: bf16[72,4096], index: 1, kind: input, shape index: {}]   ;;  %s1904_s2 = inlined_call_operand.vmem [shape: f32[8,1], index: 2, kind: input, shape index: {}]   ;;  %s1905_s3 = inlined_call_operand.vmem [shape: bf16[8,4096], index: 3, kind: output, shape index: {}]  }
   0x1   :  { %s1555_s14 = smov 0  }
   0x2 LB: > { %s1338_s15 = sadd.s32 4294967295, %s1528_s14   ;;  %s1568_s16 = sadd.s32 1, %s1528_s14   ;;  %s1528_s14 = sphi %s1555_s14, %s1908_s14   ;;  %s1524_s13 = sphi %s1553_s13, %s1907_s13   ;;  %s1520_s12 = sphi %s1551_s12, %s1906_s12  }
   0x3   : > { %s38_s17 = ssub.s32 %s1528_s14, %s1568_s16  ;;  %s41_s18 = sadd.s32 1, %s1524_s13 }
   0x4   : > { %p39_p0 = scmp.eq.s32.totalorder %s38_s17, 0  ;;  %p48_p1 = scmp.ne.s32.totalorder %s1524_s13, %s1520_s12 }
   0x5   : > { %p49_p2 = scmp.eq.s32.totalorder %s1528_s14, 0  ;;  %p1341_p4 = scmp.ge.s32.totalorder %s1528_s14, 2 }
   0x6   : > { %s1577_s19 = scalar_select %p39_p0, %s1524_s13, %s41_s18  }
   0x7   : > { %p50_p3 = por %p49_p2, %p48_p1  ;;  %127 = sbr.rel (%p1341_p4) target bundleno = 55 (0x37), region = 24 }
   0xe   : > { %130 = sbr.rel (!%p50_p3) target bundleno = 55 (0x37), region = 28  ;;  %s132_s20 = sand.u32 (%p50_p3), 1, %s1524_s13  }
   0xf   : > { %s1453_s21 = sshll.u32 (%p50_p3), %s1528_s14, 6  ;;  %s1462_s22 = smul.u32 (%p50_p3), 576, %s132_s20 }
  0x10   : > { %s1585_s25 = scalar_lea.vmem (%p50_p3), %s1903_s1, %s1453_s21 }
  0x11   : > { %v150_v0 = vld [vmem:[%s1585_s25] sm:$0xff] (%p50_p3)  ;;  %v152_v1 = vld [vmem:[%s1585_s25 + $0x8] sm:$0xff] (%p50_p3)  ;;  %v154_v2 = vld [vmem:[%s1585_s25 + $0x10] sm:$0xff] (%p50_p3)  ;;  %s1593_s26 = scalar_lea.vmem (%p50_p3), [#allocation2], %s1462_s22 }
  0x12   : > { %v156_v3 = vld [vmem:[%s1585_s25 + $0x18] sm:$0xff] (%p50_p3)  ;;  %v158_v4 = vld [vmem:[%s1585_s25 + $0x20] sm:$0xff] (%p50_p3)  ;;  %v160_v5 = vld [vmem:[%s1585_s25 + $0x28] sm:$0xff] (%p50_p3)  ;;  %151 = vst [vmem:[%s1593_s26] sm:$0xff] (%p50_p3), %v150_v0 }
  0x13   : > { %153 = vst [vmem:[%s1593_s26 + $0x8] sm:$0xff] (%p50_p3), %v152_v1  ;;  %155 = vst [vmem:[%s1593_s26 + $0x10] sm:$0xff] (%p50_p3), %v154_v2  ;;  %v162_v6 = vld [vmem:[%s1585_s25 + $0x30] sm:$0xff] (%p50_p3)  ;;  %v164_v7 = vld [vmem:[%s1585_s25 + $0x38] sm:$0xff] (%p50_p3) }
  0x14   : > { %157 = vst [vmem:[%s1593_s26 + $0x18] sm:$0xff] (%p50_p3), %v156_v3  ;;  %159 = vst [vmem:[%s1593_s26 + $0x20] sm:$0xff] (%p50_p3), %v158_v4  ;;  %v166_v8 = vld [vmem:[%s1585_s25 + $0x80] sm:$0xff] (%p50_p3)  ;;  %v168_v9 = vld [vmem:[%s1585_s25 + $0x88] sm:$0xff] (%p50_p3) }
  0x15   : > { %161 = vst [vmem:[%s1593_s26 + $0x28] sm:$0xff] %v160_v5  ;;  %163 = vst [vmem:[%s1593_s26 + $0x30] sm:$0xff] %v162_v6  ;;  %v170_v10 = vld [vmem:[%s1585_s25 + $0x90] sm:$0xff]  ;;  %v172_v11 = vld [vmem:[%s1585_s25 + $0x98] sm:$0xff] }
  0x16   : > { %165 = vst [vmem:[%s1593_s26 + $0x38] sm:$0xff] %v164_v7  ;;  %167 = vst [vmem:[%s1593_s26 + $0x40] sm:$0xff] %v166_v8  ;;  %v174_v12 = vld [vmem:[%s1585_s25 + $0xa0] sm:$0xff]  ;;  %v176_v13 = vld [vmem:[%s1585_s25 + $0xa8] sm:$0xff] }
  0x17   : > { %169 = vst [vmem:[%s1593_s26 + $0x48] sm:$0xff] %v168_v9  ;;  %171 = vst [vmem:[%s1593_s26 + $0x50] sm:$0xff] %v170_v10  ;;  %v178_v14 = vld [vmem:[%s1585_s25 + $0xb0] sm:$0xff]  ;;  %v180_v15 = vld [vmem:[%s1585_s25 + $0xb8] sm:$0xff] }
  0x18   : > { %173 = vst [vmem:[%s1593_s26 + $0x58] sm:$0xff] %v172_v11  ;;  %175 = vst [vmem:[%s1593_s26 + $0x60] sm:$0xff] %v174_v12  ;;  %v182_v16 = vld [vmem:[%s1585_s25 + $0x100] sm:$0xff]  ;;  %v184_v17 = vld [vmem:[%s1585_s25 + $0x108] sm:$0xff] }
  0x19   : > { %177 = vst [vmem:[%s1593_s26 + $0x68] sm:$0xff] %v176_v13  ;;  %179 = vst [vmem:[%s1593_s26 + $0x70] sm:$0xff] %v178_v14  ;;  %v186_v18 = vld [vmem:[%s1585_s25 + $0x110] sm:$0xff]  ;;  %v188_v19 = vld [vmem:[%s1585_s25 + $0x118] sm:$0xff] }
  0x1a   : > { %181 = vst [vmem:[%s1593_s26 + $0x78] sm:$0xff] %v180_v15  ;;  %183 = vst [vmem:[%s1593_s26 + $0x80] sm:$0xff] %v182_v16  ;;  %v190_v20 = vld [vmem:[%s1585_s25 + $0x120] sm:$0xff]  ;;  %v192_v21 = vld [vmem:[%s1585_s25 + $0x128] sm:$0xff] }
  0x1b   : > { %185 = vst [vmem:[%s1593_s26 + $0x88] sm:$0xff] %v184_v17  ;;  %187 = vst [vmem:[%s1593_s26 + $0x90] sm:$0xff] %v186_v18  ;;  %v194_v22 = vld [vmem:[%s1585_s25 + $0x130] sm:$0xff]  ;;  %v196_v23 = vld [vmem:[%s1585_s25 + $0x138] sm:$0xff] }
  0x1c   : > { %189 = vst [vmem:[%s1593_s26 + $0x98] sm:$0xff] %v188_v19  ;;  %191 = vst [vmem:[%s1593_s26 + $0xa0] sm:$0xff] %v190_v20  ;;  %v198_v24 = vld [vmem:[%s1585_s25 + $0x180] sm:$0xff]  ;;  %v200_v25 = vld [vmem:[%s1585_s25 + $0x188] sm:$0xff] }
  0x1d   : > { %193 = vst [vmem:[%s1593_s26 + $0xa8] sm:$0xff] %v192_v21  ;;  %195 = vst [vmem:[%s1593_s26 + $0xb0] sm:$0xff] %v194_v22  ;;  %v202_v26 = vld [vmem:[%s1585_s25 + $0x190] sm:$0xff]  ;;  %v204_v27 = vld [vmem:[%s1585_s25 + $0x198] sm:$0xff] }
  0x1e   : > { %197 = vst [vmem:[%s1593_s26 + $0xb8] sm:$0xff] %v196_v23  ;;  %199 = vst [vmem:[%s1593_s26 + $0xc0] sm:$0xff] %v198_v24  ;;  %v206_v28 = vld [vmem:[%s1585_s25 + $0x1a0] sm:$0xff]  ;;  %v208_v29 = vld [vmem:[%s1585_s25 + $0x1a8] sm:$0xff] }
  0x1f   : > { %201 = vst [vmem:[%s1593_s26 + $0xc8] sm:$0xff] %v200_v25  ;;  %203 = vst [vmem:[%s1593_s26 + $0xd0] sm:$0xff] %v202_v26  ;;  %v210_v30 = vld [vmem:[%s1585_s25 + $0x1b0] sm:$0xff]  ;;  %v212_v31 = vld [vmem:[%s1585_s25 + $0x1b8] sm:$0xff] }
  0x20   : > { %205 = vst [vmem:[%s1593_s26 + $0xd8] sm:$0xff] %v204_v27  ;;  %207 = vst [vmem:[%s1593_s26 + $0xe0] sm:$0xff] %v206_v28  ;;  %v214_v32 = vld [vmem:[%s1585_s25 + $0x200] sm:$0xff]  ;;  %v216_v33 = vld [vmem:[%s1585_s25 + $0x208] sm:$0xff] }
  0x21   : > { %209 = vst [vmem:[%s1593_s26 + $0xe8] sm:$0xff] %v208_v29  ;;  %211 = vst [vmem:[%s1593_s26 + $0xf0] sm:$0xff] %v210_v30  ;;  %v218_v34 = vld [vmem:[%s1585_s25 + $0x210] sm:$0xff]  ;;  %v220_v35 = vld [vmem:[%s1585_s25 + $0x218] sm:$0xff] }
  0x22   : > { %213 = vst [vmem:[%s1593_s26 + $0xf8] sm:$0xff] %v212_v31  ;;  %215 = vst [vmem:[%s1593_s26 + $0x100] sm:$0xff] %v214_v32  ;;  %v222_v36 = vld [vmem:[%s1585_s25 + $0x220] sm:$0xff]  ;;  %v224_v37 = vld [vmem:[%s1585_s25 + $0x228] sm:$0xff] }
  0x23   : > { %217 = vst [vmem:[%s1593_s26 + $0x108] sm:$0xff] %v216_v33  ;;  %219 = vst [vmem:[%s1593_s26 + $0x110] sm:$0xff] %v218_v34  ;;  %v226_v38 = vld [vmem:[%s1585_s25 + $0x230] sm:$0xff]  ;;  %v228_v39 = vld [vmem:[%s1585_s25 + $0x238] sm:$0xff] }
  0x24   : > { %221 = vst [vmem:[%s1593_s26 + $0x118] sm:$0xff] %v220_v35  ;;  %223 = vst [vmem:[%s1593_s26 + $0x120] sm:$0xff] %v222_v36  ;;  %v230_v40 = vld [vmem:[%s1585_s25 + $0x280] sm:$0xff]  ;;  %v232_v41 = vld [vmem:[%s1585_s25 + $0x288] sm:$0xff] }
  0x25   : > { %225 = vst [vmem:[%s1593_s26 + $0x128] sm:$0xff] %v224_v37  ;;  %227 = vst [vmem:[%s1593_s26 + $0x130] sm:$0xff] %v226_v38  ;;  %v234_v42 = vld [vmem:[%s1585_s25 + $0x290] sm:$0xff]  ;;  %v236_v43 = vld [vmem:[%s1585_s25 + $0x298] sm:$0xff] }
  0x26   : > { %229 = vst [vmem:[%s1593_s26 + $0x138] sm:$0xff] %v228_v39  ;;  %231 = vst [vmem:[%s1593_s26 + $0x140] sm:$0xff] %v230_v40  ;;  %v238_v44 = vld [vmem:[%s1585_s25 + $0x2a0] sm:$0xff]  ;;  %v240_v45 = vld [vmem:[%s1585_s25 + $0x2a8] sm:$0xff] }
  0x27   : > { %233 = vst [vmem:[%s1593_s26 + $0x148] sm:$0xff] %v232_v41  ;;  %235 = vst [vmem:[%s1593_s26 + $0x150] sm:$0xff] %v234_v42  ;;  %v242_v46 = vld [vmem:[%s1585_s25 + $0x2b0] sm:$0xff]  ;;  %v244_v47 = vld [vmem:[%s1585_s25 + $0x2b8] sm:$0xff] }
  0x28   : > { %237 = vst [vmem:[%s1593_s26 + $0x158] sm:$0xff] %v236_v43  ;;  %239 = vst [vmem:[%s1593_s26 + $0x160] sm:$0xff] %v238_v44  ;;  %v246_v48 = vld [vmem:[%s1585_s25 + $0x300] sm:$0xff]  ;;  %v248_v49 = vld [vmem:[%s1585_s25 + $0x308] sm:$0xff] }
  0x29   : > { %241 = vst [vmem:[%s1593_s26 + $0x168] sm:$0xff] %v240_v45  ;;  %243 = vst [vmem:[%s1593_s26 + $0x170] sm:$0xff] %v242_v46  ;;  %v250_v50 = vld [vmem:[%s1585_s25 + $0x310] sm:$0xff]  ;;  %v252_v51 = vld [vmem:[%s1585_s25 + $0x318] sm:$0xff] }
  0x2a   : > { %245 = vst [vmem:[%s1593_s26 + $0x178] sm:$0xff] %v244_v47  ;;  %247 = vst [vmem:[%s1593_s26 + $0x180] sm:$0xff] %v246_v48  ;;  %v254_v52 = vld [vmem:[%s1585_s25 + $0x320] sm:$0xff]  ;;  %v256_v53 = vld [vmem:[%s1585_s25 + $0x328] sm:$0xff] }
  0x2b   : > { %249 = vst [vmem:[%s1593_s26 + $0x188] sm:$0xff] %v248_v49  ;;  %251 = vst [vmem:[%s1593_s26 + $0x190] sm:$0xff] %v250_v50  ;;  %v258_v54 = vld [vmem:[%s1585_s25 + $0x330] sm:$0xff]  ;;  %v260_v55 = vld [vmem:[%s1585_s25 + $0x338] sm:$0xff] }
  0x2c   : > { %253 = vst [vmem:[%s1593_s26 + $0x198] sm:$0xff] %v252_v51  ;;  %255 = vst [vmem:[%s1593_s26 + $0x1a0] sm:$0xff] %v254_v52  ;;  %v262_v56 = vld [vmem:[%s1585_s25 + $0x380] sm:$0xff]  ;;  %v264_v57 = vld [vmem:[%s1585_s25 + $0x388] sm:$0xff] }
  0x2d   : > { %257 = vst [vmem:[%s1593_s26 + $0x1a8] sm:$0xff] %v256_v53  ;;  %259 = vst [vmem:[%s1593_s26 + $0x1b0] sm:$0xff] %v258_v54  ;;  %v266_v58 = vld [vmem:[%s1585_s25 + $0x390] sm:$0xff]  ;;  %v268_v59 = vld [vmem:[%s1585_s25 + $0x398] sm:$0xff] }
  0x2e   : > { %261 = vst [vmem:[%s1593_s26 + $0x1b8] sm:$0xff] %v260_v55  ;;  %263 = vst [vmem:[%s1593_s26 + $0x1c0] sm:$0xff] %v262_v56  ;;  %v270_v60 = vld [vmem:[%s1585_s25 + $0x3a0] sm:$0xff]  ;;  %v272_v61 = vld [vmem:[%s1585_s25 + $0x3a8] sm:$0xff] }
  0x2f   : > { %265 = vst [vmem:[%s1593_s26 + $0x1c8] sm:$0xff] %v264_v57  ;;  %267 = vst [vmem:[%s1593_s26 + $0x1d0] sm:$0xff] %v266_v58  ;;  %v274_v62 = vld [vmem:[%s1585_s25 + $0x3b0] sm:$0xff]  ;;  %v276_v63 = vld [vmem:[%s1585_s25 + $0x3b8] sm:$0xff] }
  0x30   : > { %269 = vst [vmem:[%s1593_s26 + $0x1d8] sm:$0xff] %v268_v59  ;;  %271 = vst [vmem:[%s1593_s26 + $0x1e0] sm:$0xff] %v270_v60  ;;  %v278_v0 = vld [vmem:[%s1585_s25 + $0x400] sm:$0xff]  ;;  %v280_v1 = vld [vmem:[%s1585_s25 + $0x408] sm:$0xff] }
  0x31   : > { %273 = vst [vmem:[%s1593_s26 + $0x1e8] sm:$0xff] %v272_v61  ;;  %275 = vst [vmem:[%s1593_s26 + $0x1f0] sm:$0xff] %v274_v62  ;;  %v282_v2 = vld [vmem:[%s1585_s25 + $0x410] sm:$0xff]  ;;  %v284_v3 = vld [vmem:[%s1585_s25 + $0x418] sm:$0xff] }
  0x32   : > { %277 = vst [vmem:[%s1593_s26 + $0x1f8] sm:$0xff] %v276_v63  ;;  %279 = vst [vmem:[%s1593_s26 + $0x200] sm:$0xff] %v278_v0  ;;  %v286_v4 = vld [vmem:[%s1585_s25 + $0x420] sm:$0xff]  ;;  %v288_v5 = vld [vmem:[%s1585_s25 + $0x428] sm:$0xff] }
  0x33   : > { %281 = vst [vmem:[%s1593_s26 + $0x208] sm:$0xff] %v280_v1  ;;  %283 = vst [vmem:[%s1593_s26 + $0x210] sm:$0xff] %v282_v2  ;;  %v290_v6 = vld [vmem:[%s1585_s25 + $0x430] sm:$0xff]  ;;  %v292_v7 = vld [vmem:[%s1585_s25 + $0x438] sm:$0xff] }
  0x34   : > { %285 = vst [vmem:[%s1593_s26 + $0x218] sm:$0xff] %v284_v3  ;;  %287 = vst [vmem:[%s1593_s26 + $0x220] sm:$0xff] %v286_v4 }
  0x35   : > { %289 = vst [vmem:[%s1593_s26 + $0x228] sm:$0xff] %v288_v5  ;;  %291 = vst [vmem:[%s1593_s26 + $0x230] sm:$0xff] %v290_v6 }
  0x36   : > { %293 = vst [vmem:[%s1593_s26 + $0x238] sm:$0xff] %v292_v7 }
  0x37 PF: > { %p1344_p5 = scmp.ge.s32.totalorder %s1528_s14, 1  ;;  %p298_p6 = scmp.lt.s32.totalorder %s1528_s14, 3 }
  0x39   : > { %p299_p7 = pnand %p1344_p5, %p298_p6 }
  0x3a   : > { %s305_s27 = sand.u32 (!%p299_p7), 1, %s1520_s12   ;;  %v1530_v8 = vmov (!%p299_p7), 0   ;;  %v409_v9 = vld [vmem:[%s1904_s2] sm:$0xff] (!%p299_p7)  ;;  %vm779_vm0 = vcmask (!%p299_p7), 1043456   ;;  %vm775_vm1 = vcmask (!%p299_p7), 588800   ;;  %s1345_s7 = sshll.u32 (!%p299_p7), %s1338_s15, 4 }
  0x3b   : > { %302 = sbr.rel (%p299_p7) target bundleno = 369 (0x171), region = 51  ;;  %860 = vmatprep.mubr.bf16.mxu0 (!%p299_p7), %v1530_v8  ;;  %901 = vmatprep.mubr.bf16.mxu1 (!%p299_p7), %v1530_v8  ;;  %v1777_v60 = vld [vmem:[%s1902_s0] sm:$0xf] (!%p299_p7)  ;;  %p330_p8 = scmp.lt.s32.totalorder (!%p299_p7), %s1345_s7, 31 }
  0x3c   : > { %s1463_s28 = smul.u32 (!%p299_p7), 576, %s305_s27  ;;  %1489 = vset.pattern.permute.xlu0 (!%p299_p7), %v1530_v8 }
  0x3d   : > { %412 = vperm.xlu0 (!%p299_p7), %1489, %v409_v9  }
  0x3e   : > { %s1742_s4 = scalar_lea.vmem (!%p299_p7), [#allocation2], %s1463_s28 }
  0x3f   : > { %v337_v10 = vld [vmem:[%s1742_s4] sm:$0xff] (!%p299_p7)  ;;  %v338_v12 = vld [vmem:[%s1742_s4 + $0x8] sm:$0xff] (!%p299_p7)  ;;  %v339_v48 = vld [vmem:[%s1742_s4 + $0x10] sm:$0xff] (!%p299_p7) }
  0x40   : > { %v345_v11 = vld [vmem:[%s1742_s4 + $0x40] sm:$0xff] (!%p299_p7)  ;;  %v346_v14 = vld [vmem:[%s1742_s4 + $0x48] sm:$0xff] (!%p299_p7)  ;;  %v347_v49 = vld [vmem:[%s1742_s4 + $0x50] sm:$0xff] (!%p299_p7) }
  0x41   : > { %v1348_v13 = vcombine.high (!%p299_p7), %v337_v10, %v345_v11  ;;  %v1347_v15 = vcombine.low (!%p299_p7), %v337_v10, %v345_v11  ;;  %v353_v16 = vld [vmem:[%s1742_s4 + $0x80] sm:$0xff] (!%p299_p7)  ;;  %v1350_v18 = vcombine.high (!%p299_p7), %v338_v12, %v346_v14  ;;  %v1349_v19 = vcombine.low (!%p299_p7), %v338_v12, %v346_v14  ;;  %v354_v21 = vld [vmem:[%s1742_s4 + $0x88] sm:$0xff] (!%p299_p7)  ;;  %v340_v50 = vld [vmem:[%s1742_s4 + $0x18] sm:$0xff] (!%p299_p7) }
  0x42   : > { %v361_v17 = vld [vmem:[%s1742_s4 + $0xc0] sm:$0xff]  ;;  %v362_v22 = vld [vmem:[%s1742_s4 + $0xc8] sm:$0xff]  ;;  %v348_v51 = vld [vmem:[%s1742_s4 + $0x58] sm:$0xff]  ;;  %v1352_v53 = vcombine.high %v339_v48, %v347_v49  ;;  %v1351_v61 = vcombine.low %v339_v48, %v347_v49  ;;  %s1910_s7 = smov (!%p330_p8, %s1345_s7), 31 }
  0x43   : > { %v1364_v20 = vcombine.high %v353_v16, %v361_v17  ;;  %v369_v23 = vld [vmem:[%s1742_s4 + $0x100] sm:$0xff]  ;;  %828 = vmatprep.subr.bf16.mxu0 %v1348_v13  ;;  %v1366_v24 = vcombine.high %v354_v21, %v362_v22  ;;  %v370_v26 = vld [vmem:[%s1742_s4 + $0x108] sm:$0xff]  ;;  %869 = vmatprep.subr.bf16.mxu1 %v1350_v18  ;;  %v1363_v28 = vcombine.low %v353_v16, %v361_v17  ;;  %v355_v56 = vld [vmem:[%s1742_s4 + $0x90] sm:$0xff]  ;;  %s1346_s8 = sshll.u32 %s1910_s7, 2 }
  0x44   : > { %v377_v25 = vld [vmem:[%s1742_s4 + $0x140] sm:$0xff]  ;;  %v378_v27 = vld [vmem:[%s1742_s4 + $0x148] sm:$0xff]  ;;  %829 = vmatpush1.bf16.msra.mxu0 %v1347_v15  ;;  %870 = vmatpush1.bf16.msra.mxu1 %v1349_v19  ;;  %v1365_v29 = vcombine.low %v354_v21, %v362_v22  ;;  %v1354_v55 = vcombine.high %v340_v50, %v348_v51  ;;  %v363_v57 = vld [vmem:[%s1742_s4 + $0xd0] sm:$0xff]  ;;  %v1353_v62 = vcombine.low %v340_v50, %v348_v51  ;;  %s1870_s11 = scalar_lea.vmem %s1905_s3, %s1346_s8 }
  0x45   : > { %830 = vmatprep.subr.bf16.mxu0 %v1364_v20  ;;  %v1380_v30 = vcombine.high %v369_v23, %v377_v25  ;;  %871 = vmatprep.subr.bf16.mxu1 %v1366_v24  ;;  %v1382_v31 = vcombine.high %v370_v26, %v378_v27  ;;  %v385_v32 = vld [vmem:[%s1742_s4 + $0x180] sm:$0xff]  ;;  %v386_v34 = vld [vmem:[%s1742_s4 + $0x188] sm:$0xff]  ;;  %v1379_v36 = vcombine.low %v369_v23, %v377_v25  ;;  %v356_v58 = vld [vmem:[%s1742_s4 + $0x98] sm:$0xff] }
  0x46   : > { %v393_v33 = vld [vmem:[%s1742_s4 + $0x1c0] sm:$0xff]  ;;  %v394_v35 = vld [vmem:[%s1742_s4 + $0x1c8] sm:$0xff]  ;;  %v1381_v37 = vcombine.low %v370_v26, %v378_v27  ;;  %v364_v59 = vld [vmem:[%s1742_s4 + $0xd8] sm:$0xff]  ;;  %v1368_v63 = vcombine.high %v355_v56, %v363_v57  ;;  %v1367_v5 = vcombine.low %v355_v56, %v363_v57 }
  0x47   : > { %v1396_v38 = vcombine.high %v385_v32, %v393_v33  ;;  %v1398_v39 = vcombine.high %v386_v34, %v394_v35  ;;  %v401_v40 = vld [vmem:[%s1742_s4 + $0x200] sm:$0xff]  ;;  %v402_v41 = vld [vmem:[%s1742_s4 + $0x208] sm:$0xff]  ;;  %v1395_v42 = vcombine.low %v385_v32, %v393_v33  ;;  %v1397_v43 = vcombine.low %v386_v34, %v394_v35  ;;  %v371_v1 = vld [vmem:[%s1742_s4 + $0x110] sm:$0xff] }
  0x48   : > { %831 = vmatpush1.bf16.msra.mxu0 %v1363_v28  ;;  %872 = vmatpush1.bf16.msra.mxu1 %v1365_v29  ;;  %v1412_v44 = vcombine.high %v401_v40, %v401_v40  ;;  %v1411_v45 = vcombine.low %v401_v40, %v401_v40  ;;  %v1414_v46 = vcombine.high %v402_v41, %v402_v41  ;;  %v379_v2 = vld [vmem:[%s1742_s4 + $0x150] sm:$0xff]  ;;  %v372_v3 = vld [vmem:[%s1742_s4 + $0x118] sm:$0xff]  ;;  %v341_v26 = vld [vmem:[%s1742_s4 + $0x20] sm:$0xff] }
  0x49   : > { %832 = vmatprep.subr.bf16.mxu0 %v1380_v30  ;;  %873 = vmatprep.subr.bf16.mxu1 %v1382_v31  ;;  %v1413_v47 = vcombine.low %v402_v41, %v402_v41  ;;  %v1370_v0 = vcombine.high %v356_v58, %v364_v59  ;;  %v380_v4 = vld [vmem:[%s1742_s4 + $0x158] sm:$0xff]  ;;  %v1369_v6 = vcombine.low %v356_v58, %v364_v59  ;;  %v387_v10 = vld [vmem:[%s1742_s4 + $0x190] sm:$0xff]  ;;  %v349_v27 = vld [vmem:[%s1742_s4 + $0x60] sm:$0xff] }
  0x4a   : > { %v781_v52 = vsel %vm779_vm0, %v1411_v45, 0  ;;  %v1384_v7 = vcombine.high %v371_v1, %v379_v2  ;;  %v1386_v9 = vcombine.high %v372_v3, %v380_v4  ;;  %v395_v11 = vld [vmem:[%s1742_s4 + $0x1d0] sm:$0xff]  ;;  %v388_v12 = vld [vmem:[%s1742_s4 + $0x198] sm:$0xff]  ;;  %v1383_v14 = vcombine.low %v371_v1, %v379_v2  ;;  %v342_v28 = vld [vmem:[%s1742_s4 + $0x28] sm:$0xff] }
  0x4b   : > { %v787_v54 = vsel %vm779_vm0, %v1413_v47, 0  ;;  %v396_v13 = vld [vmem:[%s1742_s4 + $0x1d8] sm:$0xff]  ;;  %v1385_v15 = vcombine.low %v372_v3, %v380_v4  ;;  %v1400_v16 = vcombine.high %v387_v10, %v395_v11  ;;  %v403_v18 = vld [vmem:[%s1742_s4 + $0x210] sm:$0xff]  ;;  %v1399_v20 = vcombine.low %v387_v10, %v395_v11  ;;  %v350_v29 = vld [vmem:[%s1742_s4 + $0x68] sm:$0xff] }
  0x4c   : > { %833 = vmatpush1.bf16.msra.mxu0 %v1379_v36  ;;  %874 = vmatpush1.bf16.msra.mxu1 %v1381_v37  ;;  %v1402_v17 = vcombine.high %v388_v12, %v396_v13  ;;  %v404_v19 = vld [vmem:[%s1742_s4 + $0x218] sm:$0xff]  ;;  %v1401_v21 = vcombine.low %v388_v12, %v396_v13  ;;  %v1416_v22 = vcombine.high %v403_v18, %v403_v18  ;;  %v357_v34 = vld [vmem:[%s1742_s4 + $0xa0] sm:$0xff]  ;;  %v358_v36 = vld [vmem:[%s1742_s4 + $0xa8] sm:$0xff] }
  0x4d   : > { %834 = vmatprep.subr.bf16.mxu0 %v1396_v38  ;;  %875 = vmatprep.subr.bf16.mxu1 %v1398_v39  ;;  %v1415_v23 = vcombine.low %v403_v18, %v403_v18  ;;  %v1418_v24 = vcombine.high %v404_v19, %v404_v19  ;;  %v1417_v25 = vcombine.low %v404_v19, %v404_v19  ;;  %v365_v35 = vld [vmem:[%s1742_s4 + $0xe0] sm:$0xff]  ;;  %v366_v37 = vld [vmem:[%s1742_s4 + $0xe8] sm:$0xff]  ;;  %v343_v3 = vld [vmem:[%s1742_s4 + $0x30] sm:$0xff] }
  0x4e   : > { %v1356_v31 = vcombine.high %v341_v26, %v349_v27  ;;  %v1358_v33 = vcombine.high %v342_v28, %v350_v29  ;;  %v1355_v38 = vcombine.low %v341_v26, %v349_v27  ;;  %v1357_v39 = vcombine.low %v342_v28, %v350_v29  ;;  %v382_v45 = vld [vmem:[%s1742_s4 + $0x168] sm:$0xff]  ;;  %v389_v50 = vld [vmem:[%s1742_s4 + $0x1a0] sm:$0xff]  ;;  %v351_v4 = vld [vmem:[%s1742_s4 + $0x70] sm:$0xff] }
  0x4f   : > { %v793_v30 = vsel %vm779_vm0, %v1415_v23, 0  ;;  %v799_v32 = vsel %vm779_vm0, %v1417_v25, 0  ;;  %v1372_v40 = vcombine.high %v357_v34, %v365_v35  ;;  %v1374_v41 = vcombine.high %v358_v36, %v366_v37  ;;  %v397_v51 = vld [vmem:[%s1742_s4 + $0x1e0] sm:$0xff]  ;;  %v406_v59 = vld [vmem:[%s1742_s4 + $0x228] sm:$0xff]  ;;  %v359_v12 = vld [vmem:[%s1742_s4 + $0xb0] sm:$0xff] }
  0x50   : > { %835 = vmatpush1.bf16.msra.mxu0 %v1395_v42  ;;  %876 = vmatpush1.bf16.msra.mxu1 %v1397_v43  ;;  %v373_v42 = vld [vmem:[%s1742_s4 + $0x120] sm:$0xff]  ;;  %v1373_v47 = vcombine.low %v358_v36, %v366_v37  ;;  %v1404_v56 = vcombine.high %v389_v50, %v397_v51  ;;  %v1422_v1 = vcombine.high %v406_v59, %v406_v59  ;;  %v367_v13 = vld [vmem:[%s1742_s4 + $0xf0] sm:$0xff]  ;;  %v384_v23 = vld [vmem:[%s1742_s4 + $0x178] sm:$0xff] }
  0x51   : > { %1427 = vmatprep.subr.msk.bf16.mxu0 %vm779_vm0, %v1412_v44  ;;  %1429 = vmatprep.subr.msk.bf16.mxu1 %vm779_vm0, %v1414_v46  ;;  %v381_v43 = vld [vmem:[%s1742_s4 + $0x160] sm:$0xff]  ;;  %v374_v44 = vld [vmem:[%s1742_s4 + $0x128] sm:$0xff]  ;;  %v1371_v46 = vcombine.low %v357_v34, %v365_v35  ;;  %v1421_v2 = vcombine.low %v406_v59, %v406_v59  ;;  %v1376_v18 = vcombine.high %v359_v12, %v367_v13  ;;  %v391_v28 = vld [vmem:[%s1742_s4 + $0x1b0] sm:$0xff] }
  0x52   : > { %v1388_v48 = vcombine.high %v373_v42, %v381_v43  ;;  %v1390_v49 = vcombine.high %v374_v44, %v382_v45  ;;  %v405_v58 = vld [vmem:[%s1742_s4 + $0x220] sm:$0xff]  ;;  %v399_v29 = vld [vmem:[%s1742_s4 + $0x1f0] sm:$0xff]  ;;  %v408_v37 = vld [vmem:[%s1742_s4 + $0x238] sm:$0xff] }
  0x53   : > { %v811_v10 = vsel %vm779_vm0, %v1421_v2, 0  ;;  %v1408_v34 = vcombine.high %v391_v28, %v399_v29  ;;  %v407_v36 = vld [vmem:[%s1742_s4 + $0x230] sm:$0xff] }
  0x54   : > { %837 = vmatpush1.bf16.msra.mxu0 %v781_v52  ;;  %878 = vmatpush1.bf16.msra.mxu1 %v787_v54  ;;  %v390_v52 = vld [vmem:[%s1742_s4 + $0x1a8] sm:$0xff]  ;;  %v1387_v54 = vcombine.low %v373_v42, %v381_v43  ;;  %v1425_v42 = vcombine.low %v408_v37, %v408_v37 }
  0x55   : > { %910 = vmatprep.subr.bf16.mxu0 %v1352_v53  ;;  %951 = vmatprep.subr.bf16.mxu1 %v1354_v55  ;;  %v398_v53 = vld [vmem:[%s1742_s4 + $0x1e8] sm:$0xff]  ;;  %v1389_v55 = vcombine.low %v374_v44, %v382_v45 }
  0x56   : > { %v1406_v57 = vcombine.high %v390_v52, %v398_v53  ;;  %v823_v44 = vsel %vm779_vm0, %v1425_v42, 0 }
  0x57   : > { %1428 = vmatmul.mubr.msk.bf16.vlgmr.msra.gmra.mrb[0].mxu0 %vm775_vm1, %v1777_v60  ;;  %1430 = vmatmul.mubr.msk.bf16.vlgmr.msra.gmra.mrb[0].mxu1 %vm775_vm1, %v1777_v60 }
  0x58   : > { %911 = vmatpush1.bf16.msra.mxu0 %v1351_v61  ;;  %952 = vmatpush1.bf16.msra.mxu1 %v1353_v62  ;;  %v1403_v61 = vcombine.low %v389_v50, %v397_v51  ;;  %v1405_v62 = vcombine.low %v390_v52, %v398_v53 }
  0x59   : > { %912 = vmatprep.subr.bf16.mxu0 %v1368_v63  ;;  %953 = vmatprep.subr.bf16.mxu1 %v1370_v0  ;;  %v1420_v63 = vcombine.high %v405_v58, %v405_v58  ;;  %v1419_v0 = vcombine.low %v405_v58, %v405_v58 }
  0x5a   : > { %942 = vmatprep.mubr.bf16.mxu0 %v1530_v8  ;;  %983 = vmatprep.mubr.bf16.mxu1 %v1530_v8 }
  0x5c   : > { %913 = vmatpush1.bf16.msra.mxu0 %v1367_v5  ;;  %954 = vmatpush1.bf16.msra.mxu1 %v1369_v6  ;;  %v344_v5 = vld [vmem:[%s1742_s4 + $0x38] sm:$0xff] }
  0x5d   : > { %914 = vmatprep.subr.bf16.mxu0 %v1384_v7  ;;  %955 = vmatprep.subr.bf16.mxu1 %v1386_v9  ;;  %v352_v6 = vld [vmem:[%s1742_s4 + $0x78] sm:$0xff]  ;;  %v805_v7 = vsel %vm779_vm0, %v1419_v0, 0  ;;  %v1360_v9 = vcombine.high %v343_v3, %v351_v4 }
  0x5e   : > { %v1362_v11 = vcombine.high %v344_v5, %v352_v6 }
  0x60   : > { %915 = vmatpush1.bf16.msra.mxu0 %v1383_v14  ;;  %956 = vmatpush1.bf16.msra.mxu1 %v1385_v15  ;;  %v360_v14 = vld [vmem:[%s1742_s4 + $0xb8] sm:$0xff] }
  0x61   : > { %916 = vmatprep.subr.bf16.mxu0 %v1400_v16  ;;  %957 = vmatprep.subr.bf16.mxu1 %v1402_v17  ;;  %v368_v15 = vld [vmem:[%s1742_s4 + $0xf8] sm:$0xff]  ;;  %v1359_v16 = vcombine.low %v343_v3, %v351_v4  ;;  %v1361_v17 = vcombine.low %v344_v5, %v352_v6 }
  0x62   : > { %v1378_v19 = vcombine.high %v360_v14, %v368_v15  ;;  %v1377_v25 = vcombine.low %v360_v14, %v368_v15 }
  0x64   : > { %917 = vmatpush1.bf16.msra.mxu0 %v1399_v20  ;;  %958 = vmatpush1.bf16.msra.mxu1 %v1401_v21  ;;  %v375_v20 = vld [vmem:[%s1742_s4 + $0x130] sm:$0xff] }
  0x65   : > { %1431 = vmatprep.subr.msk.bf16.mxu0 %vm779_vm0, %v1416_v22  ;;  %1433 = vmatprep.subr.msk.bf16.mxu1 %vm779_vm0, %v1418_v24  ;;  %v383_v21 = vld [vmem:[%s1742_s4 + $0x170] sm:$0xff]  ;;  %v376_v22 = vld [vmem:[%s1742_s4 + $0x138] sm:$0xff]  ;;  %v1375_v24 = vcombine.low %v359_v12, %v367_v13 }
  0x66   : > { %v1392_v26 = vcombine.high %v375_v20, %v383_v21  ;;  %v1394_v27 = vcombine.high %v376_v22, %v384_v23 }
  0x68   : > { %919 = vmatpush1.bf16.msra.mxu0 %v793_v30  ;;  %960 = vmatpush1.bf16.msra.mxu1 %v799_v32  ;;  %v392_v30 = vld [vmem:[%s1742_s4 + $0x1b8] sm:$0xff]  ;;  %v1391_v32 = vcombine.low %v375_v20, %v383_v21 }
  0x69   : > { %992 = vmatprep.subr.bf16.mxu0 %v1356_v31  ;;  %1033 = vmatprep.subr.bf16.mxu1 %v1358_v33  ;;  %v400_v31 = vld [vmem:[%s1742_s4 + $0x1f8] sm:$0xff]  ;;  %v1393_v33 = vcombine.low %v376_v22, %v384_v23 }
  0x6a   : > { %v1410_v35 = vcombine.high %v392_v30, %v400_v31 }
  0x6b   : > { %1432 = vmatmul.mubr.msk.bf16.vlgmr.msra.gmra.mrb[4].mxu0 %vm775_vm1, %v1777_v60  ;;  %1434 = vmatmul.mubr.msk.bf16.vlgmr.msra.gmra.mrb[4].mxu1 %vm775_vm1, %v1777_v60 }
  0x6c   : > { %993 = vmatpush1.bf16.msra.mxu0 %v1355_v38  ;;  %1034 = vmatpush1.bf16.msra.mxu1 %v1357_v39  ;;  %v1407_v38 = vcombine.low %v391_v28, %v399_v29  ;;  %v1409_v39 = vcombine.low %v392_v30, %v400_v31 }
  0x6d   : > { %994 = vmatprep.subr.bf16.mxu0 %v1372_v40  ;;  %1035 = vmatprep.subr.bf16.mxu1 %v1374_v41  ;;  %v1424_v40 = vcombine.high %v407_v36, %v407_v36  ;;  %v1423_v41 = vcombine.low %v407_v36, %v407_v36 }
  0x6e   : > { %1024 = vmatprep.mubr.bf16.mxu0 %v1530_v8  ;;  %1065 = vmatprep.mubr.bf16.mxu1 %v1530_v8 }
  0x6f   : > { %v817_v43 = vsel %vm779_vm0, %v1423_v41, 0 }
  0x70   : > { %995 = vmatpush1.bf16.msra.mxu0 %v1371_v46  ;;  %1036 = vmatpush1.bf16.msra.mxu1 %v1373_v47 }
  0x71   : > { %996 = vmatprep.subr.bf16.mxu0 %v1388_v48  ;;  %1037 = vmatprep.subr.bf16.mxu1 %v1390_v49 }
  0x74   : > { %997 = vmatpush1.bf16.msra.mxu0 %v1387_v54  ;;  %1038 = vmatpush1.bf16.msra.mxu1 %v1389_v55 }
  0x75   : > { %998 = vmatprep.subr.bf16.mxu0 %v1404_v56  ;;  %1039 = vmatprep.subr.bf16.mxu1 %v1406_v57 }
  0x78   : > { %999 = vmatpush1.bf16.msra.mxu0 %v1403_v61  ;;  %1040 = vmatpush1.bf16.msra.mxu1 %v1405_v62 }
  0x79   : > { %1435 = vmatprep.subr.msk.bf16.mxu0 %vm779_vm0, %v1420_v63  ;;  %1437 = vmatprep.subr.msk.bf16.mxu1 %vm779_vm0, %v1422_v1 }
  0x7c   : > { %1001 = vmatpush1.bf16.msra.mxu0 %v805_v7  ;;  %1042 = vmatpush1.bf16.msra.mxu1 %v811_v10 }
  0x7d   : > { %1074 = vmatprep.subr.bf16.mxu0 %v1360_v9  ;;  %1115 = vmatprep.subr.bf16.mxu1 %v1362_v11 }
  0x7f   : > { %1436 = vmatmul.mubr.msk.bf16.vlgmr.msra.gmra.mrb[8].mxu0 %vm775_vm1, %v1777_v60  ;;  %1438 = vmatmul.mubr.msk.bf16.vlgmr.msra.gmra.mrb[8].mxu1 %vm775_vm1, %v1777_v60 }
  0x80   : > { %1075 = vmatpush1.bf16.msra.mxu0 %v1359_v16  ;;  %1116 = vmatpush1.bf16.msra.mxu1 %v1361_v17 }
  0x81   : > { %1076 = vmatprep.subr.bf16.mxu0 %v1376_v18  ;;  %1117 = vmatprep.subr.bf16.mxu1 %v1378_v19 }
  0x82   : > { %1106 = vmatprep.mubr.bf16.mxu0 %v1530_v8  ;;  %1147 = vmatprep.mubr.bf16.mxu1 %v1530_v8  ;;  %v1426_v8 = vcombine.high %v408_v37, %v408_v37 }
  0x84   : > { %1077 = vmatpush1.bf16.msra.mxu0 %v1375_v24  ;;  %1118 = vmatpush1.bf16.msra.mxu1 %v1377_v25 }
  0x85   : > { %1078 = vmatprep.subr.bf16.mxu0 %v1392_v26  ;;  %1119 = vmatprep.subr.bf16.mxu1 %v1394_v27 }
  0x88   : > { %1079 = vmatpush1.bf16.msra.mxu0 %v1391_v32  ;;  %1120 = vmatpush1.bf16.msra.mxu1 %v1393_v33 }
  0x89   : > { %1080 = vmatprep.subr.bf16.mxu0 %v1408_v34  ;;  %1121 = vmatprep.subr.bf16.mxu1 %v1410_v35 }
  0x8c   : > { %1081 = vmatpush1.bf16.msra.mxu0 %v1407_v38  ;;  %1122 = vmatpush1.bf16.msra.mxu1 %v1409_v39 }
  0x8d   : > { %1439 = vmatprep.subr.msk.bf16.mxu0 %vm779_vm0, %v1424_v40  ;;  %1441 = vmatprep.subr.msk.bf16.mxu1 %vm779_vm0, %v1426_v8 }
  0x90   : > { %1083 = vmatpush1.bf16.msra.mxu0 %v817_v43  ;;  %1124 = vmatpush1.bf16.msra.mxu1 %v823_v44 }
  0x93   : > { %1440 = vmatmul.mubr.msk.bf16.vlgmr.msra.gmra.mrb[12].mxu0 %vm775_vm1, %v1777_v60  ;;  %1442 = vmatmul.mubr.msk.bf16.vlgmr.msra.gmra.mrb[12].mxu1 %vm775_vm1, %v1777_v60 }
  0xbc   : > { %v1861_v45 = vpop.permute.xlu0 %412 }
 0x12a   : > { %v862_v46 = vpop.f32.mrb[0].mxu0  ;;  %v903_v48 = vpop.f32.mrb[0].mxu1 }
 0x12b   : > { %v863_v47 = vadd.f32 %v862_v46, %v1861_v45  ;;  %v864_v49 = vpop.f32.mrb[1].mxu0  ;;  %v904_v50 = vadd.f32 %v903_v48, %v1861_v45  ;;  %v905_v52 = vpop.f32.mrb[1].mxu1 }
 0x12c   : > { %v865_v51 = vadd.f32 %v864_v49, %v1861_v45  ;;  %v866_v53 = vpop.f32.mrb[2].mxu0  ;;  %v906_v60 = vadd.f32 %v905_v52, %v1861_v45  ;;  %v907_v55 = vpop.f32.mrb[2].mxu1 }
 0x12d   : > { %vm1156_vm2 = vcmp.ge.f32.partialorder %v863_v47, 0.0  ;;  %v1172_v54 = vmul.f32 0.2, %v863_v47  ;;  %v867_v56 = vpop.f32.mrb[3].mxu0  ;;  %vm1158_vm3 = vcmp.ge.f32.partialorder %v904_v50, 0.0  ;;  %v908_v62 = vpop.f32.mrb[3].mxu1 }
 0x12e   : > { %v1174_v57 = vmul.f32 0.2, %v904_v50  ;;  %vm1157_vm4 = vcmp.ge.f32.partialorder %v865_v51, 0.0  ;;  %v1173_v58 = vmul.f32 0.2, %v865_v51  ;;  %vm1159_vm5 = vcmp.ge.f32.partialorder %v906_v60, 0.0 }
 0x12f   : > { %v1188_v59 = vsel %vm1156_vm2, %v863_v47, %v1172_v54  ;;  %v1175_v61 = vmul.f32 0.2, %v906_v60 }
 0x130   : > { %v1190_v63 = vsel %vm1158_vm3, %v904_v50, %v1174_v57  ;;  %v1189_v0 = vsel %vm1157_vm4, %v865_v51, %v1173_v58 }
 0x131   : > { %v1454_v1 = vpack.c.bf16 %v1189_v0, %v1188_v59  ;;  %v1191_v2 = vsel %vm1159_vm5, %v906_v60, %v1175_v61 }
 0x132   : > { %v1455_v3 = vpack.c.bf16 %v1191_v2, %v1190_v63 }
 0x133   : > { %1268 = vst [vmem:[%s1870_s11] sm:$0xff] %v1454_v1 }
 0x134   : > { %1269 = vst [vmem:[%s1870_s11 + $0x8] sm:$0xff] %v1455_v3 }
 0x13e   : > { %v944_v4 = vpop.f32.mrb[4].mxu0  ;;  %v985_v6 = vpop.f32.mrb[4].mxu1 }
 0x13f   : > { %v945_v5 = vadd.f32 %v944_v4, %v1861_v45  ;;  %v946_v7 = vpop.f32.mrb[5].mxu0  ;;  %v986_v9 = vadd.f32 %v985_v6, %v1861_v45  ;;  %v987_v11 = vpop.f32.mrb[5].mxu1 }
 0x140   : > { %v947_v10 = vadd.f32 %v946_v7, %v1861_v45  ;;  %v948_v12 = vpop.f32.mrb[6].mxu0  ;;  %v988_v14 = vadd.f32 %v987_v11, %v1861_v45  ;;  %v989_v15 = vpop.f32.mrb[6].mxu1 }
 0x141   : > { %vm1160_vm6 = vcmp.ge.f32.partialorder %v945_v5, 0.0  ;;  %v1176_v13 = vmul.f32 0.2, %v945_v5  ;;  %v949_v16 = vpop.f32.mrb[7].mxu0  ;;  %vm1162_vm7 = vcmp.ge.f32.partialorder %v986_v9, 0.0  ;;  %v990_v21 = vpop.f32.mrb[7].mxu1 }
 0x142   : > { %v1178_v17 = vmul.f32 0.2, %v986_v9  ;;  %vm1161_vm8 = vcmp.ge.f32.partialorder %v947_v10, 0.0  ;;  %v1177_v18 = vmul.f32 0.2, %v947_v10  ;;  %vm1163_vm9 = vcmp.ge.f32.partialorder %v988_v14, 0.0 }
 0x143   : > { %v1192_v19 = vsel %vm1160_vm6, %v945_v5, %v1176_v13  ;;  %v1179_v20 = vmul.f32 0.2, %v988_v14 }
 0x144   : > { %v1194_v22 = vsel %vm1162_vm7, %v986_v9, %v1178_v17  ;;  %v1193_v23 = vsel %vm1161_vm8, %v947_v10, %v1177_v18 }
 0x145   : > { %v1456_v24 = vpack.c.bf16 %v1193_v23, %v1192_v19  ;;  %v1195_v25 = vsel %vm1163_vm9, %v988_v14, %v1179_v20 }
 0x146   : > { %v1457_v26 = vpack.c.bf16 %v1195_v25, %v1194_v22 }
 0x147   : > { %1270 = vst [vmem:[%s1870_s11 + $0x10] sm:$0xff] %v1456_v24 }
 0x148   : > { %1271 = vst [vmem:[%s1870_s11 + $0x18] sm:$0xff] %v1457_v26 }
 0x152   : > { %v1026_v27 = vpop.f32.mrb[8].mxu0  ;;  %v1067_v29 = vpop.f32.mrb[8].mxu1 }
 0x153   : > { %v1027_v28 = vadd.f32 %v1026_v27, %v1861_v45  ;;  %v1028_v30 = vpop.f32.mrb[9].mxu0  ;;  %v1068_v31 = vadd.f32 %v1067_v29, %v1861_v45  ;;  %v1069_v33 = vpop.f32.mrb[9].mxu1 }
 0x154   : > { %v1029_v32 = vadd.f32 %v1028_v30, %v1861_v45  ;;  %v1030_v34 = vpop.f32.mrb[10].mxu0  ;;  %v1070_v36 = vadd.f32 %v1069_v33, %v1861_v45  ;;  %v1071_v37 = vpop.f32.mrb[10].mxu1 }
 0x155   : > { %vm1164_vm10 = vcmp.ge.f32.partialorder %v1027_v28, 0.0  ;;  %v1180_v35 = vmul.f32 0.2, %v1027_v28  ;;  %v1031_v38 = vpop.f32.mrb[11].mxu0  ;;  %vm1166_vm11 = vcmp.ge.f32.partialorder %v1068_v31, 0.0  ;;  %v1072_v42 = vpop.f32.mrb[11].mxu1 }
 0x156   : > { %v1182_v39 = vmul.f32 0.2, %v1068_v31  ;;  %vm1165_vm12 = vcmp.ge.f32.partialorder %v1029_v32, 0.0  ;;  %v1181_v40 = vmul.f32 0.2, %v1029_v32  ;;  %vm1167_vm13 = vcmp.ge.f32.partialorder %v1070_v36, 0.0 }
 0x157   : > { %v1196_v41 = vsel %vm1164_vm10, %v1027_v28, %v1180_v35  ;;  %v1183_v8 = vmul.f32 0.2, %v1070_v36 }
 0x158   : > { %v1198_v43 = vsel %vm1166_vm11, %v1068_v31, %v1182_v39  ;;  %v1197_v44 = vsel %vm1165_vm12, %v1029_v32, %v1181_v40 }
 0x159   : > { %v1458_v46 = vpack.c.bf16 %v1197_v44, %v1196_v41  ;;  %v1199_v47 = vsel %vm1167_vm13, %v1070_v36, %v1183_v8 }
 0x15a   : > { %v1459_v48 = vpack.c.bf16 %v1199_v47, %v1198_v43 }
 0x15b   : > { %1272 = vst [vmem:[%s1870_s11 + $0x20] sm:$0xff] %v1458_v46 }
 0x15c   : > { %1273 = vst [vmem:[%s1870_s11 + $0x28] sm:$0xff] %v1459_v48 }
 0x166   : > { %v1108_v49 = vpop.f32.mrb[12].mxu0  ;;  %v1149_v51 = vpop.f32.mrb[12].mxu1 }
 0x167   : > { %v1109_v50 = vadd.f32 %v1108_v49, %v1861_v45  ;;  %v1110_v52 = vpop.f32.mrb[13].mxu0  ;;  %v1150_v53 = vadd.f32 %v1149_v51, %v1861_v45  ;;  %v1151_v60 = vpop.f32.mrb[13].mxu1 }
 0x168   : > { %v1111_v54 = vadd.f32 %v1110_v52, %v1861_v45  ;;  %v1112_v55 = vpop.f32.mrb[14].mxu0  ;;  %v1152_v57 = vadd.f32 %v1151_v60, %v1861_v45  ;;  %v1153_v58 = vpop.f32.mrb[14].mxu1 }
 0x169   : > { %vm1168_vm14 = vcmp.ge.f32.partialorder %v1109_v50, 0.0  ;;  %v1184_v56 = vmul.f32 0.2, %v1109_v50  ;;  %v1113_v59 = vpop.f32.mrb[15].mxu0  ;;  %vm1170_vm15 = vcmp.ge.f32.partialorder %v1150_v53, 0.0  ;;  %v1154_v1 = vpop.f32.mrb[15].mxu1 }
 0x16a   : > { %v1186_v61 = vmul.f32 0.2, %v1150_v53  ;;  %vm1169_vm0 = vcmp.ge.f32.partialorder %v1111_v54, 0.0  ;;  %v1185_v62 = vmul.f32 0.2, %v1111_v54  ;;  %vm1171_vm1 = vcmp.ge.f32.partialorder %v1152_v57, 0.0 }
 0x16b   : > { %v1200_v63 = vsel %vm1168_vm14, %v1109_v50, %v1184_v56  ;;  %v1187_v0 = vmul.f32 0.2, %v1152_v57 }
 0x16c   : > { %v1202_v2 = vsel %vm1170_vm15, %v1150_v53, %v1186_v61  ;;  %v1201_v3 = vsel %vm1169_vm0, %v1111_v54, %v1185_v62 }
 0x16d   : > { %v1460_v4 = vpack.c.bf16 %v1201_v3, %v1200_v63  ;;  %v1203_v5 = vsel %vm1171_vm1, %v1152_v57, %v1187_v0 }
 0x16e   : > { %v1461_v6 = vpack.c.bf16 %v1203_v5, %v1202_v2 }
 0x16f   : > { %1274 = vst [vmem:[%s1870_s11 + $0x30] sm:$0xff] %v1460_v4 }
 0x170   : > { %1275 = vst [vmem:[%s1870_s11 + $0x38] sm:$0xff] %v1461_v6 }
 0x171 PF: > { %p10_p9 = scmp.ge.s32.totalorder %s1568_s16, 4   ;;  %s1906_s12 = smov %s1524_s13 }
 0x172   : > { %s1907_s13 = smov %s1577_s19  ;;  %s1908_s14 = smov %s1568_s16 }
 0x173   :  { %12 = sbr.rel (!%p10_p9) target bundleno = 2 (0x2), region = 90 }

// kernel: generator_forward.15
= control target key start
LH: loop header
LB: loop body
LE: loop exit
PB: predicated region body
PF: predicated region fallthrough
CT: control target
= control target key end

     0   :  { %s1215_s12 = smov 0   ;;  %s1217_s13 = smov 0   ;;  %s1470_s0 = inlined_call_operand.vmem [shape: bf16[4,36], index: 0, kind: input, shape index: {}]   ;;  %s1471_s1 = inlined_call_operand.vmem [shape: bf16[36,16384], index: 1, kind: input, shape index: {}]   ;;  %s1472_s2 = inlined_call_operand.vmem [shape: f32[4,1], index: 2, kind: input, shape index: {}]   ;;  %s1473_s3 = inlined_call_operand.vmem [shape: f32[4,16384], index: 3, kind: output, shape index: {}]  }
   0x1   :  { %s1219_s14 = smov 0  }
   0x2 LB: > { %s1018_s15 = sadd.s32 4294967295, %s1192_s14   ;;  %s1232_s16 = sadd.s32 1, %s1192_s14   ;;  %s1192_s14 = sphi %s1219_s14, %s1476_s14   ;;  %s1188_s13 = sphi %s1217_s13, %s1475_s13   ;;  %s1184_s12 = sphi %s1215_s12, %s1474_s12  }
   0x3   : > { %s38_s17 = ssub.s32 %s1192_s14, %s1232_s16  ;;  %s41_s18 = sadd.s32 1, %s1188_s13 }
   0x4   : > { %p39_p0 = scmp.eq.s32.totalorder %s38_s17, 0  ;;  %p48_p1 = scmp.ne.s32.totalorder %s1188_s13, %s1184_s12 }
   0x5   : > { %p49_p2 = scmp.eq.s32.totalorder %s1192_s14, 0  ;;  %p1021_p4 = scmp.ge.s32.totalorder %s1192_s14, 8 }
   0x6   : > { %s1241_s19 = scalar_select %p39_p0, %s1188_s13, %s41_s18  }
   0x7   : > { %p50_p3 = por %p49_p2, %p48_p1  ;;  %127 = sbr.rel (%p1021_p4) target bundleno = 39 (0x27), region = 24 }
   0xe   : > { %130 = sbr.rel (!%p50_p3) target bundleno = 39 (0x27), region = 28  ;;  %s132_s20 = sand.u32 (%p50_p3), 1, %s1188_s13  }
   0xf   : > { %s1093_s21 = sshll.u32 (%p50_p3), %s1192_s14, 6  ;;  %s1094_s22 = smul.u32 (%p50_p3), 320, %s132_s20 }
  0x10   : > { %s1249_s25 = scalar_lea.vmem (%p50_p3), %s1471_s1, %s1093_s21 }
  0x11   : > { %v150_v0 = vld [vmem:[%s1249_s25] sm:$0xff] (%p50_p3)  ;;  %v152_v1 = vld [vmem:[%s1249_s25 + $0x8] sm:$0xff] (%p50_p3)  ;;  %v154_v2 = vld [vmem:[%s1249_s25 + $0x10] sm:$0xff] (%p50_p3)  ;;  %s1257_s26 = scalar_lea.vmem (%p50_p3), [#allocation2], %s1094_s22 }
  0x12   : > { %v156_v3 = vld [vmem:[%s1249_s25 + $0x18] sm:$0xff] (%p50_p3)  ;;  %v158_v4 = vld [vmem:[%s1249_s25 + $0x20] sm:$0xff] (%p50_p3)  ;;  %v160_v5 = vld [vmem:[%s1249_s25 + $0x28] sm:$0xff] (%p50_p3)  ;;  %151 = vst [vmem:[%s1257_s26] sm:$0xff] (%p50_p3), %v150_v0 }
  0x13   : > { %153 = vst [vmem:[%s1257_s26 + $0x8] sm:$0xff] (%p50_p3), %v152_v1  ;;  %155 = vst [vmem:[%s1257_s26 + $0x10] sm:$0xff] (%p50_p3), %v154_v2  ;;  %v162_v6 = vld [vmem:[%s1249_s25 + $0x30] sm:$0xff] (%p50_p3)  ;;  %v164_v7 = vld [vmem:[%s1249_s25 + $0x38] sm:$0xff] (%p50_p3) }
  0x14   : > { %157 = vst [vmem:[%s1257_s26 + $0x18] sm:$0xff] (%p50_p3), %v156_v3  ;;  %159 = vst [vmem:[%s1257_s26 + $0x20] sm:$0xff] (%p50_p3), %v158_v4  ;;  %v166_v8 = vld [vmem:[%s1249_s25 + $0x200] sm:$0xff] (%p50_p3)  ;;  %v168_v9 = vld [vmem:[%s1249_s25 + $0x208] sm:$0xff] (%p50_p3) }
  0x15   : > { %161 = vst [vmem:[%s1257_s26 + $0x28] sm:$0xff] %v160_v5  ;;  %163 = vst [vmem:[%s1257_s26 + $0x30] sm:$0xff] %v162_v6  ;;  %v170_v10 = vld [vmem:[%s1249_s25 + $0x210] sm:$0xff]  ;;  %v172_v11 = vld [vmem:[%s1249_s25 + $0x218] sm:$0xff] }
  0x16   : > { %165 = vst [vmem:[%s1257_s26 + $0x38] sm:$0xff] %v164_v7  ;;  %167 = vst [vmem:[%s1257_s26 + $0x40] sm:$0xff] %v166_v8  ;;  %v174_v12 = vld [vmem:[%s1249_s25 + $0x220] sm:$0xff]  ;;  %v176_v13 = vld [vmem:[%s1249_s25 + $0x228] sm:$0xff] }
  0x17   : > { %169 = vst [vmem:[%s1257_s26 + $0x48] sm:$0xff] %v168_v9  ;;  %171 = vst [vmem:[%s1257_s26 + $0x50] sm:$0xff] %v170_v10  ;;  %v178_v14 = vld [vmem:[%s1249_s25 + $0x230] sm:$0xff]  ;;  %v180_v15 = vld [vmem:[%s1249_s25 + $0x238] sm:$0xff] }
  0x18   : > { %173 = vst [vmem:[%s1257_s26 + $0x58] sm:$0xff] %v172_v11  ;;  %175 = vst [vmem:[%s1257_s26 + $0x60] sm:$0xff] %v174_v12  ;;  %v182_v16 = vld [vmem:[%s1249_s25 + $0x400] sm:$0xff]  ;;  %v184_v17 = vld [vmem:[%s1249_s25 + $0x408] sm:$0xff] }
  0x19   : > { %177 = vst [vmem:[%s1257_s26 + $0x68] sm:$0xff] %v176_v13  ;;  %179 = vst [vmem:[%s1257_s26 + $0x70] sm:$0xff] %v178_v14  ;;  %v186_v18 = vld [vmem:[%s1249_s25 + $0x410] sm:$0xff]  ;;  %v188_v19 = vld [vmem:[%s1249_s25 + $0x418] sm:$0xff] }
  0x1a   : > { %181 = vst [vmem:[%s1257_s26 + $0x78] sm:$0xff] %v180_v15  ;;  %183 = vst [vmem:[%s1257_s26 + $0x80] sm:$0xff] %v182_v16  ;;  %v190_v20 = vld [vmem:[%s1249_s25 + $0x420] sm:$0xff]  ;;  %v192_v21 = vld [vmem:[%s1249_s25 + $0x428] sm:$0xff] }
  0x1b   : > { %185 = vst [vmem:[%s1257_s26 + $0x88] sm:$0xff] %v184_v17  ;;  %187 = vst [vmem:[%s1257_s26 + $0x90] sm:$0xff] %v186_v18  ;;  %v194_v22 = vld [vmem:[%s1249_s25 + $0x430] sm:$0xff]  ;;  %v196_v23 = vld [vmem:[%s1249_s25 + $0x438] sm:$0xff] }
  0x1c   : > { %189 = vst [vmem:[%s1257_s26 + $0x98] sm:$0xff] %v188_v19  ;;  %191 = vst [vmem:[%s1257_s26 + $0xa0] sm:$0xff] %v190_v20  ;;  %v198_v24 = vld [vmem:[%s1249_s25 + $0x600] sm:$0xff]  ;;  %v200_v25 = vld [vmem:[%s1249_s25 + $0x608] sm:$0xff] }
  0x1d   : > { %193 = vst [vmem:[%s1257_s26 + $0xa8] sm:$0xff] %v192_v21  ;;  %195 = vst [vmem:[%s1257_s26 + $0xb0] sm:$0xff] %v194_v22  ;;  %v202_v26 = vld [vmem:[%s1249_s25 + $0x610] sm:$0xff]  ;;  %v204_v27 = vld [vmem:[%s1249_s25 + $0x618] sm:$0xff] }
  0x1e   : > { %197 = vst [vmem:[%s1257_s26 + $0xb8] sm:$0xff] %v196_v23  ;;  %199 = vst [vmem:[%s1257_s26 + $0xc0] sm:$0xff] %v198_v24  ;;  %v206_v28 = vld [vmem:[%s1249_s25 + $0x620] sm:$0xff]  ;;  %v208_v29 = vld [vmem:[%s1249_s25 + $0x628] sm:$0xff] }
  0x1f   : > { %201 = vst [vmem:[%s1257_s26 + $0xc8] sm:$0xff] %v200_v25  ;;  %203 = vst [vmem:[%s1257_s26 + $0xd0] sm:$0xff] %v202_v26  ;;  %v210_v30 = vld [vmem:[%s1249_s25 + $0x630] sm:$0xff]  ;;  %v212_v31 = vld [vmem:[%s1249_s25 + $0x638] sm:$0xff] }
  0x20   : > { %205 = vst [vmem:[%s1257_s26 + $0xd8] sm:$0xff] %v204_v27  ;;  %207 = vst [vmem:[%s1257_s26 + $0xe0] sm:$0xff] %v206_v28  ;;  %v214_v32 = vld [vmem:[%s1249_s25 + $0x800] sm:$0xff]  ;;  %v216_v33 = vld [vmem:[%s1249_s25 + $0x808] sm:$0xff] }
  0x21   : > { %209 = vst [vmem:[%s1257_s26 + $0xe8] sm:$0xff] %v208_v29  ;;  %211 = vst [vmem:[%s1257_s26 + $0xf0] sm:$0xff] %v210_v30  ;;  %v218_v34 = vld [vmem:[%s1249_s25 + $0x810] sm:$0xff]  ;;  %v220_v35 = vld [vmem:[%s1249_s25 + $0x818] sm:$0xff] }
  0x22   : > { %213 = vst [vmem:[%s1257_s26 + $0xf8] sm:$0xff] %v212_v31  ;;  %215 = vst [vmem:[%s1257_s26 + $0x100] sm:$0xff] %v214_v32  ;;  %v222_v36 = vld [vmem:[%s1249_s25 + $0x820] sm:$0xff]  ;;  %v224_v37 = vld [vmem:[%s1249_s25 + $0x828] sm:$0xff] }
  0x23   : > { %217 = vst [vmem:[%s1257_s26 + $0x108] sm:$0xff] %v216_v33  ;;  %219 = vst [vmem:[%s1257_s26 + $0x110] sm:$0xff] %v218_v34  ;;  %v226_v38 = vld [vmem:[%s1249_s25 + $0x830] sm:$0xff]  ;;  %v228_v39 = vld [vmem:[%s1249_s25 + $0x838] sm:$0xff] }
  0x24   : > { %221 = vst [vmem:[%s1257_s26 + $0x118] sm:$0xff] %v220_v35  ;;  %223 = vst [vmem:[%s1257_s26 + $0x120] sm:$0xff] %v222_v36 }
  0x25   : > { %225 = vst [vmem:[%s1257_s26 + $0x128] sm:$0xff] %v224_v37  ;;  %227 = vst [vmem:[%s1257_s26 + $0x130] sm:$0xff] %v226_v38 }
  0x26   : > { %229 = vst [vmem:[%s1257_s26 + $0x138] sm:$0xff] %v228_v39 }
  0x27 PF: > { %p1024_p5 = scmp.ge.s32.totalorder %s1192_s14, 1  ;;  %p234_p6 = scmp.lt.s32.totalorder %s1192_s14, 9 }
  0x29   : > { %p235_p7 = pnand %p1024_p5, %p234_p6 }
  0x2a   : > { %s241_s27 = sand.u32 (!%p235_p7), 1, %s1184_s12   ;;  %v1194_v40 = vmov (!%p235_p7), 0   ;;  %v313_v41 = vld [vmem:[%s1472_s2] sm:$0xf] (!%p235_p7)  ;;  %vm523_vm0 = vcmask (!%p235_p7), 1041408   ;;  %vm519_vm1 = vcmask (!%p235_p7), 293888  }
  0x2b   : > { %238 = sbr.rel (%p235_p7) target bundleno = 330 (0x14a), region = 51  ;;  %604 = vmatprep.mubr.bf16.mxu0 (!%p235_p7), %v1194_v40  ;;  %645 = vmatprep.mubr.bf16.mxu1 (!%p235_p7), %v1194_v40  ;;  %v1369_v12 = vld [vmem:[%s1470_s0] sm:$0x3] (!%p235_p7)  ;;  %s1025_s7 = sshll.u32 (!%p235_p7), %s1018_s15, 4 }
  0x2c   : > { %s1095_s28 = smul.u32 (!%p235_p7), 320, %s241_s27  ;;  %1121 = vset.pattern.permute.xlu0 (!%p235_p7), %v1194_v40  ;;  %p266_p8 = scmp.lt.s32.totalorder (!%p235_p7), %s1025_s7, 127 }
  0x2d   : > { %316 = vperm.xlu0 (!%p235_p7), %1121, %v313_v41  }
  0x2e   : > { %s1342_s4 = scalar_lea.vmem (!%p235_p7), [#allocation2], %s1095_s28 }
  0x2f   : > { %v273_v42 = vld [vmem:[%s1342_s4] sm:$0xff] (!%p235_p7)  ;;  %v274_v44 = vld [vmem:[%s1342_s4 + $0x8] sm:$0xff] (!%p235_p7)  ;;  %v275_v0 = vld [vmem:[%s1342_s4 + $0x10] sm:$0xff] (!%p235_p7) }
  0x30   : > { %v281_v43 = vld [vmem:[%s1342_s4 + $0x40] sm:$0xff] (!%p235_p7)  ;;  %v282_v46 = vld [vmem:[%s1342_s4 + $0x48] sm:$0xff] (!%p235_p7)  ;;  %v283_v1 = vld [vmem:[%s1342_s4 + $0x50] sm:$0xff] (!%p235_p7) }
  0x31   : > { %v1028_v45 = vcombine.high (!%p235_p7), %v273_v42, %v281_v43  ;;  %v1027_v47 = vcombine.low (!%p235_p7), %v273_v42, %v281_v43  ;;  %v289_v48 = vld [vmem:[%s1342_s4 + $0x80] sm:$0xff] (!%p235_p7)  ;;  %v1030_v50 = vcombine.high (!%p235_p7), %v274_v44, %v282_v46  ;;  %v1029_v51 = vcombine.low (!%p235_p7), %v274_v44, %v282_v46  ;;  %v290_v53 = vld [vmem:[%s1342_s4 + $0x88] sm:$0xff] (!%p235_p7)  ;;  %v276_v2 = vld [vmem:[%s1342_s4 + $0x18] sm:$0xff] (!%p235_p7) }
  0x32   : > { %v297_v49 = vld [vmem:[%s1342_s4 + $0xc0] sm:$0xff]  ;;  %v298_v54 = vld [vmem:[%s1342_s4 + $0xc8] sm:$0xff]  ;;  %v284_v3 = vld [vmem:[%s1342_s4 + $0x58] sm:$0xff]  ;;  %v1032_v5 = vcombine.high %v275_v0, %v283_v1  ;;  %v1031_v13 = vcombine.low %v275_v0, %v283_v1  ;;  %s1478_s7 = smov (!%p266_p8, %s1025_s7), 127 }
  0x33   : > { %v1044_v52 = vcombine.high %v289_v48, %v297_v49  ;;  %v305_v55 = vld [vmem:[%s1342_s4 + $0x100] sm:$0x33]  ;;  %572 = vmatprep.subr.bf16.mxu0 %v1028_v45  ;;  %v1046_v56 = vcombine.high %v290_v53, %v298_v54  ;;  %v306_v57 = vld [vmem:[%s1342_s4 + $0x108] sm:$0x33]  ;;  %613 = vmatprep.subr.bf16.mxu1 %v1030_v50  ;;  %v1043_v58 = vcombine.low %v289_v48, %v297_v49  ;;  %v291_v8 = vld [vmem:[%s1342_s4 + $0x90] sm:$0xff]  ;;  %s1026_s8 = sshll.u32 %s1478_s7, 2 }
  0x34   : > { %573 = vmatpush1.bf16.msra.mxu0 %v1027_v47  ;;  %614 = vmatpush1.bf16.msra.mxu1 %v1029_v51  ;;  %v1045_v59 = vcombine.low %v290_v53, %v298_v54  ;;  %v1060_v60 = vcombine.high %v305_v55, %v305_v55  ;;  %v1059_v61 = vcombine.low %v305_v55, %v305_v55  ;;  %v299_v9 = vld [vmem:[%s1342_s4 + $0xd0] sm:$0xff]  ;;  %v292_v10 = vld [vmem:[%s1342_s4 + $0x98] sm:$0xff]  ;;  %v277_v25 = vld [vmem:[%s1342_s4 + $0x20] sm:$0xff]  ;;  %s1439_s11 = scalar_lea.vmem %s1473_s3, %s1026_s8 }
  0x35   : > { %574 = vmatprep.subr.bf16.mxu0 %v1044_v52  ;;  %615 = vmatprep.subr.bf16.mxu1 %v1046_v56  ;;  %v1062_v62 = vcombine.high %v306_v57, %v306_v57  ;;  %v1061_v63 = vcombine.low %v306_v57, %v306_v57  ;;  %v1034_v7 = vcombine.high %v276_v2, %v284_v3  ;;  %v300_v11 = vld [vmem:[%s1342_s4 + $0xd8] sm:$0xff]  ;;  %v307_v17 = vld [vmem:[%s1342_s4 + $0x110] sm:$0x33]  ;;  %v285_v26 = vld [vmem:[%s1342_s4 + $0x60] sm:$0xff] }
  0x36   : > { %v525_v4 = vsel %vm523_vm0, %v1059_v61, 0  ;;  %v1033_v14 = vcombine.low %v276_v2, %v284_v3  ;;  %v1048_v15 = vcombine.high %v291_v8, %v299_v9  ;;  %v1050_v16 = vcombine.high %v292_v10, %v300_v11  ;;  %v308_v18 = vld [vmem:[%s1342_s4 + $0x118] sm:$0x33]  ;;  %v278_v27 = vld [vmem:[%s1342_s4 + $0x28] sm:$0xff]  ;;  %v293_v33 = vld [vmem:[%s1342_s4 + $0xa0] sm:$0xff] }
  0x37   : > { %v531_v6 = vsel %vm523_vm0, %v1061_v63, 0  ;;  %v1047_v19 = vcombine.low %v291_v8, %v299_v9  ;;  %v1049_v20 = vcombine.low %v292_v10, %v300_v11  ;;  %v1064_v21 = vcombine.high %v307_v17, %v307_v17  ;;  %v286_v28 = vld [vmem:[%s1342_s4 + $0x68] sm:$0xff]  ;;  %v301_v34 = vld [vmem:[%s1342_s4 + $0xe0] sm:$0xff]  ;;  %v279_v50 = vld [vmem:[%s1342_s4 + $0x30] sm:$0xff] }
  0x38   : > { %575 = vmatpush1.bf16.msra.mxu0 %v1043_v58  ;;  %616 = vmatpush1.bf16.msra.mxu1 %v1045_v59  ;;  %v1063_v22 = vcombine.low %v307_v17, %v307_v17  ;;  %v1066_v23 = vcombine.high %v308_v18, %v308_v18  ;;  %v1065_v24 = vcombine.low %v308_v18, %v308_v18  ;;  %v294_v35 = vld [vmem:[%s1342_s4 + $0xa8] sm:$0xff]  ;;  %v309_v42 = vld [vmem:[%s1342_s4 + $0x120] sm:$0x33]  ;;  %v287_v51 = vld [vmem:[%s1342_s4 + $0x70] sm:$0xff] }
  0x39   : > { %1075 = vmatprep.subr.msk.bf16.mxu0 %vm523_vm0, %v1060_v60  ;;  %1077 = vmatprep.subr.msk.bf16.mxu1 %vm523_vm0, %v1062_v62  ;;  %v1036_v30 = vcombine.high %v277_v25, %v285_v26  ;;  %v1038_v32 = vcombine.high %v278_v27, %v286_v28  ;;  %v302_v36 = vld [vmem:[%s1342_s4 + $0xe8] sm:$0xff]  ;;  %v1035_v37 = vcombine.low %v277_v25, %v285_v26  ;;  %v280_v52 = vld [vmem:[%s1342_s4 + $0x38] sm:$0xff]  ;;  %v295_v58 = vld [vmem:[%s1342_s4 + $0xb0] sm:$0xff] }
  0x3a   : > { %v537_v29 = vsel %vm523_vm0, %v1063_v22, 0  ;;  %v543_v31 = vsel %vm523_vm0, %v1065_v24, 0  ;;  %v1037_v38 = vcombine.low %v278_v27, %v286_v28  ;;  %v1052_v39 = vcombine.high %v293_v33, %v301_v34  ;;  %v310_v43 = vld [vmem:[%s1342_s4 + $0x128] sm:$0x33]  ;;  %v288_v53 = vld [vmem:[%s1342_s4 + $0x78] sm:$0xff]  ;;  %v303_v59 = vld [vmem:[%s1342_s4 + $0xf0] sm:$0xff] }
  0x3b   : > { %v1054_v41 = vcombine.high %v294_v35, %v302_v36  ;;  %v1051_v44 = vcombine.low %v293_v33, %v301_v34  ;;  %v1053_v45 = vcombine.low %v294_v35, %v302_v36  ;;  %v1068_v46 = vcombine.high %v309_v42, %v309_v42  ;;  %v296_v60 = vld [vmem:[%s1342_s4 + $0xb8] sm:$0xff]  ;;  %v311_v2 = vld [vmem:[%s1342_s4 + $0x130] sm:$0x33] }
  0x3c   : > { %577 = vmatpush1.bf16.msra.mxu0 %v525_v4  ;;  %618 = vmatpush1.bf16.msra.mxu1 %v531_v6  ;;  %v1067_v47 = vcombine.low %v309_v42, %v309_v42  ;;  %v1070_v48 = vcombine.high %v310_v43, %v310_v43  ;;  %v1069_v49 = vcombine.low %v310_v43, %v310_v43  ;;  %v304_v61 = vld [vmem:[%s1342_s4 + $0xf8] sm:$0xff] }
  0x3d   : > { %654 = vmatprep.subr.bf16.mxu0 %v1032_v5  ;;  %695 = vmatprep.subr.bf16.mxu1 %v1034_v7  ;;  %v1040_v55 = vcombine.high %v279_v50, %v287_v51  ;;  %v1042_v57 = vcombine.high %v280_v52, %v288_v53  ;;  %v1039_v62 = vcombine.low %v279_v50, %v287_v51  ;;  %v312_v3 = vld [vmem:[%s1342_s4 + $0x138] sm:$0x33] }
  0x3e   : > { %v549_v54 = vsel %vm523_vm0, %v1067_v47, 0  ;;  %v555_v56 = vsel %vm523_vm0, %v1069_v49, 0  ;;  %v1041_v63 = vcombine.low %v280_v52, %v288_v53  ;;  %v1056_v0 = vcombine.high %v295_v58, %v303_v59 }
  0x3f   : > { %1076 = vmatmul.mubr.msk.bf16.vlgmr.msra.gmra.mrb[0].mxu0 %vm519_vm1, %v1369_v12  ;;  %1078 = vmatmul.mubr.msk.bf16.vlgmr.msra.gmra.mrb[0].mxu1 %vm519_vm1, %v1369_v12  ;;  %v1058_v1 = vcombine.high %v296_v60, %v304_v61  ;;  %v1055_v4 = vcombine.low %v295_v58, %v303_v59  ;;  %v1057_v5 = vcombine.low %v296_v60, %v304_v61 }
  0x40   : > { %655 = vmatpush1.bf16.msra.mxu0 %v1031_v13  ;;  %696 = vmatpush1.bf16.msra.mxu1 %v1033_v14  ;;  %v1072_v6 = vcombine.high %v311_v2, %v311_v2  ;;  %v1071_v7 = vcombine.low %v311_v2, %v311_v2  ;;  %v1074_v8 = vcombine.high %v312_v3, %v312_v3 }
  0x41   : > { %656 = vmatprep.subr.bf16.mxu0 %v1048_v15  ;;  %697 = vmatprep.subr.bf16.mxu1 %v1050_v16  ;;  %v1073_v9 = vcombine.low %v312_v3, %v312_v3 }
  0x42   : > { %686 = vmatprep.mubr.bf16.mxu0 %v1194_v40  ;;  %727 = vmatprep.mubr.bf16.mxu1 %v1194_v40  ;;  %v561_v10 = vsel %vm523_vm0, %v1071_v7, 0 }
  0x43   : > { %v567_v11 = vsel %vm523_vm0, %v1073_v9, 0 }
  0x44   : > { %657 = vmatpush1.bf16.msra.mxu0 %v1047_v19  ;;  %698 = vmatpush1.bf16.msra.mxu1 %v1049_v20 }
  0x45   : > { %1079 = vmatprep.subr.msk.bf16.mxu0 %vm523_vm0, %v1064_v21  ;;  %1081 = vmatprep.subr.msk.bf16.mxu1 %vm523_vm0, %v1066_v23 }
  0x48   : > { %659 = vmatpush1.bf16.msra.mxu0 %v537_v29  ;;  %700 = vmatpush1.bf16.msra.mxu1 %v543_v31 }
  0x49   : > { %736 = vmatprep.subr.bf16.mxu0 %v1036_v30  ;;  %777 = vmatprep.subr.bf16.mxu1 %v1038_v32 }
  0x4b   : > { %1080 = vmatmul.mubr.msk.bf16.vlgmr.msra.gmra.mrb[4].mxu0 %vm519_vm1, %v1369_v12  ;;  %1082 = vmatmul.mubr.msk.bf16.vlgmr.msra.gmra.mrb[4].mxu1 %vm519_vm1, %v1369_v12 }
  0x4c   : > { %737 = vmatpush1.bf16.msra.mxu0 %v1035_v37  ;;  %778 = vmatpush1.bf16.msra.mxu1 %v1037_v38 }
  0x4d   : > { %738 = vmatprep.subr.bf16.mxu0 %v1052_v39  ;;  %779 = vmatprep.subr.bf16.mxu1 %v1054_v41 }
  0x4e   : > { %768 = vmatprep.mubr.bf16.mxu0 %v1194_v40  ;;  %809 = vmatprep.mubr.bf16.mxu1 %v1194_v40 }
  0x50   : > { %739 = vmatpush1.bf16.msra.mxu0 %v1051_v44  ;;  %780 = vmatpush1.bf16.msra.mxu1 %v1053_v45 }
  0x51   : > { %1083 = vmatprep.subr.msk.bf16.mxu0 %vm523_vm0, %v1068_v46  ;;  %1085 = vmatprep.subr.msk.bf16.mxu1 %vm523_vm0, %v1070_v48 }
  0x54   : > { %741 = vmatpush1.bf16.msra.mxu0 %v549_v54  ;;  %782 = vmatpush1.bf16.msra.mxu1 %v555_v56 }
  0x55   : > { %818 = vmatprep.subr.bf16.mxu0 %v1040_v55  ;;  %859 = vmatprep.subr.bf16.mxu1 %v1042_v57 }
  0x57   : > { %1084 = vmatmul.mubr.msk.bf16.vlgmr.msra.gmra.mrb[8].mxu0 %vm519_vm1, %v1369_v12  ;;  %1086 = vmatmul.mubr.msk.bf16.vlgmr.msra.gmra.mrb[8].mxu1 %vm519_vm1, %v1369_v12 }
  0x58   : > { %819 = vmatpush1.bf16.msra.mxu0 %v1039_v62  ;;  %860 = vmatpush1.bf16.msra.mxu1 %v1041_v63 }
  0x59   : > { %820 = vmatprep.subr.bf16.mxu0 %v1056_v0  ;;  %861 = vmatprep.subr.bf16.mxu1 %v1058_v1 }
  0x5a   : > { %850 = vmatprep.mubr.bf16.mxu0 %v1194_v40  ;;  %891 = vmatprep.mubr.bf16.mxu1 %v1194_v40 }
  0x5c   : > { %821 = vmatpush1.bf16.msra.mxu0 %v1055_v4  ;;  %862 = vmatpush1.bf16.msra.mxu1 %v1057_v5 }
  0x5d   : > { %1087 = vmatprep.subr.msk.bf16.mxu0 %vm523_vm0, %v1072_v6  ;;  %1089 = vmatprep.subr.msk.bf16.mxu1 %vm523_vm0, %v1074_v8 }
  0x60   : > { %823 = vmatpush1.bf16.msra.mxu0 %v561_v10  ;;  %864 = vmatpush1.bf16.msra.mxu1 %v567_v11 }
  0x63   : > { %1088 = vmatmul.mubr.msk.bf16.vlgmr.msra.gmra.mrb[12].mxu0 %vm519_vm1, %v1369_v12  ;;  %1090 = vmatmul.mubr.msk.bf16.vlgmr.msra.gmra.mrb[12].mxu1 %vm519_vm1, %v1369_v12 }
  0xac   : > { %v1427_v13 = vpop.permute.xlu0 %316 }
 0x112   : > { %v606_v40 = vpop.f32.mrb[0].mxu0  ;;  %v647_v14 = vpop.f32.mrb[0].mxu1 }
 0x113   : > { %v607_v15 = vadd.f32 %v606_v40, %v1427_v13  ;;  %v608_v16 = vpop.f32.mrb[1].mxu0  ;;  %v648_v18 = vadd.f32 %v647_v14, %v1427_v13  ;;  %v649_v19 = vpop.f32.mrb[1].mxu1 }
 0x114   : > { %v609_v17 = vadd.f32 %v608_v16, %v1427_v13  ;;  %v610_v20 = vpop.f32.mrb[2].mxu0  ;;  %v650_v21 = vadd.f32 %v649_v19, %v1427_v13  ;;  %v651_v12 = vpop.f32.mrb[2].mxu1 }
 0x115   : > { %1138 = vtanh.f32 %v607_v15  ;;  %v611_v22 = vpop.f32.mrb[3].mxu0  ;;  %v652_v23 = vpop.f32.mrb[3].mxu1 }
 0x116   : > { %1140 = vtanh.f32 %v609_v17 }
 0x117   : > { %1142 = vtanh.f32 %v648_v18 }
 0x118   : > { %1144 = vtanh.f32 %v650_v21 }
 0x11e   : > { %v688_v24 = vpop.f32.mrb[4].mxu0  ;;  %v729_v27 = vpop.f32.mrb[4].mxu1 }
 0x11f   : > { %v1139_v25 = vpop.eup %1138  ;;  %v689_v26 = vadd.f32 %v688_v24, %v1427_v13  ;;  %v690_v28 = vpop.f32.mrb[5].mxu0  ;;  %v730_v30 = vadd.f32 %v729_v27, %v1427_v13 }
 0x120   : > { %v1141_v29 = vpop.eup %1140  ;;  %v691_v31 = vadd.f32 %v690_v28, %v1427_v13  ;;  %v731_v32 = vpop.f32.mrb[5].mxu1 }
 0x121   : > { %v692_v33 = vpop.f32.mrb[6].mxu0  ;;  %v1143_v34 = vpop.eup %1142  ;;  %v932_v35 = vcombine.low %v1139_v25, %v1141_v29  ;;  %1146 = vtanh.f32 %v689_v26  ;;  %v732_v36 = vadd.f32 %v731_v32, %v1427_v13 }
 0x122   : > { %v733_v37 = vpop.f32.mrb[6].mxu1  ;;  %v693_v38 = vpop.f32.mrb[7].mxu0  ;;  %1148 = vtanh.f32 %v730_v30 }
 0x123   : > { %v1145_v39 = vpop.eup %1144  ;;  %v734_v41 = vpop.f32.mrb[7].mxu1  ;;  %948 = vst [vmem:[%s1439_s11] sm:$0xff] %v932_v35  ;;  %1150 = vtanh.f32 %v691_v31 }
 0x124   : > { %v933_v42 = vcombine.low %v1143_v34, %v1145_v39  ;;  %1152 = vtanh.f32 %v732_v36 }
 0x126   : > { %949 = vst [vmem:[%s1439_s11 + $0x8] sm:$0xff] %v933_v42 }
 0x12a   : > { %v770_v43 = vpop.f32.mrb[8].mxu0  ;;  %v811_v46 = vpop.f32.mrb[8].mxu1 }
 0x12b   : > { %v1147_v44 = vpop.eup %1146  ;;  %v771_v45 = vadd.f32 %v770_v43, %v1427_v13  ;;  %v772_v47 = vpop.f32.mrb[9].mxu0  ;;  %v812_v49 = vadd.f32 %v811_v46, %v1427_v13 }
 0x12c   : > { %v1149_v48 = vpop.eup %1148  ;;  %v773_v50 = vadd.f32 %v772_v47, %v1427_v13  ;;  %v813_v51 = vpop.f32.mrb[9].mxu1 }
 0x12d   : > { %v774_v52 = vpop.f32.mrb[10].mxu0  ;;  %v1151_v53 = vpop.eup %1150  ;;  %1154 = vtanh.f32 %v771_v45  ;;  %v814_v54 = vadd.f32 %v813_v51, %v1427_v13 }
 0x12e   : > { %v815_v55 = vpop.f32.mrb[10].mxu1  ;;  %v775_v56 = vpop.f32.mrb[11].mxu0  ;;  %v934_v58 = vcombine.low %v1147_v44, %v1151_v53  ;;  %1156 = vtanh.f32 %v812_v49 }
 0x12f   : > { %v1153_v57 = vpop.eup %1152  ;;  %v816_v59 = vpop.f32.mrb[11].mxu1  ;;  %1158 = vtanh.f32 %v773_v50 }
 0x130   : > { %v935_v60 = vcombine.low %v1149_v48, %v1153_v57  ;;  %950 = vst [vmem:[%s1439_s11 + $0x10] sm:$0xff] %v934_v58  ;;  %1160 = vtanh.f32 %v814_v54 }
 0x132   : > { %951 = vst [vmem:[%s1439_s11 + $0x18] sm:$0xff] %v935_v60 }
 0x136   : > { %v852_v61 = vpop.f32.mrb[12].mxu0  ;;  %v893_v0 = vpop.f32.mrb[12].mxu1 }
 0x137   : > { %v1155_v62 = vpop.eup %1154  ;;  %v853_v63 = vadd.f32 %v852_v61, %v1427_v13  ;;  %v854_v1 = vpop.f32.mrb[13].mxu0  ;;  %v894_v3 = vadd.f32 %v893_v0, %v1427_v13 }
 0x138   : > { %v1157_v2 = vpop.eup %1156  ;;  %v855_v4 = vadd.f32 %v854_v1, %v1427_v13  ;;  %v895_v5 = vpop.f32.mrb[13].mxu1 }
 0x139   : > { %v856_v6 = vpop.f32.mrb[14].mxu0  ;;  %v1159_v7 = vpop.eup %1158  ;;  %1162 = vtanh.f32 %v853_v63  ;;  %v896_v8 = vadd.f32 %v895_v5, %v1427_v13 }
 0x13a   : > { %v897_v9 = vpop.f32.mrb[14].mxu1  ;;  %v857_v10 = vpop.f32.mrb[15].mxu0  ;;  %v936_v40 = vcombine.low %v1155_v62, %v1159_v7  ;;  %1164 = vtanh.f32 %v894_v3 }
 0x13b   : > { %v1161_v11 = vpop.eup %1160  ;;  %v898_v14 = vpop.f32.mrb[15].mxu1  ;;  %1166 = vtanh.f32 %v855_v4 }
 0x13c   : > { %v937_v15 = vcombine.low %v1157_v2, %v1161_v11  ;;  %952 = vst [vmem:[%s1439_s11 + $0x20] sm:$0xff] %v936_v40  ;;  %1168 = vtanh.f32 %v896_v8 }
 0x13e   : > { %953 = vst [vmem:[%s1439_s11 + $0x28] sm:$0xff] %v937_v15 }
 0x143   : > { %v1163_v16 = vpop.eup %1162 }
 0x144   : > { %v1165_v17 = vpop.eup %1164 }
 0x145   : > { %v1167_v18 = vpop.eup %1166 }
 0x146   : > { %v1169_v19 = vpop.eup %1168  ;;  %v938_v20 = vcombine.low %v1163_v16, %v1167_v18 }
 0x147   : > { %v939_v21 = vcombine.low %v1165_v17, %v1169_v19 }
 0x148   : > { %954 = vst [vmem:[%s1439_s11 + $0x30] sm:$0xff] %v938_v20 }
 0x149   : > { %955 = vst [vmem:[%s1439_s11 + $0x38] sm:$0xff] %v939_v21 }
 0x14a PF: > { %p10_p9 = scmp.ge.s32.totalorder %s1232_s16, 10   ;;  %s1474_s12 = smov %s1188_s13 }
 0x14b   : > { %s1475_s13 = smov %s1241_s19  ;;  %s1476_s14 = smov %s1232_s16 }
 0x14c   :  { %12 = sbr.rel (!%p10_p9) target bundleno = 2 (0x2), region = 90 }

</bundles_post_ra>
